<compile_context>
chip_gen: v7x
topology: tpu7x:2x2x1
jax: 0.10.0
libtpu: 0.0.40
codegen_flags: <defaults>
</compile_context>

<pallas_src>
import functools

import jax
import jax.numpy as jnp
from jax.experimental import pallas as pl
from jax.experimental.pallas import tpu as pltpu


def basic_block_kernel(xp_ref, w1_ref, b1_ref, w2_ref, b2_ref, out_ref,
                       mid_ref, *, w_valid):
    # xp_ref : (B, H+2, Wp, C)  f32, H zero-padded by 1, W zero-padded to Wp
    # w1_ref : (9*C, C)         bf16 conv1 taps stacked along K, BN1 folded in
    # b1_ref : (1, C)           f32 folded BN1 bias
    # w2_ref : (9*C, C)         bf16 conv2 taps stacked along K, BN2 folded in
    # b2_ref : (1, C)           f32 folded BN2 bias
    # out_ref: (B, H, Wp, C)    f32
    # mid_ref: (B, H+2, Wp, C)  f32 VMEM scratch (H-padded intermediate)
    B, Hp, Wp, C = xp_ref.shape
    H = Hp - 2
    M = B * H * Wp

    # Hoisted column-position masks for the width-shifted patch copies.
    col = jax.lax.broadcasted_iota(jnp.int32, (M, 1), 0) % Wp
    not_first = col > 0          # the x-1 tap is in range
    not_last = col < (Wp - 1)    # the x+1 tap is in range

    def read_bands(ref):
        # Row bands for ky = 0, 1, 2.  H is an untiled axis, so these slices
        # and the (..., H, Wp, C) -> (M, C) reshapes are layout preserving.
        return [ref[:, ky:ky + H, :, :].reshape(M, C) for ky in range(3)]

    def stacked_patch(bands):
        # Lane-stack the 9 taps: per row band, the x-1 / x / x+1 copies.
        # Shifts go to the XLU (roll), boundary zeros are VPU selects, and the
        # pieces are cast to bf16 before the lane concat / MXU matmul.
        pieces = []
        for band in bands:                                    # f32 (M, C)
            m1 = jnp.where(not_first, pltpu.roll(band, 1, axis=0), 0.0)
            p1 = jnp.where(not_last, pltpu.roll(band, M - 1, axis=0), 0.0)
            pieces += [m1.astype(jnp.bfloat16),
                       band.astype(jnp.bfloat16),
                       p1.astype(jnp.bfloat16)]
        return jnp.concatenate(pieces, axis=-1)               # bf16 (M, 9*C)

    # ---- conv1 (3x3, pad=1) + folded BN1 + ReLU ---------------------------
    x_bands = read_bands(xp_ref)
    h1 = jnp.dot(stacked_patch(x_bands), w1_ref[...],
                 preferred_element_type=jnp.float32)
    h1 = jnp.maximum(h1 + b1_ref[...], 0.0)
    if w_valid < Wp:
        # zero the W-pad columns so conv2 sees proper zero padding there
        h1 = jnp.where(col < w_valid, h1, 0.0)

    # H-padded intermediate: zero ONLY the two border rows, every step
    # (do not gate on program_id -- breaks under megacore 'parallel').
    mid_ref[:, 0:1, :, :] = jnp.zeros((B, 1, Wp, C), jnp.float32)
    mid_ref[:, Hp - 1:Hp, :, :] = jnp.zeros((B, 1, Wp, C), jnp.float32)
    mid_ref[:, 1:1 + H, :, :] = h1.reshape(B, H, Wp, C)

    # ---- conv2 (3x3, pad=1) + folded BN2 + residual + ReLU ----------------
    out = jnp.dot(stacked_patch(read_bands(mid_ref)), w2_ref[...],
                  preferred_element_type=jnp.float32)
    residual = x_bands[1]        # identity shortcut == already-loaded center band (f32)
    out = jnp.maximum(out + b2_ref[...] + residual, 0.0)
    out_ref[...] = out.reshape(B, H, Wp, C)


def basic_block_forward(x_nchw, w1_hwio, w2_hwio, bn1, bn2, eps=1e-5, b_tile=1):
    """BasicBlock forward (stride=1, identity shortcut, inference-mode BN).

    x_nchw : (N, C, H, W) float32 (PyTorch layout)
    w?_hwio: (3, 3, Cin, Cout) conv weights (torch OIHW transposed to HWIO)
    bn?    : (gamma, beta, running_mean, running_var), each (Cout,)
    Returns NCHW output matching the torch module.
    """
    N, C, H, W = x_nchw.shape
    Cout = w1_hwio.shape[-1]
    assert C == Cout, "identity residual path requires inplanes == planes"
    assert N % b_tile == 0

    Wp = ((W + 7) // 8) * 8      # keep the sublane axis a multiple of 8
    Hp = H + 2

    # NCHW -> NHWC (channels on the lane axis); pad H for the conv, pad W->Wp.
    x_nhwc = jnp.transpose(x_nchw, (0, 2, 3, 1)).astype(jnp.float32)
    xp = jnp.pad(x_nhwc, ((0, 0), (1, 1), (0, Wp - W), (0, 0)))

    # One-time fold of inference BN into bf16 conv weights + f32 bias, with the
    # 9 taps stacked along the contraction dim (matches the in-kernel order).
    def fold(w_hwio, bn):
        gamma, beta, mean, var = bn
        scale = gamma * jax.lax.rsqrt(var + eps)                  # (Cout,)
        w_f = (w_hwio * scale).reshape(9 * w_hwio.shape[2], w_hwio.shape[3])
        bias = (beta - mean * scale).reshape(1, -1)
        return w_f.astype(jnp.bfloat16), bias.astype(jnp.float32)

    w1f, b1 = fold(w1_hwio, bn1)
    w2f, b2 = fold(w2_hwio, bn2)

    out_nhwc = pl.pallas_call(
        functools.partial(basic_block_kernel, w_valid=W),
        out_shape=jax.ShapeDtypeStruct((N, H, Wp, Cout), jnp.float32),
        grid_spec=pltpu.PrefetchScalarGridSpec(
            num_scalar_prefetch=0,
            grid=(N // b_tile,),
            in_specs=[
                pl.BlockSpec((b_tile, Hp, Wp, C), lambda n: (n, 0, 0, 0)),
                pl.BlockSpec((9 * C, Cout), lambda n: (0, 0)),
                pl.BlockSpec((1, Cout), lambda n: (0, 0)),
                pl.BlockSpec((9 * Cout, Cout), lambda n: (0, 0)),
                pl.BlockSpec((1, Cout), lambda n: (0, 0)),
            ],
            out_specs=pl.BlockSpec((b_tile, H, Wp, Cout),
                                   lambda n: (n, 0, 0, 0)),
            scratch_shapes=[pltpu.VMEM((b_tile, Hp, Wp, Cout), jnp.float32)],
        ),
        compiler_params=pltpu.CompilerParams(
            dimension_semantics=("parallel",)),
    )(xp, w1f, b1, w2f, b2)

    # Crop the W padding and go back to NCHW.
    return jnp.transpose(out_nhwc[:, :, :W, :], (0, 3, 1, 2))


if __name__ == "__main__":
    # BasicBlock(inplanes=128, planes=128, stride=1, downsample=None)
    N, C, H, W = 2, 128, 16, 16
    eps = 1e-5

    key = jax.random.PRNGKey(0)
    ks = jax.random.split(key, 11)

    x = jax.random.normal(ks[0], (N, C, H, W), dtype=jnp.float32)

    fan_in = 9 * C
    std = (2.0 / fan_in) ** 0.5
    w1 = jax.random.normal(ks[1], (3, 3, C, C), dtype=jnp.float32) * std
    w2 = jax.random.normal(ks[2], (3, 3, C, C), dtype=jnp.float32) * std

    def bn_params(k1, k2, k3, k4):
        gamma = jax.random.uniform(k1, (C,), minval=0.5, maxval=1.5, dtype=jnp.float32)
        beta = 0.1 * jax.random.normal(k2, (C,), dtype=jnp.float32)
        mean = 0.1 * jax.random.normal(k3, (C,), dtype=jnp.float32)
        var = jax.random.uniform(k4, (C,), minval=0.5, maxval=1.5, dtype=jnp.float32)
        return gamma, beta, mean, var

    bn1 = bn_params(ks[3], ks[4], ks[5], ks[6])
    bn2 = bn_params(ks[7], ks[8], ks[9], ks[10])

    out = basic_block_forward(x, w1, w2, bn1, bn2, eps=eps, b_tile=1)
    jax.block_until_ready(out)

    # ---- reference in plain JAX (inference-mode BN, unfused, f32) ---------
    x_nhwc = jnp.transpose(x, (0, 2, 3, 1))
    dn = jax.lax.conv_dimension_numbers(x_nhwc.shape, w1.shape,
                                        ("NHWC", "HWIO", "NHWC"))

    def bn_apply(y, p):
        g, b, m, v = p
        return g * (y - m) * jax.lax.rsqrt(v + eps) + b

    h = jax.lax.conv_general_dilated(x_nhwc, w1, (1, 1), "SAME",
                                     dimension_numbers=dn,
                                     precision=jax.lax.Precision.HIGHEST)
    h = jnp.maximum(bn_apply(h, bn1), 0.0)
    h2 = jax.lax.conv_general_dilated(h, w2, (1, 1), "SAME",
                                      dimension_numbers=dn,
                                      precision=jax.lax.Precision.HIGHEST)
    ref_nhwc = jnp.maximum(bn_apply(h2, bn2) + x_nhwc, 0.0)
    ref = jnp.transpose(ref_nhwc, (0, 3, 1, 2))

    # Tolerance sized for bf16 conv taps with f32 accumulation (the kernel
    # feeds the MXU in bf16); a wrong tap/shift pairing would give O(1) errors
    # and still trip this check.
    max_err = float(jnp.max(jnp.abs(out - ref)))
    assert jnp.allclose(out, ref, atol=5e-2, rtol=5e-2), f"max abs err = {max_err}"

    print("KERNEL_OK")
</pallas_src>

<mosaic_0001>
module attributes {stable_mosaic.version = 11 : i64} {
  func.func @basic_block_kernel(%arg0: i32, %arg1: memref<1x18x16x128xf32, #tpu.memory_space<vmem>>, %arg2: memref<1152x128xbf16, #tpu.memory_space<vmem>>, %arg3: memref<1x128xf32, #tpu.memory_space<vmem>>, %arg4: memref<1152x128xbf16, #tpu.memory_space<vmem>>, %arg5: memref<1x128xf32, #tpu.memory_space<vmem>>, %arg6: memref<1x16x16x128xf32, #tpu.memory_space<vmem>>, %arg7: memref<1x18x16x128xf32, #tpu.memory_space<vmem>>) attributes {dimension_semantics = [#tpu.dimension_semantics<parallel>], iteration_bounds = array<i64: 2>, scalar_prefetch = 0 : i64, scratch_operands = 1 : i64, tpu.core_type = #tpu.core_type<tc>, window_params = [{transform_indices = @transform_0, window_bounds = array<i64: 1, 18, 16, 128>}, {pipeline_mode = #tpu.pipeline_mode<synchronous>, transform_indices = @transform_1, window_bounds = array<i64: 1152, 128>}, {pipeline_mode = #tpu.pipeline_mode<synchronous>, transform_indices = @transform_2, window_bounds = array<i64: 1, 128>}, {pipeline_mode = #tpu.pipeline_mode<synchronous>, transform_indices = @transform_3, window_bounds = array<i64: 1152, 128>}, {pipeline_mode = #tpu.pipeline_mode<synchronous>, transform_indices = @transform_4, window_bounds = array<i64: 1, 128>}, {transform_indices = @transform_5, window_bounds = array<i64: 1, 16, 16, 128>}]} {
    %0 = tpu.iota {dimensions = array<i32: 0>} : vector<256x1xi32>
    %c16_i32 = arith.constant 16 : i32
    %c0_i32 = arith.constant 0 : i32
    %1 = arith.cmpi eq, %c16_i32, %c0_i32 : i32
    %c1_i32 = arith.constant 1 : i32
    %2 = arith.select %1, %c1_i32, %c16_i32 : i32
    %3 = vector.broadcast %2 : i32 to vector<256x1xi32>
    %4 = arith.remsi %0, %3 : vector<256x1xi32>
    %c0_i32_0 = arith.constant 0 : i32
    %5 = vector.broadcast %c0_i32_0 : i32 to vector<256x1xi32>
    %6 = arith.cmpi ne, %4, %5 : vector<256x1xi32>
    %c0_i32_1 = arith.constant 0 : i32
    %7 = vector.broadcast %c0_i32_1 : i32 to vector<256x1xi32>
    %8 = arith.cmpi slt, %4, %7 : vector<256x1xi32>
    %c0_i32_2 = arith.constant 0 : i32
    %9 = arith.cmpi slt, %2, %c0_i32_2 : i32
    %10 = vector.broadcast %9 : i1 to vector<256x1xi1>
    %11 = vector.broadcast %10 : vector<256x1xi1> to vector<256x1xi1>
    %12 = arith.xori %8, %11 : vector<256x1xi1>
    %13 = arith.andi %12, %6 : vector<256x1xi1>
    %14 = vector.broadcast %2 : i32 to vector<256x1xi32>
    %15 = arith.addi %4, %14 : vector<256x1xi32>
    %16 = arith.select %13, %15, %4 : vector<256x1xi1>, vector<256x1xi32>
    %c0_i32_3 = arith.constant 0 : i32
    %17 = vector.broadcast %c0_i32_3 : i32 to vector<256x1xi32>
    %18 = arith.cmpi sgt, %16, %17 : vector<256x1xi32>
    %c15_i32 = arith.constant 15 : i32
    %19 = vector.broadcast %c15_i32 : i32 to vector<256x1xi32>
    %20 = arith.cmpi slt, %16, %19 : vector<256x1xi32>
    %c0 = arith.constant 0 : index
    %c0_4 = arith.constant 0 : index
    %c0_5 = arith.constant 0 : index
    %c0_6 = arith.constant 0 : index
    %21 = vector.load %arg1[%c0, %c0_4, %c0_5, %c0_6] : memref<1x18x16x128xf32, #tpu.memory_space<vmem>>, vector<1x16x16x128xf32>
    %22 = vector.shape_cast %21 : vector<1x16x16x128xf32> to vector<256x128xf32>
    %c0_7 = arith.constant 0 : index
    %c1 = arith.constant 1 : index
    %c0_8 = arith.constant 0 : index
    %c0_9 = arith.constant 0 : index
    %23 = vector.load %arg1[%c0_7, %c1, %c0_8, %c0_9] : memref<1x18x16x128xf32, #tpu.memory_space<vmem>>, vector<1x16x16x128xf32>
    %24 = vector.shape_cast %23 : vector<1x16x16x128xf32> to vector<256x128xf32>
    %c0_10 = arith.constant 0 : index
    %c2 = arith.constant 2 : index
    %c0_11 = arith.constant 0 : index
    %c0_12 = arith.constant 0 : index
    %25 = vector.load %arg1[%c0_10, %c2, %c0_11, %c0_12] : memref<1x18x16x128xf32, #tpu.memory_space<vmem>>, vector<1x16x16x128xf32>
    %26 = vector.shape_cast %25 : vector<1x16x16x128xf32> to vector<256x128xf32>
    %c1_i32_13 = arith.constant 1 : i32
    %27 = tpu.dynamic_rotate %22 by %c1_i32_13 dim 0 : vector<256x128xf32>, i32 -> vector<256x128xf32>
    %cst = arith.constant 0.000000e+00 : f32
    %28 = vector.shape_cast %18 : vector<256x1xi1> to vector<256x1xi1>
    %29 = vector.broadcast %28 : vector<256x1xi1> to vector<256x128xi1>
    %30 = vector.broadcast %cst : f32 to vector<256x128xf32>
    %31 = arith.select %29, %27, %30 : vector<256x128xi1>, vector<256x128xf32>
    %c255_i32 = arith.constant 255 : i32
    %32 = tpu.dynamic_rotate %22 by %c255_i32 dim 0 : vector<256x128xf32>, i32 -> vector<256x128xf32>
    %cst_14 = arith.constant 0.000000e+00 : f32
    %33 = vector.shape_cast %20 : vector<256x1xi1> to vector<256x1xi1>
    %34 = vector.broadcast %33 : vector<256x1xi1> to vector<256x128xi1>
    %35 = vector.broadcast %cst_14 : f32 to vector<256x128xf32>
    %36 = arith.select %34, %32, %35 : vector<256x128xi1>, vector<256x128xf32>
    %37 = arith.truncf %31 : vector<256x128xf32> to vector<256x128xbf16>
    %38 = arith.truncf %22 : vector<256x128xf32> to vector<256x128xbf16>
    %39 = arith.truncf %36 : vector<256x128xf32> to vector<256x128xbf16>
    %c1_i32_15 = arith.constant 1 : i32
    %40 = tpu.dynamic_rotate %24 by %c1_i32_15 dim 0 : vector<256x128xf32>, i32 -> vector<256x128xf32>
    %cst_16 = arith.constant 0.000000e+00 : f32
    %41 = vector.shape_cast %18 : vector<256x1xi1> to vector<256x1xi1>
    %42 = vector.broadcast %41 : vector<256x1xi1> to vector<256x128xi1>
    %43 = vector.broadcast %cst_16 : f32 to vector<256x128xf32>
    %44 = arith.select %42, %40, %43 : vector<256x128xi1>, vector<256x128xf32>
    %c255_i32_17 = arith.constant 255 : i32
    %45 = tpu.dynamic_rotate %24 by %c255_i32_17 dim 0 : vector<256x128xf32>, i32 -> vector<256x128xf32>
    %cst_18 = arith.constant 0.000000e+00 : f32
    %46 = vector.shape_cast %20 : vector<256x1xi1> to vector<256x1xi1>
    %47 = vector.broadcast %46 : vector<256x1xi1> to vector<256x128xi1>
    %48 = vector.broadcast %cst_18 : f32 to vector<256x128xf32>
    %49 = arith.select %47, %45, %48 : vector<256x128xi1>, vector<256x128xf32>
    %50 = arith.truncf %44 : vector<256x128xf32> to vector<256x128xbf16>
    %51 = arith.truncf %24 : vector<256x128xf32> to vector<256x128xbf16>
    %52 = arith.truncf %49 : vector<256x128xf32> to vector<256x128xbf16>
    %c1_i32_19 = arith.constant 1 : i32
    %53 = tpu.dynamic_rotate %26 by %c1_i32_19 dim 0 : vector<256x128xf32>, i32 -> vector<256x128xf32>
    %cst_20 = arith.constant 0.000000e+00 : f32
    %54 = vector.shape_cast %18 : vector<256x1xi1> to vector<256x1xi1>
    %55 = vector.broadcast %54 : vector<256x1xi1> to vector<256x128xi1>
    %56 = vector.broadcast %cst_20 : f32 to vector<256x128xf32>
    %57 = arith.select %55, %53, %56 : vector<256x128xi1>, vector<256x128xf32>
    %c255_i32_21 = arith.constant 255 : i32
    %58 = tpu.dynamic_rotate %26 by %c255_i32_21 dim 0 : vector<256x128xf32>, i32 -> vector<256x128xf32>
    %cst_22 = arith.constant 0.000000e+00 : f32
    %59 = vector.shape_cast %20 : vector<256x1xi1> to vector<256x1xi1>
    %60 = vector.broadcast %59 : vector<256x1xi1> to vector<256x128xi1>
    %61 = vector.broadcast %cst_22 : f32 to vector<256x128xf32>
    %62 = arith.select %60, %58, %61 : vector<256x128xi1>, vector<256x128xf32>
    %63 = arith.truncf %57 : vector<256x128xf32> to vector<256x128xbf16>
    %64 = arith.truncf %26 : vector<256x128xf32> to vector<256x128xbf16>
    %65 = arith.truncf %62 : vector<256x128xf32> to vector<256x128xbf16>
    %66 = tpu.concatenate %37, %38, %39, %50, %51, %52, %63, %64, %65 in 1 : vector<256x128xbf16>, vector<256x128xbf16>, vector<256x128xbf16>, vector<256x128xbf16>, vector<256x128xbf16>, vector<256x128xbf16>, vector<256x128xbf16>, vector<256x128xbf16>, vector<256x128xbf16> -> vector<256x1152xbf16>
    %c0_23 = arith.constant 0 : index
    %c0_24 = arith.constant 0 : index
    %67 = vector.load %arg2[%c0_23, %c0_24] : memref<1152x128xbf16, #tpu.memory_space<vmem>>, vector<1152x128xbf16>
    %cst_25 = arith.constant dense<0.000000e+00> : vector<256x128xf32>
    %68 = tpu.matmul %66, %67, %cst_25 {dimension_numbers = #tpu.dot_dimension_numbers<[1], [0], [0], [1], [0, 0, 1, 1], [], []>} : vector<256x1152xbf16>, vector<1152x128xbf16>, vector<256x128xf32> -> vector<256x128xf32>
    %c0_26 = arith.constant 0 : index
    %c0_27 = arith.constant 0 : index
    %69 = vector.load %arg3[%c0_26, %c0_27] : memref<1x128xf32, #tpu.memory_space<vmem>>, vector<1x128xf32>
    %70 = vector.broadcast %69 : vector<1x128xf32> to vector<256x128xf32>
    %71 = arith.addf %68, %70 : vector<256x128xf32>
    %cst_28 = arith.constant 0.000000e+00 : f32
    %72 = vector.broadcast %cst_28 : f32 to vector<256x128xf32>
    %73 = arith.maximumf %71, %72 : vector<256x128xf32>
    %cst_29 = arith.constant 0.000000e+00 : f32
    %74 = vector.broadcast %cst_29 : f32 to vector<1x1x16x128xf32>
    %c0_30 = arith.constant 0 : index
    %c0_31 = arith.constant 0 : index
    %c0_32 = arith.constant 0 : index
    %c0_33 = arith.constant 0 : index
    %75 = vector.load %arg7[%c0_30, %c0_31, %c0_32, %c0_33] : memref<1x18x16x128xf32, #tpu.memory_space<vmem>>, vector<1x1x16x128xf32>
    tpu.vector_store %arg7[%c0_30, %c0_31, %c0_32, %c0_33], %74 {strides = array<i32>} : memref<1x18x16x128xf32, #tpu.memory_space<vmem>>, vector<1x1x16x128xf32>,
    %cst_34 = arith.constant 0.000000e+00 : f32
    %76 = vector.broadcast %cst_34 : f32 to vector<1x1x16x128xf32>
    %c0_35 = arith.constant 0 : index
    %c17 = arith.constant 17 : index
    %c0_36 = arith.constant 0 : index
    %c0_37 = arith.constant 0 : index
    %77 = vector.load %arg7[%c0_35, %c17, %c0_36, %c0_37] : memref<1x18x16x128xf32, #tpu.memory_space<vmem>>, vector<1x1x16x128xf32>
    tpu.vector_store %arg7[%c0_35, %c17, %c0_36, %c0_37], %76 {strides = array<i32>} : memref<1x18x16x128xf32, #tpu.memory_space<vmem>>, vector<1x1x16x128xf32>,
    %78 = vector.shape_cast %73 : vector<256x128xf32> to vector<1x16x16x128xf32>
    %c0_38 = arith.constant 0 : index
    %c1_39 = arith.constant 1 : index
    %c0_40 = arith.constant 0 : index
    %c0_41 = arith.constant 0 : index
    %79 = vector.load %arg7[%c0_38, %c1_39, %c0_40, %c0_41] : memref<1x18x16x128xf32, #tpu.memory_space<vmem>>, vector<1x16x16x128xf32>
    tpu.vector_store %arg7[%c0_38, %c1_39, %c0_40, %c0_41], %78 {strides = array<i32>} : memref<1x18x16x128xf32, #tpu.memory_space<vmem>>, vector<1x16x16x128xf32>,
    %c0_42 = arith.constant 0 : index
    %c0_43 = arith.constant 0 : index
    %c0_44 = arith.constant 0 : index
    %c0_45 = arith.constant 0 : index
    %80 = vector.load %arg7[%c0_42, %c0_43, %c0_44, %c0_45] : memref<1x18x16x128xf32, #tpu.memory_space<vmem>>, vector<1x16x16x128xf32>
    %81 = vector.shape_cast %80 : vector<1x16x16x128xf32> to vector<256x128xf32>
    %c0_46 = arith.constant 0 : index
    %c1_47 = arith.constant 1 : index
    %c0_48 = arith.constant 0 : index
    %c0_49 = arith.constant 0 : index
    %82 = vector.load %arg7[%c0_46, %c1_47, %c0_48, %c0_49] : memref<1x18x16x128xf32, #tpu.memory_space<vmem>>, vector<1x16x16x128xf32>
    %83 = vector.shape_cast %82 : vector<1x16x16x128xf32> to vector<256x128xf32>
    %c0_50 = arith.constant 0 : index
    %c2_51 = arith.constant 2 : index
    %c0_52 = arith.constant 0 : index
    %c0_53 = arith.constant 0 : index
    %84 = vector.load %arg7[%c0_50, %c2_51, %c0_52, %c0_53] : memref<1x18x16x128xf32, #tpu.memory_space<vmem>>, vector<1x16x16x128xf32>
    %85 = vector.shape_cast %84 : vector<1x16x16x128xf32> to vector<256x128xf32>
    %c1_i32_54 = arith.constant 1 : i32
    %86 = tpu.dynamic_rotate %81 by %c1_i32_54 dim 0 : vector<256x128xf32>, i32 -> vector<256x128xf32>
    %cst_55 = arith.constant 0.000000e+00 : f32
    %87 = vector.shape_cast %18 : vector<256x1xi1> to vector<256x1xi1>
    %88 = vector.broadcast %87 : vector<256x1xi1> to vector<256x128xi1>
    %89 = vector.broadcast %cst_55 : f32 to vector<256x128xf32>
    %90 = arith.select %88, %86, %89 : vector<256x128xi1>, vector<256x128xf32>
    %c255_i32_56 = arith.constant 255 : i32
    %91 = tpu.dynamic_rotate %81 by %c255_i32_56 dim 0 : vector<256x128xf32>, i32 -> vector<256x128xf32>
    %cst_57 = arith.constant 0.000000e+00 : f32
    %92 = vector.shape_cast %20 : vector<256x1xi1> to vector<256x1xi1>
    %93 = vector.broadcast %92 : vector<256x1xi1> to vector<256x128xi1>
    %94 = vector.broadcast %cst_57 : f32 to vector<256x128xf32>
    %95 = arith.select %93, %91, %94 : vector<256x128xi1>, vector<256x128xf32>
    %96 = arith.truncf %90 : vector<256x128xf32> to vector<256x128xbf16>
    %97 = arith.truncf %81 : vector<256x128xf32> to vector<256x128xbf16>
    %98 = arith.truncf %95 : vector<256x128xf32> to vector<256x128xbf16>
    %c1_i32_58 = arith.constant 1 : i32
    %99 = tpu.dynamic_rotate %83 by %c1_i32_58 dim 0 : vector<256x128xf32>, i32 -> vector<256x128xf32>
    %cst_59 = arith.constant 0.000000e+00 : f32
    %100 = vector.shape_cast %18 : vector<256x1xi1> to vector<256x1xi1>
    %101 = vector.broadcast %100 : vector<256x1xi1> to vector<256x128xi1>
    %102 = vector.broadcast %cst_59 : f32 to vector<256x128xf32>
    %103 = arith.select %101, %99, %102 : vector<256x128xi1>, vector<256x128xf32>
    %c255_i32_60 = arith.constant 255 : i32
    %104 = tpu.dynamic_rotate %83 by %c255_i32_60 dim 0 : vector<256x128xf32>, i32 -> vector<256x128xf32>
    %cst_61 = arith.constant 0.000000e+00 : f32
    %105 = vector.shape_cast %20 : vector<256x1xi1> to vector<256x1xi1>
    %106 = vector.broadcast %105 : vector<256x1xi1> to vector<256x128xi1>
    %107 = vector.broadcast %cst_61 : f32 to vector<256x128xf32>
    %108 = arith.select %106, %104, %107 : vector<256x128xi1>, vector<256x128xf32>
    %109 = arith.truncf %103 : vector<256x128xf32> to vector<256x128xbf16>
    %110 = arith.truncf %83 : vector<256x128xf32> to vector<256x128xbf16>
    %111 = arith.truncf %108 : vector<256x128xf32> to vector<256x128xbf16>
    %c1_i32_62 = arith.constant 1 : i32
    %112 = tpu.dynamic_rotate %85 by %c1_i32_62 dim 0 : vector<256x128xf32>, i32 -> vector<256x128xf32>
    %cst_63 = arith.constant 0.000000e+00 : f32
    %113 = vector.shape_cast %18 : vector<256x1xi1> to vector<256x1xi1>
    %114 = vector.broadcast %113 : vector<256x1xi1> to vector<256x128xi1>
    %115 = vector.broadcast %cst_63 : f32 to vector<256x128xf32>
    %116 = arith.select %114, %112, %115 : vector<256x128xi1>, vector<256x128xf32>
    %c255_i32_64 = arith.constant 255 : i32
    %117 = tpu.dynamic_rotate %85 by %c255_i32_64 dim 0 : vector<256x128xf32>, i32 -> vector<256x128xf32>
    %cst_65 = arith.constant 0.000000e+00 : f32
    %118 = vector.shape_cast %20 : vector<256x1xi1> to vector<256x1xi1>
    %119 = vector.broadcast %118 : vector<256x1xi1> to vector<256x128xi1>
    %120 = vector.broadcast %cst_65 : f32 to vector<256x128xf32>
    %121 = arith.select %119, %117, %120 : vector<256x128xi1>, vector<256x128xf32>
    %122 = arith.truncf %116 : vector<256x128xf32> to vector<256x128xbf16>
    %123 = arith.truncf %85 : vector<256x128xf32> to vector<256x128xbf16>
    %124 = arith.truncf %121 : vector<256x128xf32> to vector<256x128xbf16>
    %125 = tpu.concatenate %96, %97, %98, %109, %110, %111, %122, %123, %124 in 1 : vector<256x128xbf16>, vector<256x128xbf16>, vector<256x128xbf16>, vector<256x128xbf16>, vector<256x128xbf16>, vector<256x128xbf16>, vector<256x128xbf16>, vector<256x128xbf16>, vector<256x128xbf16> -> vector<256x1152xbf16>
    %c0_66 = arith.constant 0 : index
    %c0_67 = arith.constant 0 : index
    %126 = vector.load %arg4[%c0_66, %c0_67] : memref<1152x128xbf16, #tpu.memory_space<vmem>>, vector<1152x128xbf16>
    %cst_68 = arith.constant dense<0.000000e+00> : vector<256x128xf32>
    %127 = tpu.matmul %125, %126, %cst_68 {dimension_numbers = #tpu.dot_dimension_numbers<[1], [0], [0], [1], [0, 0, 1, 1], [], []>} : vector<256x1152xbf16>, vector<1152x128xbf16>, vector<256x128xf32> -> vector<256x128xf32>
    %c0_69 = arith.constant 0 : index
    %c0_70 = arith.constant 0 : index
    %128 = vector.load %arg5[%c0_69, %c0_70] : memref<1x128xf32, #tpu.memory_space<vmem>>, vector<1x128xf32>
    %129 = vector.broadcast %128 : vector<1x128xf32> to vector<256x128xf32>
    %130 = arith.addf %127, %129 : vector<256x128xf32>
    %131 = arith.addf %130, %24 : vector<256x128xf32>
    %cst_71 = arith.constant 0.000000e+00 : f32
    %132 = vector.broadcast %cst_71 : f32 to vector<256x128xf32>
    %133 = arith.maximumf %131, %132 : vector<256x128xf32>
    %134 = vector.shape_cast %133 : vector<256x128xf32> to vector<1x16x16x128xf32>
    %c0_72 = arith.constant 0 : index
    %c0_73 = arith.constant 0 : index
    %c0_74 = arith.constant 0 : index
    %c0_75 = arith.constant 0 : index
    %135 = vector.load %arg6[%c0_72, %c0_73, %c0_74, %c0_75] : memref<1x16x16x128xf32, #tpu.memory_space<vmem>>, vector<1x16x16x128xf32>
    tpu.vector_store %arg6[%c0_72, %c0_73, %c0_74, %c0_75], %134 {strides = array<i32>} : memref<1x16x16x128xf32, #tpu.memory_space<vmem>>, vector<1x16x16x128xf32>,
    return
  }
  func.func @transform_0(%arg0: i32) -> (i32, i32, i32, i32) {
    %c0_i32 = arith.constant 0 : i32
    %c0_i32_0 = arith.constant 0 : i32
    %c0_i32_1 = arith.constant 0 : i32
    %c0_i32_2 = arith.constant 0 : i32
    return %arg0, %c0_i32, %c0_i32_0, %c0_i32_1 : i32, i32, i32, i32
  }
  func.func @transform_1(%arg0: i32) -> (i32, i32) {
    %c0_i32 = arith.constant 0 : i32
    %c0_i32_0 = arith.constant 0 : i32
    %c0_i32_1 = arith.constant 0 : i32
    return %c0_i32, %c0_i32_0 : i32, i32
  }
  func.func @transform_2(%arg0: i32) -> (i32, i32) {
    %c0_i32 = arith.constant 0 : i32
    %c0_i32_0 = arith.constant 0 : i32
    %c0_i32_1 = arith.constant 0 : i32
    return %c0_i32, %c0_i32_0 : i32, i32
  }
  func.func @transform_3(%arg0: i32) -> (i32, i32) {
    %c0_i32 = arith.constant 0 : i32
    %c0_i32_0 = arith.constant 0 : i32
    %c0_i32_1 = arith.constant 0 : i32
    return %c0_i32, %c0_i32_0 : i32, i32
  }
  func.func @transform_4(%arg0: i32) -> (i32, i32) {
    %c0_i32 = arith.constant 0 : i32
    %c0_i32_0 = arith.constant 0 : i32
    %c0_i32_1 = arith.constant 0 : i32
    return %c0_i32, %c0_i32_0 : i32, i32
  }
  func.func @transform_5(%arg0: i32) -> (i32, i32, i32, i32) {
    %c0_i32 = arith.constant 0 : i32
    %c0_i32_0 = arith.constant 0 : i32
    %c0_i32_1 = arith.constant 0 : i32
    %c0_i32_2 = arith.constant 0 : i32
    return %arg0, %c0_i32, %c0_i32_0, %c0_i32_1 : i32, i32, i32, i32
  }
}

</mosaic_0001>

<bundles_post_ra>
// kernel: tpu_custom_call.1
= control target key start
LH: loop header
LB: loop body
LE: loop exit
PB: predicated region body
PF: predicated region fallthrough
CT: control target
= control target key end

     0   :  { %10 = vsyncpa [#allocation4], 0  ;;  %s10806_s0 = inlined_call_operand.hbm [shape: f32[2,18,16,128], index: 0, kind: input, shape index: {}]   ;;  %s10807_s1 = inlined_call_operand.hbm [shape: bf16[1152,128], index: 1, kind: input, shape index: {}]   ;;  %s10808_s2 = inlined_call_operand.vmem [shape: f32[1,128], index: 2, kind: input, shape index: {}]   ;;  %s10809_s3 = inlined_call_operand.hbm [shape: bf16[1152,128], index: 3, kind: input, shape index: {}]   ;;  %s10810_s4 = inlined_call_operand.vmem [shape: f32[1,128], index: 4, kind: input, shape index: {}]   ;;  %s10811_s5 = inlined_call_operand.hbm [shape: f32[2,16,16,128], index: 5, kind: output, shape index: {}]  }
   0x1   :  { %12 = vsyncpa [#allocation4 + $0x1], 0 }
   0x2   :  { %13 = vsyncpa [#allocation7], 0 }
   0x3   :  { %14 = vsyncpa [#allocation5], 0 }
   0x4   :  { %16 = vsyncpa [#allocation5 + $0x1], 0  ;;  %s7884_s18 = smov 0   ;;  %s7886_s19 = smov 0  }
   0x5   :  { %s7888_s20 = smov 0   ;;  %s7890_s21 = smov 0  }
   0x6 LB: > { %s7905_s22 = sadd.s32 4294967295, %s7839_s21   ;;  %s5567_s23 = sadd.s32 4294967294, %s7839_s21   ;;  %s7839_s21 = sphi %s7890_s21, %s11610_s21   ;;  %s7835_s20 = sphi %s7888_s20, %s11609_s20   ;;  %s7831_s19 = sphi %s7886_s19, %s11608_s19   ;;  %s7827_s18 = sphi %s7884_s18, %s11607_s18  }
   0x7   : > { %p42_p0 = scmp.ne.s32.totalorder %s7831_s19, %s7827_s18  ;;  %p10812_p1 = scmp.eq.s32.totalorder %s7905_s22, 0 }
   0x8   : > { %p156_p3 = scmp.eq.s32.totalorder %s5567_s23, 1  ;;  %p5568_p5 = scmp.ge.s32.totalorder %s7839_s21, 1 }
   0x9   : > { %p7914_p4 = por %p10812_p1, %p42_p0  ;;  %p163_p7 = scmp.lt.s32.totalorder %s7839_s21, 3 }
   0xa   : > { %p7919_p6 = por %p156_p3, %p42_p0  ;;  %s7841_s27 = smov [#allocation6]  }
   0xb   : > { %s11031_s24 = scalar_select %p7914_p4, 1, 0 }
   0xc   : > { %s11032_s25 = scalar_select %p7919_p6, 1, 0 }
   0xd   : > { %p7924_p8 = pnand %p5568_p5, %p163_p7  ;;  %s175_s28 = sshll.u32 %s7841_s27, 4  ;;  %s7928_s28 = int_to_ptr.vmem [resolvable:$true] %s175_s28 }
   0xe   : > { %s7842_s30 = smov [#allocation8]   ;;  %s7683_s9 = scalar_lea.hbm %s10807_s1, 9216 }
   0xf   : > { %p7424_p9 = pneg %p7924_p8  ;;  %s191_s6 = sshll.u32 %s7842_s30, 4  ;;  %s7939_s6 = int_to_ptr.vmem [resolvable:$true] %s191_s6 }
  0x10   : > { %p7684_p12 = scmp.ne.s32.totalorder %s10807_s1, %s7683_s9  ;;  %p7690_p5 = scmp.lt.u32.totalorder %s7683_s9, %s10807_s1 }
  0x11   : > { %p7935_p11 = pnand %p7424_p9, %p10812_p1 }
  0x13   : > { %p7685_p13 = pneg %p7935_p11 }
  0x15   : > { %p7686_p0 = pnand %p7685_p13, %p7684_p12 }
  0x17   : > { %p7687_p3 = pneg %p7686_p0 }
  0x19   : > { %p7692_p7 = pnand %p7690_p5, %p7687_p3 }
  0x1b   : > { %7695 = shalt.err (!%p7692_p7)
}
  0x1c   : > { %s7696_s14 = scalar_lea.vmem %s7928_s28, 9216  ;;  %p7704_p2 = scmp.lt.s32.totalorder %s7928_s28, %s7928_s28 }
  0x1d   : > { %p7697_p9 = scmp.ne.s32.totalorder %s7928_s28, %s7696_s14  ;;  %p7705_p12 = scmp.lt.s32.totalorder %s7696_s14, %s7696_s14 }
  0x1f   : > { %p7699_p10 = pnand %p7697_p9, %p7685_p13  ;;  %p7706_p0 = por %p7705_p12, %p7704_p2 }
  0x21   : > { %p7700_p1 = pneg %p7699_p10 }
  0x23   : > { %p7707_p6 = pnand %p7706_p0, %p7700_p1 }
  0x25   : > { %7710 = shalt.err (!%p7707_p6)
}
  0x26   : > { %s7843_s15 = smov 64   ;;  %s7844_s16 = smov 4  }
  0x27   : > { %7427 = dma.hbm_to_vmem [thread:$0]  (!%p7935_p11), %s10807_s1, 9216, %s7928_s28, [#allocation7], %s7843_s15, %s7843_s15, %s7844_s16  }
  0x28   : > { %s7711_s7 = scalar_lea.hbm %s10809_s3, 9216 }
  0x29   : > { %p7712_p2 = scmp.ne.s32.totalorder %s10809_s3, %s7711_s7  ;;  %p7718_p10 = scmp.lt.u32.totalorder %s7711_s7, %s10809_s3 }
  0x2b   : > { %p7714_p1 = pnand %p7712_p2, %p7685_p13 }
  0x2d   : > { %p7715_p6 = pneg %p7714_p1 }
  0x2f   : > { %p7720_p3 = pnand %p7718_p10, %p7715_p6 }
  0x31   : > { %7723 = shalt.err (!%p7720_p3)
}
  0x32   : > { %s7724_s28 = scalar_lea.vmem %s7939_s6, 9216  ;;  %p7732_p12 = scmp.lt.s32.totalorder %s7939_s6, %s7939_s6 }
  0x33   : > { %p7725_p5 = scmp.ne.s32.totalorder %s7939_s6, %s7724_s28  ;;  %p7733_p0 = scmp.lt.s32.totalorder %s7724_s28, %s7724_s28 }
  0x35   : > { %p7727_p7 = pnand %p7725_p5, %p7685_p13  ;;  %p7734_p2 = por %p7733_p0, %p7732_p12 }
  0x37   : > { %p7728_p9 = pneg %p7727_p7 }
  0x39   : > { %p7735_p1 = pnand %p7734_p2, %p7728_p9 }
  0x3b   : > { %7738 = shalt.err (!%p7735_p1)
}
  0x3c   : > { %7430 = dma.hbm_to_vmem [thread:$0]  (!%p7935_p11), %s10809_s3, 9216, %s7939_s6, [#allocation7], %s7843_s15, %s7843_s15, %s7844_s16  }
  0x3d   : > { %s7994_s14 = sadd.s32 1, %s7839_s21   ;;  %s29_s29 = sadd.s32 1, %s7835_s20 }
  0x3e   : > { %s26_s17 = ssub.s32 %s7839_s21, %s7994_s14  ;;  %p36_p13 = scmp.ne.s32.totalorder %s7835_s20, %s7831_s19 }
  0x3f   : > { %p27_p6 = scmp.eq.s32.totalorder %s26_s17, 0  ;;  %p37_p10 = scmp.eq.s32.totalorder %s7839_s21, 0 }
  0x40   : > { %p11035_p3 = scmp.eq.s32.totalorder %s7905_s22, 1  ;;  %p7441_p7 = scmp.lt.s32.totalorder %s7839_s21, 2 }
  0x41   : > { %s8010_s27 = scalar_select %p27_p6, %s7835_s20, %s29_s29  }
  0x42   : > { %p8004_p5 = por %p11035_p3, %p36_p13  ;;  %p38_p9 = por %p37_p10, %p36_p13 }
  0x43   : > { %s208_s30 = sand.u32 1, %s7835_s20   ;;  %s7410_s6 = smul.u32 4608, %s7839_s21 }
  0x44   : > { %s11036_s23 = scalar_select %p8004_p5, 1, 0 }
  0x45   : > { %s7409_s7 = smul.u32 288, %s208_s30  ;;  %p8014_p11 = pnand %p7441_p7, %p38_p9 }
  0x46   : > { %s8021_s9 = scalar_lea.hbm %s10806_s0, %s7410_s6  ;;  %s8025_s28 = scalar_lea.sflag [#allocation4], %s208_s30 }
  0x47   : > { %s212_s10 = scalar_lea.vmem [#allocation3], %s7409_s7  ;;  %s7739_s12 = scalar_lea.hbm %s8021_s9, 4608 }
  0x48   : > { %s219_s11 = sshll.u32 %s212_s10, 4  ;;  %p7740_p12 = scmp.ne.s32.totalorder %s8021_s9, %s7739_s12  ;;  %s8023_s11 = int_to_ptr.vmem [resolvable:$true] %s219_s11 }
  0x49   : > { %p7741_p0 = pneg %p8014_p11  ;;  %s7744_s17 = scalar_lea.hbm %s10806_s0, 9216 }
  0x4a   : > { %p7745_p13 = scmp.lt.u32.totalorder %s8021_s9, %s10806_s0  ;;  %p7746_p6 = scmp.lt.u32.totalorder %s7744_s17, %s7739_s12 }
  0x4b   : > { %p7742_p2 = pnand %p7741_p0, %p7740_p12  ;;  %p7748_p3 = scmp.lt.u32.totalorder %s7739_s12, %s8021_s9 }
  0x4c   : > { %p7747_p10 = por %p7746_p6, %p7745_p13 }
  0x4d   : > { %p7743_p1 = pneg %p7742_p2 }
  0x4e   : > { %p7749_p7 = por %p7748_p3, %p7747_p10 }
  0x50   : > { %p7750_p9 = pnand %p7749_p7, %p7743_p1 }
  0x52   : > { %7753 = shalt.err (!%p7750_p9)
}
  0x53   : > { %s7754_s30 = scalar_lea.vmem %s8023_s11, 4608  ;;  %s7845_s7 = smov [#allocation3]  }
  0x54   : > { %p7755_p12 = scmp.ne.s32.totalorder %s8023_s11, %s7754_s30  ;;  %s7759_s8 = sshll.u32 %s7845_s7, 4  ;;  %s7760_s8 = int_to_ptr.vmem [resolvable:$false] %s7759_s8 }
  0x55   : > { %s7761_s10 = scalar_lea.vmem %s7760_s8, 9216  ;;  %p7762_p4 = scmp.lt.s32.totalorder %s8023_s11, %s7760_s8 }
  0x56   : > { %p7757_p2 = pnand %p7755_p12, %p7741_p0  ;;  %p7763_p13 = scmp.lt.s32.totalorder %s7761_s10, %s7754_s30 }
  0x58   : > { %p7758_p5 = pneg %p7757_p2  ;;  %p7764_p6 = por %p7763_p13, %p7762_p4 }
  0x5a   : > { %p7765_p10 = pnand %p7764_p6, %p7758_p5 }
  0x5c   : > { %7768 = shalt.err (!%p7765_p10)
}
  0x5d   : > { %s7846_s12 = smov 128   ;;  %s7847_s13 = smov 8  }
  0x5e   : > { %7434 = dma.hbm_to_vmem [thread:$0]  (!%p8014_p11), %s8021_s9, 4608, %s8023_s11, %s8025_s28, %s7846_s12, %s7846_s12, %s7847_s13  }
  0x5f   : > { %231 = sbr.rel (%p7924_p8) target bundleno = 1227 (0x4cb), region = 40 }
  0x66   : > { %s8056_s29 = sand.u32 1, %s7831_s19   ;;  %p11038_p4 = scmp.ne.s32.totalorder %s11031_s24, 0 }
  0x67   : > { %s7411_s17 = smul.u32 288, %s8056_s29  ;;  %s234_s6 = scalar_lea.sflag [#allocation4], %s8056_s29 }
  0x69   : > { %s8060_s16 = scalar_lea.vmem [#allocation3], %s7411_s17 }
  0x6a   : > { %7814 = dma.done.wait (%p11038_p4), %s234_s6, 4608  }
  0x6b   : > { %7816 = vsyncadd (%p11038_p4), %s234_s6, 4294962688  ;;  %p11039_p5 = scmp.eq.s32.totalorder %s7905_s22, 0 }
  0x6d   : > { %7818 = dma.done.wait (%p11039_p5), [#allocation7], 18432   ;;  %p11040_p8 = pmov %p11039_p5 }
  0x6e   : > { %v7488_v0 = vld [vmem:[#allocation6 + $0x40] sm:$0xff]   ;;  %v7492_v4 = vld [vmem:[#allocation6 + $0x48] sm:$0xff]   ;;  %v7496_v8 = vld [vmem:[#allocation6 + $0x50] sm:$0xff]   ;;  %v273_v18 = vlaneseq  ;;  %vm10817_vm4 = vmmov 1   ;;  %v11045_v61 = vmov 0  ;;  %v11058_v47 = vmov 0 }
  0x6f   : > { %7820 = vsyncadd (%p11040_p8), [#allocation7], 4294948864  ;;  %v7489_v1 = vld [vmem:[#allocation6] sm:$0xff]   ;;  %6369 = vmatprep.subr.bf16.mxu0 %v7488_v0  ;;  %v7493_v5 = vld [vmem:[#allocation6 + $0x8] sm:$0xff]   ;;  %v11061_v54 = vmov 0  ;;  %s5576_s11 = sshll.u32 %s8056_s29, 8 }
  0x70   : > { %v7490_v2 = vld [vmem:[#allocation6 + $0xc0] sm:$0xff]   ;;  %6370 = vmatpush3.bf16.msra.mxu0 %v7489_v1  ;;  %v7494_v6 = vld [vmem:[#allocation6 + $0xc8] sm:$0xff]   ;;  %v7497_v9 = vld [vmem:[#allocation6 + $0x10] sm:$0xff]   ;;  %v8070_v23 = vshrl.u32 %v273_v18, 7  ;;  %s10665_s28 = scalar_lea.vmem [#allocation9], %s5576_s11  ;;  %s6368_s30 = sshll.u32 %s7905_s22, 12 }
  0x71   : > { %v7491_v3 = vld [vmem:[#allocation6 + $0x80] sm:$0xff]   ;;  %6481 = vmatprep.subr.bf16.mxu1 %v7490_v2  ;;  %6371 = vmatprep.subr.bf16.mxu0 %v7492_v4  ;;  %v7495_v7 = vld [vmem:[#allocation6 + $0x88] sm:$0xff]   ;;  %v7498_v10 = vld [vmem:[#allocation6 + $0xd0] sm:$0xff]   ;;  %s5475_s7 = sshll.u32 %s10665_s28, 4  ;;  %s10757_s12 = scalar_lea.hbm %s10811_s5, %s6368_s30  ;;  %s10759_s7 = int_to_ptr.vmem [resolvable:$true] %s5475_s7 }
  0x72   : > { %6482 = vmatpush3.bf16.msra.mxu1 %v7491_v3  ;;  %v7499_v11 = vld [vmem:[#allocation6 + $0x90] sm:$0xff]   ;;  %v7500_v12 = vld [vmem:[#allocation6 + $0x58] sm:$0xff]   ;;  %v7504_v16 = vld [vmem:[#allocation6 + $0x60] sm:$0xff]   ;;  %v310_v28 = vand.u32 15, %v8070_v23  ;;  %v275_v30 = vadd.s32 8, %v8070_v23  ;;  %v276_v32 = vadd.s32 16, %v8070_v23 }
  0x73   : > { %6483 = vmatprep.subr.bf16.mxu1 %v7494_v6  ;;  %v7501_v13 = vld [vmem:[#allocation6 + $0x18] sm:$0xff]   ;;  %v7505_v17 = vld [vmem:[#allocation6 + $0x20] sm:$0xff]   ;;  %v7508_v21 = vld [vmem:[#allocation6 + $0x68] sm:$0xff]   ;;  %vm10816_vm0 = vcmp.lt.s32.totalorder %v8070_v23, 1  ;;  %vm10815_vm1 = vcmp.lt.s32.totalorder %v8070_v23, 7  ;;  %v8082_v40 = vadd.s32 24, %v8070_v23 }
  0x74   : > { %6372 = vmatpush3.bf16.msra.mxu0 %v7493_v5  ;;  %v7502_v14 = vld [vmem:[#allocation6 + $0xd8] sm:$0xff]   ;;  %v7506_v19 = vld [vmem:[#allocation6 + $0xe0] sm:$0xff]   ;;  %v7509_v22 = vld [vmem:[#allocation6 + $0x28] sm:$0xff]   ;;  %v317_v36 = vand.u32 15, %v275_v30  ;;  %v324_v39 = vand.u32 15, %v276_v32  ;;  %vm8087_vm2 = vcmp.gt.s32.totalorder %v310_v28, 0 }
  0x75   : > { %6373 = vmatprep.subr.bf16.mxu0 %v7496_v8  ;;  %v7503_v15 = vld [vmem:[#allocation6 + $0x98] sm:$0xff]   ;;  %v7507_v20 = vld [vmem:[#allocation6 + $0xa0] sm:$0xff]   ;;  %v7510_v24 = vld [vmem:[#allocation6 + $0xe8] sm:$0xff]   ;;  %v8095_v49 = vadd.s32 32, %v8070_v23  ;;  %v281_v1 = vadd.s32 56, %v8070_v23  ;;  %s5462_s22 = scalar_lea.sflag [#allocation5], %s8056_s29 }
  0x76   : > { %6484 = vmatpush3.bf16.msra.mxu1 %v7495_v7  ;;  %v7511_v25 = vld [vmem:[#allocation6 + $0xa8] sm:$0xff]   ;;  %v7512_v26 = vld [vmem:[#allocation6 + $0x70] sm:$0xff]   ;;  %v7516_v33 = vld [vmem:[#allocation6 + $0x78] sm:$0xff]   ;;  %vm8101_vm3 = vcmp.lt.s32.totalorder %v317_v36, 15  ;;  %vm8125_vm6 = vcmp.gt.s32.totalorder %v324_v39, 0  ;;  %v331_v7 = vand.u32 15, %v8082_v40 }
  0x77   : > { %6485 = vmatprep.subr.bf16.mxu1 %v7498_v10  ;;  %v7513_v27 = vld [vmem:[#allocation6 + $0x30] sm:$0xff]   ;;  %v7517_v34 = vld [vmem:[#allocation6 + $0x38] sm:$0xff]   ;;  %v8078_v37 = vld [vmem:[%s8060_s16] sm:$0xff]  ;;  %s7769_s13 = scalar_lea.vmem %s10759_s7, 4096  ;;  %p11604_p0 = scmp.ne.s32.totalorder %s11036_s23, 0 }
  0x78   : > { %6374 = vmatpush3.bf16.msra.mxu0 %v7497_v9  ;;  %v7514_v29 = vld [vmem:[#allocation6 + $0xf0] sm:$0xff]   ;;  %v7518_v35 = vld [vmem:[#allocation6 + $0xf8] sm:$0xff]   ;;  %v755_v38 = vld [vmem:[%s8060_s16 + $0x8] sm:$0xff]  ;;  %v852_v41 = vrot.slane %v8078_v37, 7  ;;  %v1013_v43 = vrot.slane %v8078_v37, 1  ;;  %vm8184_vm9 = vcmp.lt.s32.totalorder %v331_v7, 15  ;;  %p7770_p11 = scmp.ne.s32.totalorder %s10759_s7, %s7769_s13 }
  0x79   : > { %6375 = vmatprep.subr.bf16.mxu0 %v7500_v12  ;;  %v7515_v31 = vld [vmem:[#allocation6 + $0xb0] sm:$0xff]   ;;  %v853_v42 = vrot.slane %v755_v38, 7  ;;  %v1014_v44 = vrot.slane %v755_v38, 1  ;;  %v1190_v45 = vpack.c.bf16 %v755_v38, %v8078_v37  ;;  %v7519_v46 = vld [vmem:[#allocation6 + $0xb8] sm:$0xff]   ;;  %v7520_v52 = vld [vmem:[#allocation6 + $0x140] sm:$0xff]   ;;  %v297_v37 = vadd.s32 184, %v8070_v23 }
  0x7a   : > { %6486 = vmatpush3.bf16.msra.mxu1 %v7499_v11  ;;  %v8092_v48 = vld [vmem:[%s8060_s16 + $0xf8] sm:$0xff]  ;;  %v5577_v53 = vld [vmem:[%s8060_s16 + $0x10] sm:$0xff]  ;;  %v8107_v56 = vld [vmem:[%s8060_s16 + $0x108] sm:$0xff]  ;;  %p7771_p1 = pnand %p7770_p11, %p11604_p0  ;;  %s7851_s17 = smov [#allocation9]  }
  0x7b   : > { %6487 = vmatprep.subr.bf16.mxu1 %v7502_v14  ;;  %v10831_v50 = vrot.slane %v8092_v48, 7  ;;  %v915_v51 = vsel %vm10816_vm0, %v852_v41, %v853_v42  ;;  %2317 = vmatprep.mubr.bf16.mxu0 %v1190_v45  ;;  %v5578_v55 = vld [vmem:[%s8060_s16 + $0x18] sm:$0xff]  ;;  %v1222_v57 = vrot.slane %v5577_v53, 7  ;;  %v1015_v58 = vrot.slane %v5577_v53, 1  ;;  %vm8120_vm5 = vmpackc.low %vm10817_vm4, %vm8087_vm2  ;;  %v7521_v0 = vld [vmem:[#allocation6 + $0x100] sm:$0xff]   ;;  %s7773_s6 = sshll.u32 %s7851_s17, 4  ;;  %s7774_s6 = int_to_ptr.vmem [resolvable:$false] %s7773_s6 }
  0x7c   : > { %6376 = vmatpush3.bf16.msra.mxu0 %v7501_v13  ;;  %v1076_v59 = vsel %vm10815_vm1, %v1013_v43, %v1014_v44  ;;  %v11046_v61 = vsel %vm8120_vm5, 4294967295, %v11045_v61  ;;  %v1223_v62 = vrot.slane %v5578_v55, 7  ;;  %v10834_v63 = vrot.slane %v8107_v56, 7  ;;  %v8132_v5 = vld [vmem:[%s8060_s16 + $0x20] sm:$0xff]  ;;  %v8135_v6 = vld [vmem:[%s8060_s16 + $0x28] sm:$0xff]  ;;  %vm8150_vm7 = vmpackc.low %vm8101_vm3, %vm10817_vm4  ;;  %p7772_p3 = pneg %p7771_p1  ;;  %p7776_p7 = scmp.lt.s32.totalorder %s10759_s7, %s7774_s6 }
  0x7d   : > { %6377 = vmatprep.subr.bf16.mxu0 %v7504_v16  ;;  %v916_v60 = vsel %vm10816_vm0, %v10831_v50, %v852_v41  ;;  %11047 = vst [vmem:[#allocation13_spill] sm:$0xff] %v11046_v61  ;;  %v1075_v3 = vsel %vm10815_vm1, %v1014_v44, %v1015_v58  ;;  %v1191_v4 = vpack.c.bf16 %v5578_v55, %v5577_v53  ;;  %v1224_v11 = vrot.slane %v8132_v5, 7  ;;  %v8157_v18 = vld [vmem:[%s8060_s16 + $0x30] sm:$0xff]  ;;  %vm8172_vm8 = vmpackc.low %vm10817_vm4, %vm8125_vm6  ;;  %v8204_v44 = vld [vmem:[%s8060_s16 + $0x48] sm:$0xff] }
  0x7e   : > { %6488 = vmatpush3.bf16.msra.mxu1 %v7503_v15  ;;  %v5715_v2 = vpack.c.bf16 %v915_v51, %v916_v60  ;;  %v1284_v8 = vsel %vm10816_vm0, %v1222_v57, %v1223_v62  ;;  %v1285_v9 = vsel %vm10816_vm0, %v10834_v63, %v1222_v57  ;;  %v5766_v10 = vpack.c.bf16 %v1075_v3, %v1076_v59  ;;  %v7524_v36 = vld [vmem:[#allocation6 + $0x150] sm:$0xff]   ;;  %vm8211_vm11 = vmpackc.low %vm8184_vm9, %vm10817_vm4  ;;  %v7527_v59 = vld [vmem:[#allocation6 + $0x118] sm:$0xff]  }
  0x7f   : > { %6489 = vmatprep.subr.bf16.mxu1 %v7506_v19  ;;  %v5763_v12 = vpack.c.bf16 %v1284_v8, %v1285_v9  ;;  %v11050_v13 = vmov 0  ;;  %v1016_v14 = vrot.slane %v5578_v55, 1  ;;  %v1225_v15 = vrot.slane %v8135_v6, 7  ;;  %v7528_v7 = vld [vmem:[#allocation6 + $0x160] sm:$0xff]   ;;  %v8256_v9 = vld [vmem:[%s8060_s16 + $0x58] sm:$0xff] }
  0x80   : > { %6378 = vmatpush3.bf16.msra.mxu0 %v7505_v17  ;;  %v11051_v13 = vsel %vm8150_vm7, 4294967295, %v11050_v13  ;;  %v1017_v16 = vrot.slane %v8132_v5, 1  ;;  %v7522_v17 = vld [vmem:[#allocation6 + $0x148] sm:$0xff]   ;;  %v914_v19 = vsel %vm10816_vm0, %v853_v42, %v1222_v57  ;;  %v1192_v38 = vpack.c.bf16 %v8135_v6, %v8132_v5  ;;  %v8201_v42 = vld [vmem:[%s8060_s16 + $0x40] sm:$0xff] }
  0x81   : > { %6379 = vmatprep.subr.bf16.mxu0 %v7508_v21  ;;  %11052 = vst [vmem:[#allocation14_spill] sm:$0xff] %v11051_v13  ;;  %v8164_v21 = vld [vmem:[%s8060_s16 + $0x38] sm:$0xff]  ;;  %5764 = vmatprep.mubr.msk.bf16.mxu1 %vm8120_vm5, %v5763_v12  ;;  %v5718_v32 = vpack.c.bf16 %v1284_v8, %v914_v19  ;;  %v11059_v47 = vsel %vm8211_vm11, 4294967295, %v11058_v47  ;;  %v1228_v55 = vrot.slane %v8201_v42, 7  ;;  %v1229_v57 = vrot.slane %v8204_v44, 7  ;;  %v9199_v13 = vld [vmem:[%s8060_s16 + $0x48] sm:$0xff] }
  0x82   : > { %6490 = vmatpush3.bf16.msra.mxu1 %v7507_v20  ;;  %v1283_v20 = vsel %vm10816_vm0, %v1223_v62, %v1224_v11  ;;  %v1227_v28 = vrot.slane %v8164_v21, 7  ;;  %11060 = vst [vmem:[#allocation16_spill] sm:$0xff] %v11059_v47  ;;  %v282_v8 = vadd.s32 64, %v8070_v23  ;;  %v1020_v12 = vrot.slane %v8164_v21, 1 }
  0x83   : > { %6491 = vmatprep.subr.bf16.mxu1 %v7510_v24  ;;  %v11053_v24 = vmov 0  ;;  %v359_v19 = vand.u32 15, %v281_v1  ;;  %v7537_v1 = vld [vmem:[#allocation6 + $0x130] sm:$0xff]   ;;  %v289_v3 = vadd.s32 120, %v8070_v23  ;;  %v11165_v63 = vmov 0 }
  0x84   : > { %6380 = vmatpush3.bf16.msra.mxu0 %v7509_v22  ;;  %v279_v22 = vadd.s32 40, %v8070_v23  ;;  %v11054_v24 = vsel %vm8172_vm8, 4294967295, %v11053_v24  ;;  %v1279_v5 = vsel %vm10816_vm0, %v1227_v28, %v1228_v55 }
  0x85   : > { %6381 = vmatprep.subr.bf16.mxu0 %v7512_v26  ;;  %11055 = vst [vmem:[#allocation15_spill] sm:$0xff] %v11054_v24  ;;  %v338_v26 = vand.u32 15, %v8095_v49  ;;  %v1018_v49 = vrot.slane %v8135_v6, 1  ;;  %v8252_v6 = vld [vmem:[%s8060_s16 + $0x50] sm:$0xff]  ;;  %vm729_vm3 = vcmp.lt.s32.totalorder %v359_v19, 15  ;;  %v7540_v19 = vld [vmem:[#allocation6 + $0x1d8] sm:$0xff]  }
  0x86   : > { %6492 = vmatpush3.bf16.msra.mxu1 %v7511_v25  ;;  %v1282_v25 = vsel %vm10816_vm0, %v1224_v11, %v1225_v15  ;;  %v345_v41 = vand.u32 15, %v279_v22  ;;  %v7529_v11 = vld [vmem:[#allocation6 + $0x120] sm:$0xff]   ;;  %v1231_v22 = vrot.slane %v8256_v9, 7  ;;  %vm8304_vm9 = vmpackc.low %vm729_vm3, %vm10817_vm4 }
  0x87   : > { %6493 = vmatprep.subr.bf16.mxu1 %v7514_v29  ;;  %v7523_v29 = vld [vmem:[#allocation6 + $0x108] sm:$0xff]   ;;  %v5769_v30 = vpack.c.bf16 %v1282_v25, %v1283_v20  ;;  %vm694_vm10 = vcmp.gt.s32.totalorder %v338_v26, 0  ;;  %v1072_v62 = vsel %vm10815_vm1, %v1017_v16, %v1018_v49  ;;  %v1230_v20 = vrot.slane %v8252_v6, 7 }
  0x88   : > { %6382 = vmatpush3.bf16.msra.mxu0 %v7513_v27  ;;  %v1226_v27 = vrot.slane %v8157_v18, 7  ;;  %vm8220_vm12 = vmpackc.low %vm10817_vm4, %vm694_vm10  ;;  %vm727_vm13 = vcmp.lt.s32.totalorder %v345_v41, 15  ;;  %v283_v25 = vadd.s32 72, %v8070_v23  ;;  %v7532_v26 = vld [vmem:[#allocation6 + $0x168] sm:$0xff]  }
  0x89   : > { %6383 = vmatprep.subr.bf16.mxu0 %v7516_v33  ;;  %v11062_v54 = vsel %vm8220_vm12, 4294967295, %v11061_v54  ;;  %vm8236_vm14 = vmpackc.low %vm727_vm13, %vm10817_vm4  ;;  %v1277_v33 = vsel %vm10816_vm0, %v1229_v57, %v1230_v20 }
  0x8a   : > { %6494 = vmatpush3.bf16.msra.mxu1 %v7515_v31  ;;  %v280_v31 = vadd.s32 48, %v8070_v23  ;;  %v1280_v39 = vsel %vm10816_vm0, %v1226_v27, %v1227_v28  ;;  %v1281_v40 = vsel %vm10816_vm0, %v1225_v15, %v1226_v27  ;;  %11063 = vst [vmem:[#allocation17_spill] sm:$0xff] %v11062_v54  ;;  %v1021_v15 = vrot.slane %v8201_v42, 1 }
  0x8b   : > { %6495 = vmatprep.subr.bf16.mxu1 %v7518_v35  ;;  %v1074_v35 = vsel %vm10815_vm1, %v1015_v58, %v1016_v14  ;;  %v8216_v51 = vpack.c.bf16 %v1280_v39, %v1281_v40  ;;  %v7526_v58 = vld [vmem:[#allocation6 + $0x158] sm:$0xff]   ;;  %v373_v40 = vand.u32 15, %v283_v25 }
  0x8c   : > { %6384 = vmatpush3.bf16.msra.mxu0 %v7517_v34  ;;  %v1073_v34 = vsel %vm10815_vm1, %v1016_v14, %v1017_v16  ;;  %v352_v53 = vand.u32 15, %v280_v31  ;;  %v7530_v16 = vld [vmem:[#allocation6 + $0x1c0] sm:$0xff]   ;;  %v1069_v27 = vsel %vm10815_vm1, %v1020_v12, %v1021_v15  ;;  %v1194_v31 = vpack.c.bf16 %v8204_v44, %v8201_v42 }
  0x8d   : > { %6593 = vmatprep.subr.bf16.mxu0 %v7520_v52  ;;  %v5772_v45 = vpack.c.bf16 %v1073_v34, %v1074_v35  ;;  %v1019_v52 = vrot.slane %v8157_v18, 1  ;;  %v8291_v34 = vld [vmem:[%s8060_s16 + $0x60] sm:$0xff]  ;;  %v1022_v42 = vrot.slane %v8204_v44, 1  ;;  %vm8326_vm13 = vcmp.lt.s32.totalorder %v373_v40, 15 }
  0x8e   : > { %6496 = vmatpush3.bf16.msra.mxu1 %v7519_v46  ;;  %v7525_v46 = vld [vmem:[#allocation6 + $0x110] sm:$0xff]   ;;  %vm8243_vm15 = vcmp.gt.s32.totalorder %v352_v53, 0  ;;  %v1232_v53 = vrot.slane %v8291_v34, 7  ;;  %vm8358_vm3 = vmpackc.low %vm8326_vm13, %vm10817_vm4  ;;  %v288_v35 = vadd.s32 112, %v8070_v23 }
  0x8f   : > { %5716 = vmatmul.mubr.msk.bf16.vlgmr.msra.gmra.mrb[0].mxu0 %vm8120_vm5, %v5715_v2  ;;  %v1071_v60 = vsel %vm10815_vm1, %v1018_v49, %v1019_v52  ;;  %v1193_v2 = vpack.c.bf16 %v8164_v21, %v8157_v18  ;;  %vm8267_vm2 = vmpackc.low %vm10817_vm4, %vm8243_vm15  ;;  %v11069_v18 = vmov 0  ;;  %v366_v21 = vand.u32 15, %v282_v8  ;;  %6705 = vmatprep.subr.bf16.mxu1 %v7530_v16  ;;  %v7538_v8 = vld [vmem:[#allocation6 + $0x1d0] sm:$0xff]  }
  0x90   : > { %6594 = vmatpush3.bf16.msra.mxu0 %v7521_v0  ;;  %2325 = vmatprep.mubr.bf16.mxu0 %v1191_v4  ;;  %v11064_v0 = vmov 0  ;;  %v1278_v4 = vsel %vm10816_vm0, %v1228_v55, %v1229_v57  ;;  %v11070_v18 = vsel %vm8267_vm2, 4294967295, %v11069_v18  ;;  %v1070_v28 = vsel %vm10815_vm1, %v1019_v52, %v1020_v12  ;;  %v7535_v52 = vld [vmem:[#allocation6 + $0x188] sm:$0xff]   ;;  %v7536_v55 = vld [vmem:[#allocation6 + $0x170] sm:$0xff]  }
  0x91   : > { %6595 = vmatprep.subr.bf16.mxu0 %v7522_v17  ;;  %5767 = vmatmul.mubr.msk.bf16.vlgmr.msra.gmra.mrb[0].mxu1 %vm8150_vm7, %v5766_v10  ;;  %v11065_v0 = vsel %vm8236_vm14, 4294967295, %v11064_v0  ;;  %v5778_v10 = vpack.c.bf16 %v1071_v60, %v1072_v62  ;;  %v8261_v14 = vpack.c.bf16 %v1278_v4, %v1279_v5  ;;  %v7531_v17 = vld [vmem:[#allocation6 + $0x180] sm:$0xff]   ;;  %11071 = vst [vmem:[#allocation19_spill] sm:$0xff] %v11070_v18  ;;  %vm8293_vm6 = vcmp.gt.s32.totalorder %v366_v21, 0  ;;  %v8336_v62 = vld [vmem:[%s8060_s16 + $0x70] sm:$0xff]  ;;  %v7541_v21 = vld [vmem:[#allocation6 + $0x198] sm:$0xff]  }
  0x92   : > { %5770 = vmatprep.mubr.msk.bf16.mxu1 %vm8172_vm8, %v5769_v30  ;;  %11066 = vst [vmem:[#allocation18_spill] sm:$0xff] %v11065_v0  ;;  %6706 = vmatpush3.bf16.msra.mxu1 %v7531_v17  ;;  %v5784_v39 = vpack.c.bf16 %v1069_v27, %v1070_v28  ;;  %vm8315_vm10 = vmpackc.low %vm10817_vm4, %vm8293_vm6  ;;  %v285_v60 = vadd.s32 88, %v8070_v23  ;;  %v1275_v5 = vsel %vm10816_vm0, %v1231_v22, %v1232_v53  ;;  %v1025_v17 = vrot.slane %v8291_v34, 1  ;;  %v7542_v27 = vld [vmem:[#allocation6 + $0x178] sm:$0xff]  }
  0x94   : > { %6596 = vmatpush3.bf16.msra.mxu0 %v7523_v29  ;;  %v284_v29 = vadd.s32 80, %v8070_v23 }
  0x95   : > { %6597 = vmatprep.subr.bf16.mxu0 %v7524_v36  ;;  %v8298_v36 = vld [vmem:[%s8060_s16 + $0x68] sm:$0xff] }
  0x96   : > { %v380_v49 = vand.u32 15, %v284_v29  ;;  %v1233_v44 = vrot.slane %v8298_v36, 7 }
  0x97   : > { %5719 = vmatmul.mubr.msk.bf16.gmra.mrb[4].mxu0 %vm8172_vm8, %v5718_v32  ;;  %v1276_v32 = vsel %vm10816_vm0, %v1230_v20, %v1231_v22  ;;  %v387_v20 = vand.u32 15, %v285_v60  ;;  %v1234_v22 = vrot.slane %v8336_v62, 7  ;;  %v8425_v60 = vld [vmem:[%s8060_s16 + $0x98] sm:$0xff] }
  0x98   : > { %2333 = vmatprep.mubr.bf16.mxu0 %v1192_v38  ;;  %6598 = vmatpush3.bf16.msra.mxu0 %v7525_v46  ;;  %v7534_v38 = vld [vmem:[#allocation6 + $0x1c8] sm:$0xff]   ;;  %v1023_v46 = vrot.slane %v8252_v6, 1  ;;  %vm8340_vm15 = vcmp.gt.s32.totalorder %v380_v49, 0  ;;  %v1274_v4 = vsel %vm10816_vm0, %v1232_v53, %v1233_v44  ;;  %v1026_v49 = vrot.slane %v8298_v36, 1 }
  0x99   : > { %5773 = vmatmul.mubr.msk.bf16.gmra.mrb[4].mxu1 %vm8211_vm11, %v5772_v45  ;;  %6599 = vmatprep.subr.bf16.mxu0 %v7526_v58  ;;  %v8309_v45 = vpack.c.bf16 %v1276_v32, %v1277_v33  ;;  %v8363_v16 = vpack.c.bf16 %v1274_v4, %v1275_v5  ;;  %vm8369_vm6 = vmpackc.low %vm10817_vm4, %vm8340_vm15  ;;  %vm733_vm13 = vcmp.lt.s32.totalorder %v387_v20, 15  ;;  %v1273_v32 = vsel %vm10816_vm0, %v1233_v44, %v1234_v22  ;;  %v8392_v33 = vld [vmem:[%s8060_s16 + $0x80] sm:$0xff]  ;;  %v7547_v4 = vld [vmem:[#allocation6 + $0x1a8] sm:$0xff]  }
  0x9a   : > { %5776 = vmatprep.mubr.msk.bf16.mxu1 %vm8220_vm12, %v8216_v51  ;;  %6707 = vmatprep.subr.bf16.mxu1 %v7534_v38  ;;  %v1067_v58 = vsel %vm10815_vm1, %v1022_v42, %v1023_v46  ;;  %v8396_v38 = vld [vmem:[%s8060_s16 + $0x88] sm:$0xff]  ;;  %v8410_v53 = vrot.slane %v8336_v62, 1  ;;  %v7545_v44 = vld [vmem:[#allocation6 + $0x1a0] sm:$0xff]  }
  0x9b   : > { %6708 = vmatpush3.bf16.msra.mxu1 %v7535_v52  ;;  %v1237_v57 = vrot.slane %v8396_v38, 7 }
  0x9c   : > { %6600 = vmatpush3.bf16.msra.mxu0 %v7527_v59  ;;  %v1068_v59 = vsel %vm10815_vm1, %v1021_v15, %v1022_v42  ;;  %6709 = vmatprep.subr.bf16.mxu1 %v7538_v8  ;;  %v1024_v15 = vrot.slane %v8256_v9, 1 }
  0x9d   : > { %6601 = vmatprep.subr.bf16.mxu0 %v7528_v7  ;;  %v8349_v7 = vld [vmem:[%s8060_s16 + $0x78] sm:$0xff]  ;;  %v5790_v12 = vpack.c.bf16 %v1067_v58, %v1068_v59  ;;  %v7546_v58 = vld [vmem:[#allocation6 + $0x1e8] sm:$0xff]   ;;  %v408_v59 = vand.u32 15, %v288_v35 }
  0x9e   : > { %v1065_v28 = vsel %vm10815_vm1, %v1024_v15, %v1025_v17  ;;  %v1066_v29 = vsel %vm10815_vm1, %v1023_v46, %v1024_v15  ;;  %v7544_v46 = vld [vmem:[#allocation6 + $0x1e0] sm:$0xff]   ;;  %vm8402_vm1 = vmpackc.low %vm733_vm13, %vm10817_vm4  ;;  %v1197_v5 = vpack.c.bf16 %v8349_v7, %v8336_v62  ;;  %v11100_v15 = vmov 0 }
  0x9f   : > { %5722 = vmatmul.mubr.msk.bf16.gmra.mrb[8].mxu0 %vm8220_vm12, %v5769_v30  ;;  %v7533_v30 = vld [vmem:[#allocation6 + $0x128] sm:$0xff]   ;;  %v5796_v40 = vpack.c.bf16 %v1065_v28, %v1066_v29  ;;  %v1029_v62 = vrot.slane %v8392_v33, 1  ;;  %v7550_v29 = vld [vmem:[#allocation6 + $0x1f8] sm:$0xff]  }
  0xa0   : > { %2341 = vmatprep.mubr.bf16.mxu0 %v1193_v2  ;;  %6602 = vmatpush3.bf16.msra.mxu0 %v7529_v11  ;;  %v1195_v2 = vpack.c.bf16 %v8256_v9, %v8252_v6  ;;  %v7539_v11 = vld [vmem:[#allocation6 + $0x190] sm:$0xff]   ;;  %v11083_v6 = vmov 0  ;;  %v1235_v9 = vrot.slane %v8349_v7, 7 }
  0xa1   : > { %5779 = vmatmul.mubr.msk.bf16.gmra.mrb[8].mxu1 %vm8236_vm14, %v5778_v10  ;;  %6603 = vmatprep.subr.bf16.mxu0 %v7532_v26  ;;  %v286_v10 = vadd.s32 96, %v8070_v23  ;;  %v11084_v6 = vsel %vm8358_vm3, 4294967295, %v11083_v6  ;;  %v287_v26 = vadd.s32 104, %v8070_v23 }
  0xa2   : > { %5782 = vmatprep.mubr.msk.bf16.mxu1 %vm8267_vm2, %v8261_v14  ;;  %11085 = vst [vmem:[#allocation21_spill] sm:$0xff] %v11084_v6  ;;  %6710 = vmatpush3.bf16.msra.mxu1 %v7539_v11  ;;  %v290_v11 = vadd.s32 128, %v8070_v23 }
  0xa3   : > { %v394_v25 = vand.u32 15, %v286_v10  ;;  %6711 = vmatprep.subr.bf16.mxu1 %v7540_v19  ;;  %v401_v42 = vand.u32 15, %v287_v26  ;;  %v11103_v26 = vmov 0 }
  0xa4   : > { %6604 = vmatpush3.bf16.msra.mxu0 %v7533_v30  ;;  %v1196_v30 = vpack.c.bf16 %v8298_v36, %v8291_v34  ;;  %v11089_v34 = vmov 0  ;;  %v8420_v36 = vld [vmem:[%s8060_s16 + $0x90] sm:$0xff]  ;;  %v422_v28 = vand.u32 15, %v290_v11 }
  0xa5   : > { %6605 = vmatprep.subr.bf16.mxu0 %v7536_v55  ;;  %vm702_vm15 = vcmp.gt.s32.totalorder %v394_v25, 0  ;;  %v11090_v34 = vsel %vm8402_vm1, 4294967295, %v11089_v34  ;;  %v11092_v55 = vmov 0  ;;  %vm735_vm13 = vcmp.lt.s32.totalorder %v401_v42, 15 }
  0xa6   : > { %6712 = vmatpush3.bf16.msra.mxu1 %v7541_v21  ;;  %11091 = vst [vmem:[#allocation23_spill] sm:$0xff] %v11090_v34  ;;  %v8451_v19 = vrot.slane %v8420_v36, 7  ;;  %v291_v25 = vadd.s32 136, %v8070_v23  ;;  %v8536_v11 = vrot.slane %v8420_v36, 1 }
  0xa7   : > { %5725 = vmatmul.mubr.msk.bf16.gmra.mrb[12].mxu0 %vm8267_vm2, %v8216_v51  ;;  %v11076_v51 = vmov 0  ;;  %6713 = vmatprep.subr.bf16.mxu1 %v7544_v46 }
  0xa8   : > { %2349 = vmatprep.mubr.bf16.mxu0 %v1194_v31  ;;  %v11077_v51 = vsel %vm8315_vm10, 4294967295, %v11076_v51  ;;  %6606 = vmatpush3.bf16.msra.mxu0 %v7537_v1  ;;  %v1272_v31 = vsel %vm10816_vm0, %v1234_v22, %v1235_v9  ;;  %vm8413_vm0 = vmpackc.low %vm10817_vm4, %vm702_vm15  ;;  %vm11095_vm15 = vcmp.lt.s32.totalorder %v8070_v23, 7  ;;  %v1239_v22 = vrot.slane %v8425_v60, 7 }
  0xa9   : > { %11078 = vst [vmem:[#allocation20_spill] sm:$0xff] %v11077_v51  ;;  %5785 = vmatmul.mubr.msk.bf16.gmra.mrb[12].mxu1 %vm8304_vm9, %v5784_v39  ;;  %6607 = vmatprep.subr.bf16.mxu0 %v7542_v27  ;;  %v7543_v39 = vld [vmem:[#allocation6 + $0x138] sm:$0xff]   ;;  %v8407_v52 = vpack.c.bf16 %v1272_v31, %v1273_v32  ;;  %v11093_v55 = vsel %vm8413_vm0, 4294967295, %v11092_v55  ;;  %v1063_v1 = vsel %vm11095_vm15, %v1026_v49, %v8410_v53  ;;  %vm11096_vm4 = vmmov %vm11095_vm15  ;;  %vm11099_vm15 = vmmov 1   ;;  %v8473_v32 = vld [vmem:[#allocation6 + $0x200] sm:$0xff]  }
  0xaa   : > { %5788 = vmatprep.mubr.msk.bf16.mxu1 %vm8315_vm10, %v8309_v45  ;;  %11094 = vst [vmem:[#allocation24_spill] sm:$0xff] %v11093_v55  ;;  %6714 = vmatpush3.bf16.msra.mxu1 %v7545_v44  ;;  %v415_v27 = vand.u32 15, %v289_v3  ;;  %v1044_v31 = vrot.slane %v8092_v48, 1  ;;  %v429_v46 = vand.u32 15, %v291_v25  ;;  %v293_v44 = vadd.s32 152, %v8070_v23 }
  0xab   : > { %6715 = vmatprep.subr.bf16.mxu1 %v7546_v58  ;;  %v294_v3 = vadd.s32 160, %v8070_v23  ;;  %v11116_v25 = vmov 0 }
  0xac   : > { %6608 = vmatpush3.bf16.msra.mxu0 %v7543_v39 }
  0xad   : > { %7313 = vmatprep.subr.bf16.mxu0 %v8473_v32 }
  0xae   : > { %6716 = vmatpush3.bf16.msra.mxu1 %v7547_v4  ;;  %v1030_v4 = vrot.slane %v8396_v38, 1 }
  0xaf   : > { %5728 = vmatmul.mubr.msk.bf16.gmra.mrb[16].mxu0 %vm8315_vm10, %v8261_v14  ;;  %v11086_v14 = vmov 0 }
  0xb0   : > { %2357 = vmatprep.mubr.bf16.mxu0 %v1195_v2  ;;  %v11087_v14 = vsel %vm8369_vm6, 4294967295, %v11086_v14  ;;  %v1064_v2 = vsel %vm11096_vm4, %v1025_v17, %v1026_v49  ;;  %vm8444_vm4 = vmpackc.low %vm735_vm13, %vm11099_vm15  ;;  %v1028_v17 = vrot.slane %v8349_v7, 1  ;;  %v7549_v7 = vld [vmem:[#allocation6 + $0x1b0] sm:$0xff]   ;;  %vm11109_vm13 = vcmp.lt.s32.totalorder %v8070_v23, 1  ;;  %v8498_v49 = vld [vmem:[%s8060_s16 + $0xa0] sm:$0xff] }
  0xb1   : > { %11088 = vst [vmem:[#allocation22_spill] sm:$0xff] %v11087_v14  ;;  %5791 = vmatmul.mubr.msk.bf16.gmra.mrb[16].mxu1 %vm8358_vm3, %v5790_v12  ;;  %v7548_v12 = vld [vmem:[#allocation6 + $0x1f0] sm:$0xff]   ;;  %v11101_v15 = vsel %vm8444_vm4, 4294967295, %v11100_v15  ;;  %v5802_v20 = vpack.c.bf16 %v1063_v1, %v1064_v2  ;;  %v1198_v1 = vpack.c.bf16 %v8396_v38, %v8392_v33  ;;  %v8519_v2 = vld [vmem:[%s8060_s16 + $0xa8] sm:$0xff]  ;;  %v8544_v38 = vld [vmem:[%s8060_s16 + $0xb8] sm:$0xff]  ;;  %vm11135_vm3 = vcmp.lt.s32.totalorder %v8070_v23, 7 }
  0xb2   : > { %5794 = vmatprep.mubr.msk.bf16.mxu1 %vm8369_vm6, %v8363_v16  ;;  %11102 = vst [vmem:[#allocation25_spill] sm:$0xff] %v11101_v15  ;;  %6717 = vmatprep.subr.bf16.mxu1 %v7548_v12  ;;  %v8632_v12 = vld [vmem:[%s8060_s16 + $0xd0] sm:$0xff]  ;;  %v8834_v14 = vld [vmem:[%s8060_s16 + $0x100] sm:$0xff] }
  0xb3   : > { %6718 = vmatpush3.bf16.msra.mxu1 %v7549_v7  ;;  %11192 = vst [vmem:[#allocation42_spill] sm:$0xff] %v8834_v14 }
  0xb4   : > { %6719 = vmatprep.subr.bf16.mxu1 %v7550_v29  ;;  %v295_v29 = vadd.s32 168, %v8070_v23 }
  0xb7   : > { %5731 = vmatmul.mubr.msk.bf16.gmra.mrb[20].mxu0 %vm8369_vm6, %v8309_v45  ;;  %v1236_v45 = vrot.slane %v8392_v33, 7  ;;  %vm11097_vm6 = vcmp.lt.s32.totalorder %v8070_v23, 1  ;;  %v11170_v33 = vrot.slane %v8519_v2, 1 }
  0xb8   : > { %2365 = vmatprep.mubr.bf16.mxu0 %v1196_v30  ;;  %vm11098_vm10 = vmmov %vm11097_vm6  ;;  %v292_v30 = vadd.s32 144, %v8070_v23 }
  0xb9   : > { %5797 = vmatmul.mubr.msk.bf16.gmra.mrb[20].mxu1 %vm8402_vm1, %v5796_v40  ;;  %v1270_v8 = vsel %vm11097_vm6, %v1236_v45, %v1237_v57  ;;  %v1271_v10 = vsel %vm11098_vm10, %v1235_v9, %v1236_v45  ;;  %vm704_vm1 = vcmp.gt.s32.totalorder %v408_v59, 0  ;;  %v8455_v9 = vld [vmem:[%s8060_s16 + $0xf0] sm:$0xff]  ;;  %v8489_v40 = vsel %vm11109_vm13, %v8451_v19, %v1239_v22  ;;  %v8584_v59 = vld [vmem:[%s8060_s16 + $0xc8] sm:$0xff] }
  0xba   : > { %5800 = vmatprep.mubr.msk.bf16.mxu1 %vm8413_vm0, %v8407_v52  ;;  %v8460_v21 = vpack.c.bf16 %v1270_v8, %v1271_v10  ;;  %vm8464_vm10 = vmpackc.low %vm11099_vm15, %vm704_vm1  ;;  %vm11107_vm1 = vcmp.lt.s32.totalorder %v8070_v23, 7  ;;  %v436_v8 = vand.u32 15, %v292_v30  ;;  %v457_v30 = vand.u32 15, %v295_v29 }
  0xbb   : > { %v11104_v26 = vsel %vm8464_vm10, 4294967295, %v11103_v26  ;;  %v1061_v35 = vsel %vm11107_vm1, %v1028_v17, %v1029_v62  ;;  %vm11108_vm6 = vmmov %vm11107_vm1 }
  0xbc   : > { %11105 = vst [vmem:[#allocation26_spill] sm:$0xff] %v11104_v26  ;;  %v1062_v39 = vsel %vm11108_vm6, %v8410_v53, %v1028_v17  ;;  %vm11111_vm6 = vmmov %vm11107_vm1  ;;  %v1240_v17 = vrot.slane %v8498_v49, 7  ;;  %v11141_v26 = vmov 0 }
  0xbd   : > { %v8510_v58 = vsel %vm11111_vm6, %v1044_v31, %v1013_v43  ;;  %v8525_v43 = vpack.c.bf16 %v1061_v35, %v1062_v39  ;;  %vm8556_vm6 = vcmp.lt.s32.totalorder %v429_v46, 15  ;;  %v450_v35 = vand.u32 15, %v294_v3  ;;  %v8572_v39 = vld [vmem:[%s8060_s16 + $0xc0] sm:$0xff] }
  0xbe   : > { %v8682_v46 = vld [vmem:[%s8060_s16 + $0xe0] sm:$0xff] }
  0xbf   : > { %5734 = vmatmul.mubr.msk.bf16.gmra.mrb[24].mxu0 %vm8413_vm0, %v8363_v16  ;;  %v8470_v16 = vrot.slane %v8455_v9, 1  ;;  %vm11110_vm0 = vmmov %vm11109_vm13  ;;  %vm8528_vm13 = vcmp.gt.s32.totalorder %v422_v28, 0  ;;  %v443_v28 = vand.u32 15, %v293_v44  ;;  %vm8627_vm2 = vcmp.gt.s32.totalorder %v450_v35, 0 }
  0xc0   : > { %2373 = vmatprep.mubr.bf16.mxu0 %v1197_v5  ;;  %v1269_v42 = vsel %vm11110_vm0, %v1237_v57, %v8451_v19  ;;  %v7551_v57 = vld [vmem:[#allocation6 + $0x1b8] sm:$0xff]   ;;  %vm8512_vm0 = vcmp.lt.s32.totalorder %v415_v27, 15  ;;  %v10839_v27 = vrot.slane %v8519_v2, 7  ;;  %v11137_v35 = vmov 0 }
  0xc1   : > { %11106 = vst [vmem:[#allocation27_spill] sm:$0xff] %v8470_v16  ;;  %5803 = vmatmul.mubr.msk.bf16.gmra.mrb[24].mxu1 %vm8444_vm4, %v5802_v20  ;;  %v8504_v45 = vsel %vm11107_vm1, %v8470_v16, %v1044_v31  ;;  %v8533_v10 = vpack.c.bf16 %v8489_v40, %v1269_v42  ;;  %v8541_v20 = vld [vmem:[%s8060_s16 + $0xb0] sm:$0xff]  ;;  %vm8552_vm1 = vmpackc.low %vm8512_vm0, %vm11099_vm15  ;;  %v8635_v31 = vld [vmem:[%s8060_s16 + $0xd8] sm:$0xff] }
  0xc2   : > { %5806 = vmatprep.mubr.msk.bf16.mxu1 %vm8464_vm10, %v8460_v21  ;;  %v11117_v25 = vsel %vm8552_vm1, 4294967295, %v11116_v25  ;;  %6720 = vmatpush3.bf16.msra.mxu1 %v7551_v57  ;;  %vm8565_vm0 = vmpackc.low %vm11099_vm15, %vm8528_vm13  ;;  %v8575_v42 = vld [vmem:[%s8060_s16 + $0x30] sm:$0xff]  ;;  %v1242_v44 = vrot.slane %v8541_v20, 7  ;;  %v296_v57 = vadd.s32 176, %v8070_v23  ;;  %vm11126_vm13 = vcmp.lt.s32.totalorder %v8070_v23, 7 }
  0xc3   : > { %11118 = vst [vmem:[#allocation28_spill] sm:$0xff] %v11117_v25  ;;  %v10844_v5 = vrot.slane %v8575_v42, 1  ;;  %v1059_v3 = vsel %vm11126_vm13, %v1030_v4, %v8536_v11  ;;  %vm11127_vm4 = vmmov %vm11126_vm13 }
  0xc7   : > { %5737 = vmatmul.mubr.msk.bf16.gmra.mrb[28].mxu0 %vm8464_vm10, %v8407_v52  ;;  %v11121_v52 = vmov 0  ;;  %vm8577_vm10 = vcmp.gt.s32.totalorder %v436_v8, 0  ;;  %v1060_v8 = vsel %vm11127_vm4, %v1029_v62, %v1030_v4  ;;  %v8613_v62 = vld [vmem:[%s8060_s16 + $0x40] sm:$0xff]  ;;  %v8617_v4 = vpack.c.bf16 %v8425_v60, %v8420_v36 }
  0xc8   : > { %2381 = vmatprep.mubr.bf16.mxu0 %v1198_v1  ;;  %v11122_v52 = vsel %vm8565_vm0, 4294967295, %v11121_v52  ;;  %v8587_v1 = vld [vmem:[%s8060_s16 + $0x38] sm:$0xff]  ;;  %vm11131_vm4 = vcmp.lt.s32.totalorder %v8070_v23, 1  ;;  %v8653_v55 = vpack.c.bf16 %v1059_v3, %v1060_v8  ;;  %v299_v3 = vadd.s32 200, %v8070_v23  ;;  %v8685_v8 = vld [vmem:[%s8060_s16 + $0xe8] sm:$0xff] }
  0xc9   : > { %11123 = vst [vmem:[#allocation29_spill] sm:$0xff] %v11122_v52  ;;  %5809 = vmatmul.mubr.msk.bf16.gmra.mrb[28].mxu1 %vm8552_vm1, %v8525_v43  ;;  %v1561_v50 = vrot.slane %v8587_v1, 1  ;;  %vm8605_vm1 = vcmp.lt.s32.totalorder %v443_v28, 15  ;;  %11130 = vst [vmem:[#allocation30_spill] sm:$0xff] %v8617_v4  ;;  %v1266_v28 = vsel %vm11131_vm4, %v1240_v17, %v10839_v27  ;;  %v464_v27 = vand.u32 15, %v296_v57 }
  0xca   : > { %5812 = vmatprep.mubr.msk.bf16.mxu1 %vm8565_vm0, %v8533_v10  ;;  %vm11132_vm13 = vmmov %vm11131_vm4  ;;  %11140 = vst [vmem:[#allocation33_spill] sm:$0xff] %v8653_v55  ;;  %v11155_v52 = vrot.slane %v8544_v38, 7  ;;  %v1466_v61 = vrot.slane %v8613_v62, 7 }
  0xcb   : > { %v1267_v29 = vsel %vm11132_vm13, %v1239_v22, %v1240_v17  ;;  %v8641_v36 = vsel %vm11135_vm3, %v10844_v5, %v1561_v50  ;;  %v10845_v17 = vrot.slane %v8613_v62, 1  ;;  %vm8649_vm4 = vmpackc.low %vm8556_vm6, %vm11099_vm15  ;;  %v471_v5 = vand.u32 15, %v297_v37 }
  0xcc   : > { %11136 = vst [vmem:[#allocation31_spill] sm:$0xff] %v8641_v36  ;;  %v11138_v35 = vsel %vm8649_vm4, 4294967295, %v11137_v35  ;;  %vm8662_vm3 = vmpackc.low %vm11099_vm15, %vm8577_vm10  ;;  %v8666_v7 = vpack.c.bf16 %v1266_v28, %v1267_v29  ;;  %vm8668_vm6 = vcmp.lt.s32.totalorder %v457_v30, 15  ;;  %v298_v37 = vadd.s32 192, %v8070_v23 }
  0xcd   : > { %11139 = vst [vmem:[#allocation32_spill] sm:$0xff] %v11138_v35  ;;  %v11142_v26 = vsel %vm8662_vm3, 4294967295, %v11141_v26  ;;  %vm11146_vm13 = vcmp.lt.s32.totalorder %v8070_v23, 7  ;;  %vm8689_vm10 = vcmp.gt.s32.totalorder %v464_v27, 0  ;;  %v300_v36 = vadd.s32 208, %v8070_v23 }
  0xce   : > { %11143 = vst [vmem:[#allocation34_spill] sm:$0xff] %v11142_v26  ;;  %v11151_v29 = vrot.slane %v8498_v49, 1  ;;  %v301_v27 = vadd.s32 216, %v8070_v23  ;;  %vm8728_vm12 = vcmp.lt.s32.totalorder %v471_v5, 15  ;;  %v11183_v26 = vrot.slane %v8572_v39, 7 }
  0xcf   : > { %5740 = vmatmul.mubr.msk.bf16.gmra.mrb[32].mxu0 %vm8565_vm0, %v8460_v21  ;;  %v8678_v21 = vsel %vm11146_vm13, %v1561_v50, %v10845_v17  ;;  %v11150_v17 = vrot.slane %v8425_v60, 1  ;;  %vm11153_vm0 = vmmov %vm11146_vm13  ;;  %v492_v5 = vand.u32 15, %v300_v36 }
  0xd0   : > { %11147 = vst [vmem:[#allocation35_spill] sm:$0xff] %v8678_v21  ;;  %2389 = vmatprep.mubr.bf16.mxu0 %v8617_v4  ;;  %v8717_v21 = vpack.c.bf16 %v8519_v2, %v8498_v49  ;;  %v11157_v4 = vrot.slane %v8519_v2, 7  ;;  %v499_v36 = vand.u32 15, %v301_v27  ;;  %v11173_v27 = vrot.slane %v8541_v20, 1 }
  0xd1   : > { %5815 = vmatmul.mubr.msk.bf16.gmra.mrb[32].mxu1 %vm8649_vm4, %v8653_v55  ;;  %v1058_v30 = vsel %vm11146_vm13, %v8536_v11, %v11150_v17  ;;  %v11152_v57 = vmov %v11150_v17  ;;  %v478_v17 = vand.u32 15, %v298_v37  ;;  %vm11156_vm13 = vcmp.lt.s32.totalorder %v8070_v23, 1 }
  0xd2   : > { %5818 = vmatprep.mubr.msk.bf16.mxu1 %vm8662_vm3, %v8666_v7  ;;  %v1057_v50 = vsel %vm11153_vm0, %v11152_v57, %v11151_v29  ;;  %11154 = vst [vmem:[#allocation36_spill] sm:$0xff] %v8717_v21  ;;  %v1264_v35 = vsel %vm11156_vm13, %v1242_v44, %v11155_v52  ;;  %vm11158_vm4 = vmmov %vm11156_vm13  ;;  %v485_v57 = vand.u32 15, %v299_v3  ;;  %v11161_v52 = vmov 0  ;;  %v8746_v3 = vld [vmem:[%s8060_s16 + $0xf8] sm:$0xff] }
  0xd3   : > { %v1265_v60 = vsel %vm11158_vm4, %v11157_v4, %v1242_v44  ;;  %vm8738_vm0 = vmpackc.low %vm8605_vm1, %vm11099_vm15  ;;  %v8742_v44 = vpack.c.bf16 %v1057_v50, %v1058_v30  ;;  %vm8760_vm1 = vcmp.gt.s32.totalorder %v478_v17, 0  ;;  %v8768_v4 = vld [vmem:[%s8060_s16 + $0x88] sm:$0xff]  ;;  %v11171_v37 = vrot.slane %v8498_v49, 1 }
  0xd4   : > { %v11162_v52 = vsel %vm8738_vm0, 4294967295, %v11161_v52  ;;  %vm8754_vm4 = vmpackc.low %vm11099_vm15, %vm8627_vm2  ;;  %v8758_v29 = vpack.c.bf16 %v1264_v35, %v1265_v60  ;;  %vm11172_vm2 = vcmp.lt.s32.totalorder %v8070_v23, 7  ;;  %v11174_v17 = vmov %v11170_v33 }
  0xd5   : > { %11163 = vst [vmem:[#allocation37_spill] sm:$0xff] %v11162_v52  ;;  %11164 = vst [vmem:[#allocation38_spill] sm:$0xff] %v8742_v44  ;;  %v11166_v63 = vsel %vm8754_vm4, 4294967295, %v11165_v63  ;;  %v1056_v35 = vsel %vm11172_vm2, %v11171_v37, %v11170_v33  ;;  %v11176_v49 = vmov 0  ;;  %v8794_v37 = vpack.c.bf16 %v8544_v38, %v8541_v20 }
  0xd6   : > { %11167 = vst [vmem:[#allocation39_spill] sm:$0xff] %v11166_v63  ;;  %vm11175_vm13 = vmmov %vm11172_vm2  ;;  %v8797_v33 = vrot.slane %v8455_v9, 7  ;;  %v11179_v2 = vmov 0  ;;  %v11182_v55 = vrot.slane %v8584_v59, 7  ;;  %v11185_v52 = vmov %v11183_v26 }
  0xd7   : > { %5743 = vmatmul.mubr.msk.bf16.gmra.mrb[36].mxu0 %vm8662_vm3, %v8533_v10  ;;  %v302_v10 = vadd.s32 224, %v8070_v23  ;;  %v1055_v60 = vsel %vm11175_vm13, %v11174_v17, %v11173_v27  ;;  %vm8788_vm3 = vmpackc.low %vm8668_vm6, %vm11099_vm15  ;;  %v303_v27 = vadd.s32 232, %v8070_v23  ;;  %v304_v17 = vadd.s32 240, %v8070_v23 }
  0xd8   : > { %2397 = vmatprep.mubr.bf16.mxu0 %v8717_v21  ;;  %v11177_v49 = vsel %vm8788_vm3, 4294967295, %v11176_v49  ;;  %vm8805_vm2 = vmpackc.low %vm11099_vm15, %vm8689_vm10  ;;  %vm11184_vm6 = vcmp.lt.s32.totalorder %v8070_v23, 1  ;;  %v11186_v21 = vrot.slane %v8544_v38, 7  ;;  %vm8825_vm13 = vcmp.lt.s32.totalorder %v485_v57, 15 }
  0xd9   : > { %5821 = vmatmul.mubr.msk.bf16.gmra.mrb[36].mxu1 %vm8738_vm0, %v8742_v44  ;;  %11178 = vst [vmem:[#allocation40_spill] sm:$0xff] %v11177_v49  ;;  %v11180_v2 = vsel %vm8805_vm2, 4294967295, %v11179_v2  ;;  %v1262_v28 = vsel %vm11184_vm6, %v11183_v26, %v11182_v55  ;;  %vm11187_vm10 = vmmov %vm11184_vm6  ;;  %vm8829_vm0 = vcmp.gt.s32.totalorder %v492_v5, 0  ;;  %v11193_v55 = vrot.slane %v8768_v4, 7 }
  0xda   : > { %5824 = vmatprep.mubr.msk.bf16.mxu1 %vm8754_vm4, %v8758_v29  ;;  %11181 = vst [vmem:[#allocation41_spill] sm:$0xff] %v11180_v2  ;;  %v1263_v22 = vsel %vm11187_vm10, %v11186_v21, %v11185_v52  ;;  %v8843_v15 = vpack.c.bf16 %v1055_v60, %v1056_v35  ;;  %vm8855_vm10 = vmpackc.low %vm8728_vm12, %vm11099_vm15  ;;  %v11194_v52 = vmov 0  ;;  %v513_v5 = vand.u32 15, %v303_v27 }
  0xdb   : > { %v8841_v26 = vsel %vm11184_vm6, %v11193_v55, %v8451_v19  ;;  %v8850_v57 = vpack.c.bf16 %v1262_v28, %v1263_v22  ;;  %v11195_v52 = vsel %vm8855_vm10, 4294967295, %v11194_v52  ;;  %v506_v19 = vand.u32 15, %v302_v10  ;;  %vm8866_vm6 = vmpackc.low %vm11099_vm15, %vm8760_vm1 }
  0xdc   : > { %11196 = vst [vmem:[#allocation43_spill] sm:$0xff] %v11195_v52  ;;  %v11197_v35 = vmov 0  ;;  %v520_v25 = vand.u32 15, %v304_v17  ;;  %v8871_v60 = vrot.slane %v8834_v14, 7  ;;  %v11200_v10 = vrot.slane %v8572_v39, 1 }
  0xdd   : > { %v11198_v35 = vsel %vm8866_vm6, 4294967295, %v11197_v35  ;;  %v11201_v22 = vrot.slane %v8544_v38, 1  ;;  %vm11202_vm12 = vcmp.lt.s32.totalorder %v8070_v23, 7  ;;  %v11204_v28 = vrot.slane %v8541_v20, 1 }
  0xde   : > { %11199 = vst [vmem:[#allocation44_spill] sm:$0xff] %v11198_v35  ;;  %vm11205_vm1 = vmmov %vm11202_vm12  ;;  %v8890_v55 = vpack.c.bf16 %v8584_v59, %v8572_v39  ;;  %v11206_v21 = vrot.slane %v8635_v31, 7  ;;  %v11207_v14 = vrot.slane %v8632_v12, 7  ;;  %v11210_v38 = vrot.slane %v8584_v59, 7 }
  0xdf   : > { %5746 = vmatmul.mubr.msk.bf16.gmra.mrb[40].mxu0 %vm8754_vm4, %v8666_v7  ;;  %v1053_v30 = vsel %vm11202_vm12, %v11201_v22, %v11200_v10  ;;  %v11203_v27 = vmov %v11201_v22  ;;  %vm11208_vm4 = vcmp.lt.s32.totalorder %v8070_v23, 1  ;;  %v11222_v44 = vrot.slane %v8632_v12, 1 }
  0xe0   : > { %2405 = vmatprep.mubr.bf16.mxu0 %v8794_v37  ;;  %v1054_v17 = vsel %vm11205_vm1, %v11204_v28, %v11203_v27  ;;  %v1260_v63 = vsel %vm11208_vm4, %v11207_v14, %v11206_v21  ;;  %v11209_v10 = vmov %v11207_v14  ;;  %vm11211_vm12 = vmmov %vm11208_vm4  ;;  %vm8910_vm1 = vcmp.gt.s32.totalorder %v506_v19, 0 }
  0xe1   : > { %5827 = vmatmul.mubr.msk.bf16.gmra.mrb[40].mxu1 %vm8788_vm3, %v8843_v15  ;;  %v1261_v20 = vsel %vm11211_vm12, %v11210_v38, %v11209_v10  ;;  %vm8904_vm3 = vcmp.lt.s32.totalorder %v499_v36, 15  ;;  %v8908_v27 = vpack.c.bf16 %v1053_v30, %v1054_v17  ;;  %vm8922_vm4 = vmpackc.low %vm8825_vm13, %vm11099_vm15  ;;  %v11216_v36 = vmov 0 }
  0xe2   : > { %5830 = vmatprep.mubr.msk.bf16.mxu1 %vm8805_vm2, %v8850_v57  ;;  %v8917_v14 = vpack.c.bf16 %v1260_v63, %v1261_v20  ;;  %v11217_v36 = vsel %vm8922_vm4, 4294967295, %v11216_v36  ;;  %vm8930_vm12 = vmpackc.low %vm11099_vm15, %vm8829_vm0  ;;  %v11219_v21 = vmov 0  ;;  %v11223_v63 = vrot.slane %v8584_v59, 1 }
  0xe3   : > { %11218 = vst [vmem:[#allocation45_spill] sm:$0xff] %v11217_v36  ;;  %v11220_v21 = vsel %vm8930_vm12, 4294967295, %v11219_v21  ;;  %vm11224_vm13 = vcmp.lt.s32.totalorder %v8070_v23, 7  ;;  %v11226_v30 = vrot.slane %v8572_v39, 1  ;;  %v8954_v10 = vpack.c.bf16 %v8635_v31, %v8632_v12 }
  0xe4   : > { %11221 = vst [vmem:[#allocation46_spill] sm:$0xff] %v11220_v21  ;;  %v1051_v50 = vsel %vm11224_vm13, %v11223_v63, %v11222_v44  ;;  %v11225_v19 = vmov %v11223_v63  ;;  %vm11227_vm0 = vmmov %vm11224_vm13  ;;  %v11228_v38 = vrot.slane %v8685_v8, 7  ;;  %v11229_v20 = vrot.slane %v8682_v46, 7  ;;  %v7633_v21 = vld [vmem:[%s8060_s16 + $0xf8] sm:$0xff] }
  0xe5   : > { %v1052_v17 = vsel %vm11227_vm0, %v11226_v30, %v11225_v19  ;;  %v11232_v59 = vrot.slane %v8635_v31, 7  ;;  %vm8978_vm0 = vmpackc.low %vm8904_vm3, %vm11099_vm15  ;;  %v11235_v30 = vmov 0  ;;  %v11243_v22 = vrot.slane %v8682_v46, 1 }
  0xe6   : > { %v11231_v44 = vmov %v11229_v20  ;;  %v8968_v63 = vpack.c.bf16 %v1051_v50, %v1052_v17  ;;  %v11236_v30 = vsel %vm8978_vm0, 4294967295, %v11235_v30  ;;  %v11238_v50 = vmov 0 }
  0xe7   : > { %5749 = vmatmul.mubr.msk.bf16.gmra.mrb[44].mxu0 %vm8805_vm2, %v8758_v29  ;;  %vm11230_vm2 = vcmp.lt.s32.totalorder %v8070_v23, 1  ;;  %11237 = vst [vmem:[#allocation48_spill] sm:$0xff] %v11236_v30  ;;  %v11244_v28 = vrot.slane %v8635_v31, 1  ;;  %vm11245_vm3 = vcmp.lt.s32.totalorder %v8070_v23, 7  ;;  %v11266_v30 = vrot.slane %v8107_v56, 7 }
  0xe8   : > { %2413 = vmatprep.mubr.bf16.mxu0 %v8890_v55  ;;  %v1258_v2 = vsel %vm11230_vm2, %v11229_v20, %v11228_v38  ;;  %vm11233_vm13 = vmmov %vm11230_vm2  ;;  %v11247_v20 = vrot.slane %v8632_v12, 1  ;;  %v11272_v56 = vmov 0  ;;  %v1571_v24 = vrot.slane %v8768_v4, 1 }
  0xe9   : > { %5833 = vmatmul.mubr.msk.bf16.gmra.mrb[44].mxu1 %vm8855_vm10, %v8908_v27  ;;  %v1259_v39 = vsel %vm11233_vm13, %v11232_v59, %v11231_v44  ;;  %vm8986_vm2 = vmpackc.low %vm11099_vm15, %vm8910_vm1  ;;  %vm8990_vm13 = vcmp.lt.s32.totalorder %v513_v5, 15  ;;  %v1049_v5 = vsel %vm11245_vm3, %v11244_v28, %v11243_v22  ;;  %v11246_v38 = vmov %v11244_v28 }
  0xea   : > { %5836 = vmatprep.mubr.msk.bf16.mxu1 %vm8866_vm6, %v8917_v14  ;;  %v8973_v19 = vpack.c.bf16 %v1258_v2, %v1259_v39  ;;  %v11239_v50 = vsel %vm8986_vm2, 4294967295, %v11238_v50  ;;  %v305_v2 = vadd.s32 248, %v8070_v23  ;;  %vm11248_vm1 = vmmov %vm11245_vm3  ;;  %v9015_v59 = vpack.c.bf16 %v8685_v8, %v8682_v46 }
  0xeb   : > { %11240 = vst [vmem:[#allocation49_spill] sm:$0xff] %v11239_v50  ;;  %v1050_v44 = vsel %vm11248_vm1, %v11247_v20, %v11246_v38  ;;  %v11250_v39 = vrot.slane %v8746_v3, 7  ;;  %v11252_v22 = vrot.slane %v8685_v8, 7  ;;  %vm9035_vm1 = vcmp.gt.s32.totalorder %v520_v25, 0  ;;  %v9050_v20 = vld [vmem:[%s8060_s16 + $0x10] sm:$0xff] }
  0xec   : > { %11234 = vst [vmem:[#allocation47_spill] sm:$0xff] %v8973_v19  ;;  %11249 = vst [vmem:[#allocation50_spill] sm:$0xff] %v9015_v59  ;;  %v9027_v31 = vpack.c.bf16 %v1049_v5, %v1050_v44  ;;  %v11257_v5 = vmov 0  ;;  %v11261_v44 = vrot.slane %v8685_v8, 1  ;;  %v1205_v25 = vpack.c.bf16 %v7633_v21, %v8455_v9  ;;  %v9093_v9 = vld [vmem:[%s8060_s16 + $0x20] sm:$0xff] }
  0xed   : > { %11260 = vst [vmem:[#allocation53_spill] sm:$0xff] %v9050_v20  ;;  %v1320_v21 = vrot.slane %v9093_v9, 1  ;;  %v11280_v50 = vrot.slane %v9050_v20, 1 }
  0xef   : > { %5752 = vmatmul.mubr.msk.bf16.gmra.mrb[48].mxu0 %vm8866_vm6, %v8850_v57  ;;  %vm11251_vm6 = vcmp.lt.s32.totalorder %v8070_v23, 1 }
  0xf0   : > { %2421 = vmatprep.mubr.bf16.mxu0 %v8954_v10  ;;  %v1256_v35 = vsel %vm11251_vm6, %v8797_v33, %v11250_v39  ;;  %vm11253_vm3 = vmmov %vm11251_vm6  ;;  %v11263_v39 = vmov %v11261_v44 }
  0xf1   : > { %5839 = vmatmul.mubr.msk.bf16.gmra.mrb[48].mxu1 %vm8922_vm4, %v8968_v63  ;;  %v1257_v12 = vsel %vm11253_vm3, %v11252_v22, %v8797_v33  ;;  %vm9045_vm6 = vmpackc.low %vm8990_vm13, %vm11099_vm15  ;;  %vm11262_vm3 = vcmp.lt.s32.totalorder %v8070_v23, 7  ;;  %v11264_v22 = vrot.slane %v8682_v46, 1  ;;  %v7634_v46 = vld [vmem:[%s8060_s16 + $0x18] sm:$0xff] }
  0xf2   : > { %5842 = vmatprep.mubr.msk.bf16.mxu1 %vm8930_vm12, %v8973_v19  ;;  %v9032_v28 = vpack.c.bf16 %v1256_v35, %v1257_v12  ;;  %v11258_v5 = vsel %vm9045_vm6, 4294967295, %v11257_v5  ;;  %v527_v35 = vand.u32 15, %v305_v2  ;;  %v1047_v17 = vsel %vm11262_vm3, %v11261_v44, %v8470_v16  ;;  %vm11265_vm13 = vmmov %vm11262_vm3 }
  0xf3   : > { %11259 = vst [vmem:[#allocation52_spill] sm:$0xff] %v11258_v5  ;;  %v1048_v2 = vsel %vm11265_vm13, %v11264_v22, %v11263_v39  ;;  %v1319_v44 = vrot.slane %v7634_v46, 1  ;;  %v9083_v39 = vld [vmem:[%s8060_s16 + $0x108] sm:$0xff]  ;;  %vm9088_vm13 = vmpackc.low %vm11099_vm15, %vm9035_vm1  ;;  %v11277_v16 = vrot.slane %v8092_v48, 7  ;;  %v11289_v5 = vpack.c.bf16 %v8510_v58, %v8504_v45 }
  0xf4   : > { %11254 = vst [vmem:[#allocation51_spill] sm:$0xff] %v9032_v28  ;;  %11271 = vst [vmem:[#allocation55_spill] sm:$0xff] %v9083_v39  ;;  %v11273_v56 = vsel %vm9088_vm13, 4294967295, %v11272_v56  ;;  %v5610_v48 = vld [vmem:[%s8060_s16 + $0x28] sm:$0xff] }
  0xf5   : > { %11274 = vst [vmem:[#allocation56_spill] sm:$0xff] %v11273_v56 }
  0xf7   : > { %5755 = vmatmul.mubr.msk.bf16.gmra.mrb[52].mxu0 %vm8930_vm12, %v8917_v14  ;;  %vm11267_vm12 = vcmp.lt.s32.totalorder %v8070_v23, 1 }
  0xf8   : > { %2429 = vmatprep.mubr.bf16.mxu0 %v9015_v59  ;;  %v11268_v59 = vrot.slane %v8746_v3, 7  ;;  %vm11269_vm3 = vmmov %vm11267_vm12 }
  0xf9   : > { %5845 = vmatmul.mubr.msk.bf16.gmra.mrb[52].mxu1 %vm8978_vm0, %v9027_v31  ;;  %vm11278_vm1 = vmmov %vm11269_vm3 }
  0xfa   : > { %5848 = vmatprep.mubr.msk.bf16.mxu1 %vm8986_vm2, %v9032_v28  ;;  %v1254_v28 = vsel %vm11267_vm12, %v8871_v60, %v11266_v30  ;;  %v9079_v8 = vsel %vm11269_vm3, %v11268_v59, %v8871_v60  ;;  %v10909_v30 = vrot.slane %v9083_v39, 7  ;;  %v9097_v59 = vpack.c.bf16 %v1047_v17, %v1048_v2  ;;  %vm11275_vm12 = vmmov %vm11269_vm3 }
  0xfb   : > { %11270 = vst [vmem:[#allocation54_spill] sm:$0xff] %v9079_v8  ;;  %v5853_v38 = vpack.c.bf16 %v1254_v28, %v9079_v8  ;;  %v885_v17 = vsel %vm11278_vm1, %v8797_v33, %v11277_v16  ;;  %vm11279_vm3 = vcmp.lt.s32.totalorder %v8070_v23, 7  ;;  %v9137_v8 = vld [vmem:[%s8060_s16 + $0x28] sm:$0xff]  ;;  %v1467_v39 = vrot.slane %v9199_v13, 7 }
  0xfc   : > { %v9108_v22 = vsel %vm11275_vm12, %v8871_v60, %v10909_v30  ;;  %v1379_v28 = vsel %vm11279_vm3, %v1319_v44, %v1320_v21  ;;  %v9124_v30 = vld [vmem:[%s8060_s16 + $0x20] sm:$0xff]  ;;  %v5760_v16 = vpack.c.bf16 %v885_v17, %v1257_v12  ;;  %vm753_vm12 = vcmp.lt.s32.totalorder %v527_v35, 15  ;;  %vm11287_vm1 = vmmov %vm11279_vm3 }
  0xfd   : > { %11276 = vst [vmem:[#allocation57_spill] sm:$0xff] %v9108_v22  ;;  %11282 = vst [vmem:[#allocation58_spill] sm:$0xff] %v9124_v30  ;;  %v1462_v2 = vrot.slane %v9124_v30, 7  ;;  %v11284_v12 = vmov 0  ;;  %v1463_v35 = vrot.slane %v5610_v48, 7  ;;  %v1670_v17 = vpack.c.bf16 %v5610_v48, %v9124_v30 }
  0xfe   : > { %v11295_v58 = vrot.slane %v9124_v30, 1  ;;  %v1464_v30 = vrot.slane %v8575_v42, 7 }
  0xff   : > { %5758 = vmatmul.mubr.msk.bf16.gmra.mrb[56].mxu0 %vm8986_vm2, %v8973_v19  ;;  %vm11281_vm2 = vmmov %vm11279_vm3  ;;  %vm11290_vm3 = vcmp.lt.s32.totalorder %v8070_v23, 1 }
 0x100   : > { %2437 = vmatprep.mubr.bf16.mxu0 %v1205_v25  ;;  %v1380_v60 = vsel %vm11281_vm2, %v11280_v50, %v1319_v44  ;;  %v9131_v25 = vld [vmem:[%s8060_s16 + $0x118] sm:$0xff]  ;;  %v1321_v50 = vrot.slane %v9137_v8, 1  ;;  %v9141_v44 = vld [vmem:[%s8060_s16 + $0x30] sm:$0xff]  ;;  %vm9147_vm2 = vmpackc.low %vm753_vm12, %vm11099_vm15 }
 0x101   : > { %5851 = vmatmul.mubr.msk.bf16.gmra.mrb[56].mxu1 %vm9045_vm6, %v9097_v59  ;;  %11283 = vst [vmem:[#allocation59_spill] sm:$0xff] %v9131_v25  ;;  %v5859_v33 = vpack.c.bf16 %v1379_v28, %v1380_v60  ;;  %v1322_v22 = vrot.slane %v9141_v44, 1  ;;  %v11285_v12 = vsel %vm9147_vm2, 4294967295, %v11284_v12  ;;  %v1559_v60 = vrot.slane %v5610_v48, 1  ;;  %vm11288_vm15 = vmmov %vm11287_vm1 }
 0x102   : > { %5854 = vmatprep.mubr.msk.bf16.mxu1 %vm9088_vm13, %v5853_v38  ;;  %11286 = vst [vmem:[#allocation60_spill] sm:$0xff] %v11285_v12  ;;  %v1378_v56 = vsel %vm11288_vm15, %v1320_v21, %v1321_v50  ;;  %v1430_v38 = vpack.c.bf16 %v7634_v46, %v9050_v20  ;;  %v11291_v28 = vrot.slane %v9131_v25, 7  ;;  %vm11292_vm12 = vmmov %vm11290_vm3  ;;  %v9185_v46 = vld [vmem:[%s8060_s16 + $0x38] sm:$0xff]  ;;  %v9202_v12 = vld [vmem:[%s8060_s16 + $0x50] sm:$0xff] }
 0x103   : > { %vm11296_vm15 = vmmov %vm11287_vm1  ;;  %v9230_v25 = vld [vmem:[%s8060_s16 + $0x48] sm:$0xff] }
 0x104   : > { %v1525_v48 = vsel %vm11292_vm12, %v11291_v28, %v1462_v2  ;;  %v7553_v28 = vld [vmem:[#allocation6 + $0x208] sm:$0xff]   ;;  %vm11299_vm12 = vmmov %vm11287_vm1  ;;  %v1325_v20 = vrot.slane %v9230_v25, 1 }
 0x107   : > { %5761 = vmatmul.mubr.msk.bf16.gmra.mrb[60].mxu0 %vm9088_vm13, %v5760_v16  ;;  %v1377_v16 = vsel %vm11287_vm1, %v1321_v50, %v1322_v22  ;;  %v11293_v50 = vrot.slane %v8575_v42, 1 }
 0x108   : > { %5860 = vmatprep.mubr.msk.bf16.mxu0 %vm8150_vm7, %v5859_v33  ;;  %v1524_v33 = vsel %vm11290_vm3, %v1462_v2, %v1463_v35  ;;  %v5862_v21 = vpack.c.bf16 %v1377_v16, %v1378_v56  ;;  %v1323_v2 = vrot.slane %v9185_v46, 1  ;;  %v1563_v16 = vrot.slane %v9199_v13, 1  ;;  %vm11298_vm3 = vmmov %vm11287_vm1 }
 0x109   : > { %5857 = vmatmul.mubr.msk.bf16.gmra.mrb[60].mxu1 %vm9147_vm2, %v11289_v5  ;;  %v9176_v45 = vsel %vm11287_vm1, %v1559_v60, %v11293_v50  ;;  %v9182_v5 = vsel %vm11296_vm15, %v11295_v58, %v1559_v60  ;;  %v5907_v50 = vpack.c.bf16 %v1524_v33, %v1525_v48  ;;  %v1465_v60 = vrot.slane %v8587_v1, 7  ;;  %v9209_v33 = vld [vmem:[%s8060_s16 + $0x58] sm:$0xff]  ;;  %v9213_v48 = vld [vmem:[%s8060_s16 + $0x60] sm:$0xff] }
 0x10a   : > { %2800 = vmatprep.mubr.bf16.mxu1 %v1670_v17  ;;  %11294 = vst [vmem:[#allocation61_spill] sm:$0xff] %v9176_v45  ;;  %11297 = vst [vmem:[#allocation62_spill] sm:$0xff] %v9182_v5  ;;  %v9189_v17 = vld [vmem:[%s8060_s16 + $0x40] sm:$0xff]  ;;  %v1671_v58 = vpack.c.bf16 %v8587_v1, %v8575_v42  ;;  %v1376_v1 = vsel %vm11299_vm12, %v1322_v22, %v1323_v2  ;;  %v1566_v47 = vrot.slane %v9213_v48, 1  ;;  %vm11300_vm1 = vcmp.lt.s32.totalorder %v8070_v23, 1 }
 0x10b   : > { %v1324_v56 = vrot.slane %v9189_v17, 1  ;;  %v1431_v5 = vpack.c.bf16 %v9137_v8, %v9093_v9  ;;  %v1522_v45 = vsel %vm11300_vm1, %v1464_v30, %v1465_v60  ;;  %vm11301_vm15 = vmmov %vm11300_vm1  ;;  %v11303_v8 = vrot.slane %v8613_v62, 1 }
 0x10c   : > { %v1523_v22 = vsel %vm11301_vm15, %v1463_v35, %v1464_v30  ;;  %vm11304_vm12 = vmmov %vm11298_vm3  ;;  %v7555_v35 = vld [vmem:[#allocation6 + $0x218] sm:$0xff]  }
 0x10d   : > { %v1375_v42 = vsel %vm11298_vm3, %v1323_v2, %v1324_v56  ;;  %v9241_v9 = vsel %vm11304_vm12, %v11303_v8, %v1563_v16  ;;  %vm11306_vm1 = vmmov %vm11298_vm3  ;;  %v1432_v8 = vpack.c.bf16 %v9185_v46, %v9141_v44  ;;  %v9303_v44 = vld [vmem:[%s8060_s16 + $0x60] sm:$0xff] }
 0x10e   : > { %v5865_v2 = vpack.c.bf16 %v1375_v42, %v1376_v1  ;;  %11305 = vst [vmem:[#allocation64_spill] sm:$0xff] %v9241_v9  ;;  %vm11308_vm15 = vmmov %vm11306_vm1  ;;  %v9264_v9 = vld [vmem:[%s8060_s16 + $0x68] sm:$0xff]  ;;  %v1328_v46 = vrot.slane %v9303_v44, 1 }
 0x10f   : > { %2640 = vmatmul.mubr.bf16.vlgmr.msra.gmra.mrb[64].mxu0 %v1430_v38  ;;  %v1564_v38 = vrot.slane %v9202_v12, 1  ;;  %vm11311_vm12 = vmmov %vm11306_vm1 }
 0x110   : > { %7314 = vmatpush3.bf16.msra.mxu0 %v8473_v32  ;;  %5863 = vmatprep.mubr.msk.bf16.mxu0 %vm8211_vm11, %v5862_v21  ;;  %v1565_v32 = vrot.slane %v9209_v33, 1  ;;  %v7554_v21 = vld [vmem:[#allocation6 + $0x210] sm:$0xff]  }
 0x111   : > { %7315 = vmatprep.subr.bf16.mxu0 %v7553_v28  ;;  %5908 = vmatmul.mubr.msk.bf16.vlgmr.msra.gmra.mrb[64].mxu1 %vm8120_vm5, %v5907_v50  ;;  %v9235_v50 = vsel %vm11298_vm3, %v1563_v16, %v1564_v38  ;;  %v5910_v16 = vpack.c.bf16 %v1522_v45, %v1523_v22  ;;  %v1567_v45 = vrot.slane %v9264_v9, 1  ;;  %vm11310_vm3 = vmmov %vm11306_vm1 }
 0x112   : > { %2808 = vmatprep.mubr.bf16.mxu1 %v1671_v58  ;;  %11302 = vst [vmem:[#allocation63_spill] sm:$0xff] %v9235_v50  ;;  %v9244_v58 = vld [vmem:[%s8060_s16 + $0x50] sm:$0xff]  ;;  %v9251_v42 = vsel %vm11306_vm1, %v1565_v32, %v1566_v47  ;;  %v9255_v1 = vsel %vm11308_vm15, %v1564_v38, %v1565_v32  ;;  %v9273_v38 = vld [vmem:[%s8060_s16 + $0x78] sm:$0xff]  ;;  %v9277_v32 = vld [vmem:[%s8060_s16 + $0x80] sm:$0xff]  ;;  %vm11312_vm1 = vcmp.lt.s32.totalorder %v8070_v23, 1 }
 0x113   : > { %v1326_v30 = vrot.slane %v9244_v58, 1  ;;  %11307 = vst [vmem:[#allocation65_spill] sm:$0xff] %v9251_v42  ;;  %11309 = vst [vmem:[#allocation66_spill] sm:$0xff] %v9255_v1  ;;  %v9267_v50 = vld [vmem:[%s8060_s16 + $0x70] sm:$0xff]  ;;  %v1569_v22 = vrot.slane %v9273_v38, 1  ;;  %v1520_v1 = vsel %vm11312_vm1, %v1466_v61, %v1467_v39  ;;  %v7642_v42 = vld [vmem:[%s8060_s16 + $0x58] sm:$0xff] }
 0x114   : > { %7316 = vmatpush3.bf16.msra.mxu0 %v7553_v28  ;;  %v1672_v28 = vpack.c.bf16 %v9199_v13, %v8613_v62  ;;  %v1374_v62 = vsel %vm11311_vm12, %v1324_v56, %v1325_v20  ;;  %vm11313_vm15 = vmmov %vm11312_vm1  ;;  %v1327_v0 = vrot.slane %v7642_v42, 1 }
 0x115   : > { %7317 = vmatprep.subr.bf16.mxu0 %v7554_v21  ;;  %v1373_v13 = vsel %vm11310_vm3, %v1325_v20, %v1326_v30  ;;  %v1521_v20 = vsel %vm11313_vm15, %v1465_v60, %v1466_v61  ;;  %vm11314_vm12 = vmmov %vm11310_vm3  ;;  %v1673_v61 = vpack.c.bf16 %v9209_v33, %v9202_v12 }
 0x116   : > { %v5868_v56 = vpack.c.bf16 %v1373_v13, %v1374_v62  ;;  %vm11315_vm1 = vmmov %vm11310_vm3  ;;  %v5913_v13 = vpack.c.bf16 %v1520_v1, %v1521_v20  ;;  %v1469_v62 = vrot.slane %v9209_v33, 7  ;;  %v7644_v20 = vld [vmem:[%s8060_s16 + $0x68] sm:$0xff] }
 0x117   : > { %2648 = vmatmul.mubr.bf16.gmra.mrb[68].mxu0 %v1431_v5  ;;  %v1568_v5 = vrot.slane %v9267_v50, 1  ;;  %vm11316_vm15 = vmmov %vm11315_vm1 }
 0x118   : > { %5866 = vmatprep.mubr.msk.bf16.mxu0 %vm8236_vm14, %v5865_v2  ;;  %7318 = vmatpush3.bf16.msra.mxu0 %v7554_v21  ;;  %v1570_v2 = vrot.slane %v9277_v32, 1  ;;  %v7556_v21 = vld [vmem:[#allocation6 + $0x220] sm:$0xff]  }
 0x119   : > { %7319 = vmatprep.subr.bf16.mxu0 %v7555_v35  ;;  %5911 = vmatmul.mubr.msk.bf16.gmra.mrb[68].mxu1 %vm8172_vm8, %v5910_v16  ;;  %v9296_v19 = vsel %vm11310_vm3, %v1567_v45, %v1568_v5  ;;  %v9300_v16 = vsel %vm11314_vm12, %v1566_v47, %v1567_v45  ;;  %v1468_v45 = vrot.slane %v9202_v12, 7  ;;  %vm11317_vm3 = vmmov %vm11315_vm1  ;;  %v1433_v12 = vpack.c.bf16 %v9230_v25, %v9189_v17  ;;  %v7559_v17 = vld [vmem:[#allocation6 + $0x238] sm:$0xff]  }
 0x11a   : > { %2816 = vmatprep.mubr.bf16.mxu1 %v1672_v28  ;;  %v7557_v28 = vld [vmem:[#allocation6 + $0x228] sm:$0xff]   ;;  %v9310_v60 = vsel %vm11315_vm1, %v1569_v22, %v1570_v2  ;;  %v1371_v1 = vsel %vm11317_vm3, %v1327_v0, %v1328_v46  ;;  %vm11318_vm12 = vmmov %vm11315_vm1  ;;  %vm11319_vm1 = vnez %v11062_v54  ;;  %v1329_v25 = vrot.slane %v7644_v20, 1 }
 0x11c   : > { %7320 = vmatpush3.bf16.msra.mxu0 %v7555_v35  ;;  %v9314_v35 = vsel %vm11316_vm15, %v1568_v5, %v1569_v22  ;;  %v7558_v5 = vld [vmem:[#allocation6 + $0x230] sm:$0xff]   ;;  %vm11320_vm15 = vcmp.lt.s32.totalorder %v8070_v23, 1 }
 0x11d   : > { %7321 = vmatprep.subr.bf16.mxu0 %v7556_v21  ;;  %v1518_v33 = vsel %vm11320_vm15, %v1468_v45, %v1469_v62  ;;  %vm11321_vm8 = vmmov %vm11320_vm15 }
 0x11e   : > { %v1519_v22 = vsel %vm11321_vm8, %v1467_v39, %v1468_v45  ;;  %v1470_v39 = vrot.slane %v9213_v48, 7  ;;  %vm11323_vm8 = vnez %v11084_v6  ;;  %vm11324_vm15 = vmmov %vm11317_vm3 }
 0x11f   : > { %2656 = vmatmul.mubr.bf16.gmra.mrb[72].mxu0 %v1432_v8  ;;  %v1372_v8 = vsel %vm11318_vm12, %v1326_v30, %v1327_v0  ;;  %v9340_v0 = vsel %vm11317_vm3, %v1571_v24, %v8536_v11  ;;  %vm11322_vm12 = vmmov %vm11317_vm3  ;;  %v1674_v11 = vpack.c.bf16 %v9264_v9, %v9213_v48 }
 0x120   : > { %5869 = vmatprep.mubr.msk.bf16.mxu0 %vm8304_vm9, %v5868_v56  ;;  %7322 = vmatpush3.bf16.msra.mxu0 %v7556_v21  ;;  %v5871_v21 = vpack.c.bf16 %v1371_v1, %v1372_v8  ;;  %v9344_v30 = vsel %vm11322_vm12, %v1570_v2, %v1571_v24  ;;  %v1369_v24 = vsel %vm11324_vm15, %v1329_v25, %v8410_v53  ;;  %v1472_v53 = vrot.slane %v9267_v50, 7 }
 0x121   : > { %7323 = vmatprep.subr.bf16.mxu0 %v7557_v28  ;;  %5914 = vmatmul.mubr.msk.bf16.gmra.mrb[72].mxu1 %vm11319_vm1, %v5913_v13  ;;  %v1370_v2 = vsel %vm11317_vm3, %v1328_v46, %v1329_v25  ;;  %vm11325_vm12 = vnez %v11070_v18  ;;  %v1434_v13 = vpack.c.bf16 %v7642_v42, %v9244_v58  ;;  %vm11326_vm1 = vcmp.lt.s32.totalorder %v8070_v23, 1  ;;  %v11390_v18 = vld [vmem:[#allocation62_spill] sm:$0xff] }
 0x122   : > { %2824 = vmatprep.mubr.bf16.mxu1 %v1673_v61  ;;  %v5916_v61 = vpack.c.bf16 %v1518_v33, %v1519_v22  ;;  %vm11327_vm5 = vmmov %vm11326_vm1  ;;  %v5874_v45 = vpack.c.bf16 %v1369_v24, %v1370_v2  ;;  %v1473_v46 = vrot.slane %v9273_v38, 7  ;;  %v1675_v58 = vpack.c.bf16 %v9273_v38, %v9267_v50  ;;  %v7645_v33 = vld [vmem:[%s8060_s16 + $0x70] sm:$0xff]  ;;  %v7646_v22 = vld [vmem:[%s8060_s16 + $0x78] sm:$0xff] }
 0x123   : > { %vm11328_vm15 = vnez %v11090_v34  ;;  %v1435_v42 = vpack.c.bf16 %v7644_v20, %v9303_v44  ;;  %vm11330_vm3 = vmmov %vm11327_vm5  ;;  %v1474_v50 = vrot.slane %v9277_v32, 7  ;;  %v1676_v38 = vpack.c.bf16 %v8768_v4, %v9277_v32  ;;  %v11333_v44 = vld [vmem:[#allocation22_spill] sm:$0xff] }
 0x124   : > { %7324 = vmatpush3.bf16.msra.mxu0 %v7557_v28  ;;  %v1471_v28 = vrot.slane %v9264_v9, 7  ;;  %v1517_v9 = vsel %vm11327_vm5, %v1469_v62, %v1470_v39  ;;  %v1514_v62 = vsel %vm11327_vm5, %v1472_v53, %v1473_v46  ;;  %v11335_v20 = vrot.slane %v8768_v4, 7  ;;  %vm11336_vm5 = vmmov %vm11330_vm3  ;;  %v11342_v2 = vld [vmem:[#allocation30_spill] sm:$0xff] }
 0x125   : > { %7325 = vmatprep.subr.bf16.mxu0 %v7558_v5  ;;  %v11343_v4 = vld [vmem:[#allocation38_spill] sm:$0xff] }
 0x126   : > { %v1516_v48 = vsel %vm11326_vm1, %v1470_v39, %v1471_v28  ;;  %vm11329_vm1 = vnez %v11077_v51  ;;  %v1515_v8 = vsel %vm11330_vm3, %v1471_v28, %v1472_v53  ;;  %v1512_v25 = vsel %vm11336_vm5, %v1474_v50, %v11335_v20  ;;  %v11338_v39 = vld [vmem:[#allocation28_spill] sm:$0xff]  ;;  %v7647_v28 = vld [vmem:[%s8060_s16 + $0x80] sm:$0xff] }
 0x127   : > { %2664 = vmatmul.mubr.bf16.gmra.mrb[76].mxu0 %v1433_v12  ;;  %v5919_v1 = vpack.c.bf16 %v1516_v48, %v1517_v9  ;;  %v11331_v12 = vld [vmem:[#allocation25_spill] sm:$0xff]  ;;  %v11346_v48 = vpack.c.bf16 %v8489_v40, %v8841_v26  ;;  %v11347_v9 = vld [vmem:[#allocation26_spill] sm:$0xff] }
 0x128   : > { %5872 = vmatprep.mubr.msk.bf16.mxu0 %vm11323_vm8, %v5871_v21  ;;  %7326 = vmatpush3.bf16.msra.mxu0 %v7558_v5  ;;  %v5922_v5 = vpack.c.bf16 %v1514_v62, %v1515_v8  ;;  %v1436_v21 = vpack.c.bf16 %v7646_v22, %v7645_v33  ;;  %v11352_v53 = vld [vmem:[#allocation29_spill] sm:$0xff]  ;;  %v11355_v40 = vld [vmem:[#allocation34_spill] sm:$0xff] }
 0x129   : > { %7327 = vmatprep.subr.bf16.mxu0 %v7559_v17  ;;  %5917 = vmatmul.mubr.msk.bf16.gmra.mrb[76].mxu1 %vm11325_vm12, %v5916_v61  ;;  %vm11334_vm12 = vnez %v11333_v44  ;;  %v11337_v61 = vld [vmem:[#allocation33_spill] sm:$0xff] }
 0x12a   : > { %2832 = vmatprep.mubr.bf16.mxu1 %v1674_v11  ;;  %v7648_v11 = vld [vmem:[%s8060_s16 + $0x88] sm:$0xff]  ;;  %v11389_v51 = vld [vmem:[#allocation61_spill] sm:$0xff] }
 0x12b   : > { %v1437_v24 = vpack.c.bf16 %v7648_v11, %v7647_v28 }
 0x12c   : > { %7328 = vmatpush3.bf16.msra.mxu0 %v7559_v17  ;;  %v1513_v17 = vsel %vm11330_vm3, %v1473_v46, %v1474_v50  ;;  %vm11348_vm3 = vnez %v11347_v9  ;;  %v9439_v46 = vld [vmem:[%s10808_s2] ss:$0 sm:$0xff] }
 0x12d   : > { %v5925_v32 = vpack.c.bf16 %v1512_v25, %v1513_v17  ;;  %v11359_v25 = vld [vmem:[#allocation41_spill] sm:$0xff] }
 0x12f   : > { %2672 = vmatmul.mubr.bf16.gmra.mrb[80].mxu0 %v1434_v13  ;;  %v11344_v13 = vld [vmem:[#allocation32_spill] sm:$0xff] }
 0x130   : > { %5875 = vmatprep.mubr.msk.bf16.mxu0 %vm11328_vm15, %v5874_v45  ;;  %vm11345_vm5 = vnez %v11344_v13  ;;  %v11349_v45 = vld [vmem:[#allocation36_spill] sm:$0xff] }
 0x131   : > { %5920 = vmatmul.mubr.msk.bf16.gmra.mrb[80].mxu1 %vm11329_vm1, %v5919_v1  ;;  %vm11332_vm1 = vnez %v11331_v12  ;;  %v11350_v1 = vld [vmem:[#allocation37_spill] sm:$0xff] }
 0x132   : > { %2840 = vmatprep.mubr.bf16.mxu1 %v1675_v58 }
 0x137   : > { %2680 = vmatmul.mubr.bf16.gmra.mrb[84].mxu0 %v1435_v42 }
 0x138   : > { %5878 = vmatprep.mubr.msk.bf16.mxu0 %vm11332_vm1, %v8525_v43  ;;  %vm11339_vm1 = vnez %v11338_v39  ;;  %v11340_v43 = vld [vmem:[#allocation24_spill] sm:$0xff] }
 0x139   : > { %5923 = vmatmul.mubr.msk.bf16.gmra.mrb[84].mxu1 %vm11334_vm12, %v5922_v5  ;;  %vm11341_vm12 = vnez %v11340_v43 }
 0x13a   : > { %2848 = vmatprep.mubr.bf16.mxu1 %v1676_v38 }
 0x13f   : > { %2688 = vmatmul.mubr.bf16.gmra.mrb[88].mxu0 %v1436_v21 }
 0x140   : > { %5881 = vmatprep.mubr.msk.bf16.mxu0 %vm11339_vm1, %v11337_v61  ;;  %vm11353_vm1 = vnez %v11352_v53  ;;  %v11361_v61 = vld [vmem:[#allocation50_spill] sm:$0xff] }
 0x141   : > { %5926 = vmatmul.mubr.msk.bf16.gmra.mrb[88].mxu1 %vm11341_vm12, %v5925_v32  ;;  %vm11351_vm12 = vnez %v11350_v1 }
 0x142   : > { %2856 = vmatprep.mubr.bf16.mxu1 %v11342_v2 }
 0x147   : > { %2696 = vmatmul.mubr.bf16.gmra.mrb[92].mxu0 %v1437_v24 }
 0x148   : > { %5884 = vmatprep.mubr.msk.bf16.mxu0 %vm11345_vm5, %v11343_v4  ;;  %vm11354_vm5 = vnez %v11177_v49 }
 0x149   : > { %5929 = vmatmul.mubr.msk.bf16.gmra.mrb[92].mxu1 %vm11348_vm3, %v11346_v48  ;;  %vm11356_vm3 = vnez %v11355_v40  ;;  %v1585_v48 = vrot.slane %v8746_v3, 1 }
 0x14a   : > { %2864 = vmatprep.mubr.bf16.mxu1 %v11349_v45 }
 0x14f   : > { %2704 = vmatmul.mubr.bf16.gmra.mrb[96].mxu0 %v11342_v2 }
 0x150   : > { %5887 = vmatprep.mubr.msk.bf16.mxu0 %vm11351_vm12, %v8843_v15 }
 0x151   : > { %5932 = vmatmul.mubr.msk.bf16.gmra.mrb[96].mxu1 %vm11353_vm1, %v8666_v7  ;;  %v11357_v7 = vld [vmem:[#allocation39_spill] sm:$0xff] }
 0x152   : > { %2872 = vmatprep.mubr.bf16.mxu1 %v8794_v37  ;;  %vm11358_vm1 = vnez %v11357_v7  ;;  %v9507_v7 = vld [vmem:[%s8060_s16 + $0x110] sm:$0xff] }
 0x157   : > { %2712 = vmatmul.mubr.bf16.gmra.mrb[100].mxu0 %v11349_v45  ;;  %v11362_v45 = vld [vmem:[#allocation42_spill] sm:$0xff] }
 0x158   : > { %5890 = vmatprep.mubr.msk.bf16.mxu0 %vm11354_vm5, %v8908_v27 }
 0x159   : > { %5935 = vmatmul.mubr.msk.bf16.gmra.mrb[100].mxu1 %vm11356_vm3, %v8758_v29 }
 0x15a   : > { %2880 = vmatprep.mubr.bf16.mxu1 %v8890_v55 }
 0x15f   : > { %2720 = vmatmul.mubr.bf16.gmra.mrb[104].mxu0 %v8794_v37 }
 0x160   : > { %5893 = vmatprep.mubr.msk.bf16.mxu0 %vm8855_vm10, %v8968_v63 }
 0x161   : > { %5938 = vmatmul.mubr.msk.bf16.gmra.mrb[104].mxu1 %vm11358_vm1, %v8850_v57  ;;  %vm11360_vm1 = vnez %v11359_v25 }
 0x162   : > { %v6385_v26 = vpop.f32.mrb[0].mxu0  ;;  %2888 = vmatprep.mubr.bf16.mxu1 %v8954_v10 }
 0x163   : > { %v6386_v58 = vpop.f32.mrb[1].mxu0 }
 0x164   : > { %v6387_v29 = vadd.f32 %v6386_v58, %v6385_v26  ;;  %v6388_v42 = vpop.f32.mrb[2].mxu0  ;;  %v6497_v37 = vpop.f32.mrb[0].mxu1  ;;  %v9458_v26 = vrot.slane %v11362_v45, 1 }
 0x165   : > { %v6389_v62 = vpop.f32.mrb[3].mxu0  ;;  %v6498_v50 = vpop.f32.mrb[1].mxu1 }
 0x166   : > { %v2320_v8 = vadd.f32 %v6387_v29, %v9439_v46  ;;  %v6390_v5 = vadd.f32 %v6389_v62, %v6388_v42  ;;  %v6499_v38 = vadd.f32 %v6498_v50, %v6497_v37  ;;  %v6500_v33 = vpop.f32.mrb[2].mxu1  ;;  %v7649_v62 = vld [vmem:[%s8060_s16 + $0xf0] sm:$0xff] }
 0x167   : > { %2728 = vmatmul.mubr.bf16.gmra.mrb[108].mxu0 %v8890_v55  ;;  %v6501_v22 = vpop.f32.mrb[3].mxu1 }
 0x168   : > { %v2323_v57 = vadd.f32 %v6390_v5, %v9439_v46  ;;  %5896 = vmatprep.mubr.msk.bf16.mxu0 %vm8922_vm4, %v9027_v31  ;;  %v6502_v21 = vadd.f32 %v6501_v22, %v6500_v33  ;;  %v9448_v20 = vadd.f32 %v6499_v38, %v2320_v8  ;;  %v1683_v8 = vpack.c.bf16 %v8746_v3, %v7649_v62  ;;  %v11365_v22 = vld [vmem:[#allocation27_spill] sm:$0xff]  ;;  %v7650_v62 = vld [vmem:[%s8060_s16 + $0x108] sm:$0xff] }
 0x169   : > { %5941 = vmatmul.mubr.msk.bf16.gmra.mrb[108].mxu1 %vm11360_vm1, %v8917_v14  ;;  %vm11364_vm1 = vcmp.lt.s32.totalorder %v8070_v23, 7  ;;  %v11367_v3 = vld [vmem:[#allocation47_spill] sm:$0xff] }
 0x16a   : > { %v6391_v17 = vpop.f32.mrb[4].mxu0  ;;  %2896 = vmatprep.mubr.bf16.mxu1 %v11361_v61  ;;  %v9454_v55 = vadd.f32 %v6502_v21, %v2323_v57  ;;  %v1351_v57 = vsel %vm11364_vm1, %v1585_v48, %v9458_v26  ;;  %vm11366_vm3 = vmmov %vm11364_vm1 }
 0x16b   : > { %v6392_v32 = vpop.f32.mrb[5].mxu0 }
 0x16c   : > { %v6393_v28 = vadd.f32 %v6392_v32, %v6391_v17  ;;  %v6394_v11 = vpop.f32.mrb[6].mxu0  ;;  %v6503_v24 = vpop.f32.mrb[4].mxu1  ;;  %v11368_v17 = vld [vmem:[#allocation44_spill] sm:$0xff] }
 0x16d   : > { %v6395_v2 = vpop.f32.mrb[7].mxu0  ;;  %v6504_v14 = vpop.f32.mrb[5].mxu1  ;;  %vm11369_vm4 = vnez %v11368_v17 }
 0x16e   : > { %v2328_v58 = vadd.f32 %v6393_v28, %v9439_v46  ;;  %v6396_v29 = vadd.f32 %v6395_v2, %v6394_v11  ;;  %v6505_v42 = vadd.f32 %v6504_v14, %v6503_v24  ;;  %v6506_v37 = vpop.f32.mrb[6].mxu1 }
 0x16f   : > { %2736 = vmatmul.mubr.bf16.gmra.mrb[112].mxu0 %v8954_v10  ;;  %v6507_v50 = vpop.f32.mrb[7].mxu1  ;;  %v1352_v10 = vsel %vm11366_vm3, %v11365_v22, %v1585_v48  ;;  %vm11374_vm3 = vmmov %vm11364_vm1 }
 0x170   : > { %v2331_v5 = vadd.f32 %v6396_v29, %v9439_v46  ;;  %5899 = vmatprep.mubr.msk.bf16.mxu0 %vm8978_vm0, %v9097_v59  ;;  %v6508_v33 = vadd.f32 %v6507_v50, %v6506_v37  ;;  %v9474_v21 = vadd.f32 %v6505_v42, %v2328_v58  ;;  %v9481_v29 = vpack.c.bf16 %v1351_v57, %v1352_v10 }
 0x171   : > { %5944 = vmatmul.mubr.msk.bf16.gmra.mrb[112].mxu1 %vm11369_vm4, %v11367_v3  ;;  %v1349_v50 = vrot.slane %v7650_v62, 1  ;;  %v11370_v3 = vld [vmem:[#allocation55_spill] sm:$0xff] }
 0x172   : > { %v6397_v32 = vpop.f32.mrb[8].mxu0  ;;  %2904 = vmatprep.mubr.bf16.mxu1 %v1683_v8  ;;  %v9479_v11 = vadd.f32 %v6508_v33, %v2331_v5  ;;  %v1684_v5 = vpack.c.bf16 %v11370_v3, %v11362_v45 }
 0x173   : > { %v6398_v28 = vpop.f32.mrb[9].mxu0 }
 0x174   : > { %v6399_v24 = vadd.f32 %v6398_v28, %v6397_v32  ;;  %v6400_v2 = vpop.f32.mrb[10].mxu0  ;;  %v6509_v14 = vpop.f32.mrb[8].mxu1  ;;  %v1350_v28 = vsel %vm11364_vm1, %v9458_v26, %v1349_v50 }
 0x175   : > { %v6401_v37 = vpop.f32.mrb[11].mxu0  ;;  %v6510_v42 = vpop.f32.mrb[9].mxu1 }
 0x176   : > { %v2336_v48 = vadd.f32 %v6399_v24, %v9439_v46  ;;  %v6402_v58 = vadd.f32 %v6401_v37, %v6400_v2  ;;  %v6511_v22 = vadd.f32 %v6510_v42, %v6509_v14  ;;  %v6512_v56 = vpop.f32.mrb[10].mxu1  ;;  %v11372_v24 = vld [vmem:[#allocation53_spill] sm:$0xff]  ;;  %v11375_v37 = vld [vmem:[#allocation51_spill] sm:$0xff]  ;;  %v11376_v42 = vld [vmem:[#allocation46_spill] sm:$0xff] }
 0x177   : > { %2744 = vmatmul.mubr.bf16.gmra.mrb[116].mxu0 %v11361_v61  ;;  %v6513_v57 = vpop.f32.mrb[11].mxu1  ;;  %v11373_v2 = vrot.slane %v11372_v24, 1  ;;  %vm11377_vm4 = vnez %v11376_v42  ;;  %v1445_v42 = vpack.c.bf16 %v7650_v62, %v11362_v45 }
 0x178   : > { %v2339_v33 = vadd.f32 %v6402_v58, %v9439_v46  ;;  %5902 = vmatprep.mubr.msk.bf16.mxu0 %vm9045_vm6, %v9481_v29  ;;  %v6514_v32 = vadd.f32 %v6513_v57, %v6512_v56  ;;  %v9499_v14 = vadd.f32 %v6511_v22, %v2336_v48 }
 0x179   : > { %v1381_v61 = vsel %vm11374_vm3, %v1349_v50, %v11373_v2  ;;  %5947 = vmatmul.mubr.msk.bf16.gmra.mrb[116].mxu1 %vm11377_vm4, %v11375_v37  ;;  %v1492_v37 = vrot.slane %v9507_v7, 7  ;;  %vm11386_vm3 = vcmp.lt.s32.totalorder %v8070_v23, 1 }
 0x17a   : > { %v6403_v58 = vpop.f32.mrb[12].mxu0  ;;  %2912 = vmatprep.mubr.bf16.mxu1 %v1684_v5  ;;  %v9504_v17 = vadd.f32 %v6514_v32, %v2339_v33  ;;  %v5904_v25 = vpack.c.bf16 %v1381_v61, %v1350_v28  ;;  %v11378_v5 = vld [vmem:[#allocation59_spill] sm:$0xff]  ;;  %vm11388_vm4 = vmmov %vm11386_vm3 }
 0x17b   : > { %v6404_v47 = vpop.f32.mrb[13].mxu0  ;;  %v1685_v33 = vpack.c.bf16 %v11378_v5, %v9507_v7 }
 0x17c   : > { %v6405_v56 = vadd.f32 %v6404_v47, %v6403_v58  ;;  %v6406_v57 = vpop.f32.mrb[14].mxu0  ;;  %v6515_v24 = vpop.f32.mrb[12].mxu1 }
 0x17d   : > { %v6407_v40 = vpop.f32.mrb[15].mxu0  ;;  %v6516_v22 = vpop.f32.mrb[13].mxu1 }
 0x17e   : > { %v2344_v50 = vadd.f32 %v6405_v56, %v9439_v46  ;;  %v6408_v48 = vadd.f32 %v6407_v40, %v6406_v57  ;;  %v6517_v2 = vadd.f32 %v6516_v22, %v6515_v24  ;;  %v6518_v53 = vpop.f32.mrb[14].mxu1  ;;  %v11380_v56 = vld [vmem:[#allocation57_spill] sm:$0xff]  ;;  %v11381_v40 = vld [vmem:[#allocation54_spill] sm:$0xff] }
 0x17f   : > { %2752 = vmatmul.mubr.bf16.gmra.mrb[120].mxu0 %v1683_v8  ;;  %v6519_v32 = vpop.f32.mrb[15].mxu1  ;;  %v11382_v57 = vpack.c.bf16 %v11380_v56, %v11381_v40  ;;  %v11383_v24 = vld [vmem:[#allocation49_spill] sm:$0xff] }
 0x180   : > { %v2347_v47 = vadd.f32 %v6408_v48, %v9439_v46  ;;  %5905 = vmatprep.mubr.msk.bf16.mxu0 %vm9147_vm2, %v5904_v25  ;;  %v6520_v61 = vadd.f32 %v6519_v32, %v6518_v53  ;;  %v9516_v58 = vadd.f32 %v6517_v2, %v2344_v50  ;;  %vm11384_vm1 = vnez %v11383_v24 }
 0x181   : > { %5950 = vmatmul.mubr.msk.bf16.gmra.mrb[120].mxu1 %vm11384_vm1, %v11382_v57  ;;  %v11385_v48 = vrot.slane %v11378_v5, 7  ;;  %v11387_v53 = vrot.slane %v11370_v3, 7  ;;  %vm11411_vm1 = vnez %v11217_v36 }
 0x182   : > { %v6409_v8 = vpop.f32.mrb[16].mxu0  ;;  %2920 = vmatprep.mubr.bf16.mxu1 %v1685_v33  ;;  %v9532_v50 = vadd.f32 %v6520_v61, %v2347_v47 }
 0x183   : > { %v6410_v22 = vpop.f32.mrb[17].mxu0  ;;  %v1494_v9 = vsel %vm11386_vm3, %v1492_v37, %v11385_v48  ;;  %v1495_v25 = vsel %vm11388_vm4, %v11387_v53, %v1492_v37  ;;  %v11391_v37 = vpack.c.bf16 %v11389_v51, %v11390_v18  ;;  %vm11408_vm4 = vnez %v11331_v12 }
 0x184   : > { %v6411_v2 = vadd.f32 %v6410_v22, %v6409_v8  ;;  %v6412_v32 = vpop.f32.mrb[18].mxu0  ;;  %v6521_v56 = vpop.f32.mrb[16].mxu1  ;;  %v5952_v33 = vpack.c.bf16 %v1494_v9, %v1495_v25  ;;  %vm11409_vm3 = vnez %v11338_v39 }
 0x185   : > { %v6413_v40 = vpop.f32.mrb[19].mxu0  ;;  %v6522_v62 = vpop.f32.mrb[17].mxu1 }
 0x186   : > { %v2352_v57 = vadd.f32 %v6411_v2, %v9439_v46  ;;  %v6414_v45 = vadd.f32 %v6413_v40, %v6412_v32  ;;  %v6523_v24 = vadd.f32 %v6522_v62, %v6521_v56  ;;  %v6524_v43 = vpop.f32.mrb[18].mxu1 }
 0x187   : > { %2760 = vmatmul.mubr.bf16.gmra.mrb[124].mxu0 %v1445_v42  ;;  %v6525_v44 = vpop.f32.mrb[19].mxu1 }
 0x188   : > { %v2355_v48 = vadd.f32 %v6414_v45, %v9439_v46  ;;  %7329 = vmatprep.mubr.msk.bf16.mxu0 %vm8150_vm7, %v11391_v37  ;;  %v6526_v61 = vadd.f32 %v6525_v44, %v6524_v43  ;;  %v9541_v8 = vadd.f32 %v6523_v24, %v2352_v57  ;;  %v11394_v44 = vld [vmem:[#allocation35_spill] sm:$0xff] }
 0x189   : > { %5953 = vmatmul.mubr.msk.bf16.gmra.mrb[124].mxu1 %vm9088_vm13, %v5952_v33  ;;  %v11395_v43 = vld [vmem:[#allocation31_spill] sm:$0xff]  ;;  %vm11410_vm13 = vnez %v11344_v13 }
 0x18a   : > { %v6415_v53 = vpop.f32.mrb[20].mxu0  ;;  %v9545_v25 = vadd.f32 %v6526_v61, %v2355_v48  ;;  %v11396_v24 = vpack.c.bf16 %v11394_v44, %v11395_v43  ;;  %v11398_v37 = vld [vmem:[#allocation63_spill] sm:$0xff]  ;;  %v11399_v61 = vld [vmem:[#allocation64_spill] sm:$0xff] }
 0x18b   : > { %v6416_v9 = vpop.f32.mrb[21].mxu0 }
 0x18c   : > { %v6417_v42 = vadd.f32 %v6416_v9, %v6415_v53  ;;  %v6418_v2 = vpop.f32.mrb[22].mxu0  ;;  %v6527_v32 = vpop.f32.mrb[20].mxu1  ;;  %v11400_v53 = vpack.c.bf16 %v11398_v37, %v11399_v61  ;;  %v11402_v61 = vld [vmem:[#allocation65_spill] sm:$0xff]  ;;  %v11403_v9 = vld [vmem:[#allocation66_spill] sm:$0xff] }
 0x18d   : > { %v6419_v56 = vpop.f32.mrb[23].mxu0  ;;  %v6528_v51 = vpop.f32.mrb[21].mxu1 }
 0x18e   : > { %v2360_v40 = vadd.f32 %v6417_v42, %v9439_v46  ;;  %v6420_v18 = vadd.f32 %v6419_v56, %v6418_v2  ;;  %v6529_v45 = vadd.f32 %v6528_v51, %v6527_v32  ;;  %v6530_v62 = vpop.f32.mrb[22].mxu1 }
 0x18f   : > { %7330 = vmatmul.mubr.msk.bf16.vlgmr.msra.gmra.mrb[128].mxu0 %vm8211_vm11, %v11396_v24  ;;  %v6531_v48 = vpop.f32.mrb[23].mxu1 }
 0x190   : > { %v2363_v33 = vadd.f32 %v6420_v18, %v9439_v46  ;;  %7333 = vmatprep.mubr.msk.bf16.mxu0 %vm8236_vm14, %v11400_v53  ;;  %v6532_v42 = vadd.f32 %v6531_v48, %v6530_v62  ;;  %v9559_v2 = vadd.f32 %v6529_v45, %v2360_v40  ;;  %v11404_v53 = vpack.c.bf16 %v11402_v61, %v11403_v9 }
 0x191   : > { %v11405_v62 = vpack.c.bf16 %v9296_v19, %v9300_v16  ;;  %v11406_v16 = vpack.c.bf16 %v9310_v60, %v9314_v35 }
 0x192   : > { %v6421_v32 = vpop.f32.mrb[24].mxu0  ;;  %v9561_v51 = vadd.f32 %v6532_v42, %v2363_v33 }
 0x193   : > { %v6422_v56 = vpop.f32.mrb[25].mxu0 }
 0x194   : > { %v6423_v44 = vadd.f32 %v6422_v56, %v6421_v32  ;;  %v6424_v43 = vpop.f32.mrb[26].mxu0  ;;  %v6533_v22 = vpop.f32.mrb[24].mxu1 }
 0x195   : > { %v6425_v24 = vpop.f32.mrb[27].mxu0  ;;  %v6534_v57 = vpop.f32.mrb[25].mxu1 }
 0x196   : > { %v2368_v18 = vadd.f32 %v6423_v44, %v9439_v46  ;;  %v6426_v54 = vadd.f32 %v6425_v24, %v6424_v43  ;;  %v6535_v47 = vadd.f32 %v6534_v57, %v6533_v22  ;;  %v6536_v37 = vpop.f32.mrb[26].mxu1 }
 0x197   : > { %7334 = vmatmul.mubr.msk.bf16.gmra.mrb[132].mxu0 %vm8304_vm9, %v11404_v53  ;;  %v6537_v45 = vpop.f32.mrb[27].mxu1 }
 0x198   : > { %v2371_v40 = vadd.f32 %v6426_v54, %v9439_v46  ;;  %7337 = vmatprep.mubr.msk.bf16.mxu0 %vm11323_vm8, %v11405_v62  ;;  %v6538_v33 = vadd.f32 %v6537_v45, %v6536_v37  ;;  %v9575_v48 = vadd.f32 %v6535_v47, %v2368_v18  ;;  %v11407_v37 = vpack.c.bf16 %v9340_v0, %v9344_v30 }
 0x19a   : > { %v6427_v22 = vpop.f32.mrb[28].mxu0  ;;  %v9577_v42 = vadd.f32 %v6538_v33, %v2371_v40 }
 0x19b   : > { %v6428_v57 = vpop.f32.mrb[29].mxu0 }
 0x19c   : > { %v6429_v9 = vadd.f32 %v6428_v57, %v6427_v22  ;;  %v6430_v32 = vpop.f32.mrb[30].mxu0  ;;  %v6539_v56 = vpop.f32.mrb[28].mxu1 }
 0x19d   : > { %v6431_v44 = vpop.f32.mrb[31].mxu0  ;;  %v6540_v24 = vpop.f32.mrb[29].mxu1 }
 0x19e   : > { %v2376_v54 = vadd.f32 %v6429_v9, %v9439_v46  ;;  %v6432_v43 = vadd.f32 %v6431_v44, %v6430_v32  ;;  %v6541_v61 = vadd.f32 %v6540_v24, %v6539_v56  ;;  %v6542_v19 = vpop.f32.mrb[30].mxu1 }
 0x19f   : > { %7338 = vmatmul.mubr.msk.bf16.gmra.mrb[136].mxu0 %vm11328_vm15, %v11406_v16  ;;  %v6543_v18 = vpop.f32.mrb[31].mxu1 }
 0x1a0   : > { %v2379_v47 = vadd.f32 %v6432_v43, %v9439_v46  ;;  %7341 = vmatprep.mubr.msk.bf16.mxu0 %vm11408_vm4, %v11407_v37  ;;  %v6544_v53 = vadd.f32 %v6543_v18, %v6542_v19  ;;  %v9591_v40 = vadd.f32 %v6541_v61, %v2376_v54  ;;  %v7560_v61 = vld [vmem:[#allocation8 + $0x40] sm:$0xff]  }
 0x1a1   : > { %v7561_v19 = vld [vmem:[#allocation8] sm:$0xff]   ;;  %6841 = vmatprep.subr.bf16.mxu1 %v7560_v61  ;;  %v1587_v61 = vrot.slane %v11370_v3, 1 }
 0x1a2   : > { %v6433_v45 = vpop.f32.mrb[32].mxu0  ;;  %v9593_v33 = vadd.f32 %v6544_v53, %v2379_v47  ;;  %6842 = vmatpush3.bf16.msra.mxu1 %v7561_v19 }
 0x1a3   : > { %v6434_v62 = vpop.f32.mrb[33].mxu0 }
 0x1a4   : > { %v6435_v60 = vadd.f32 %v6434_v62, %v6433_v45  ;;  %v6436_v35 = vpop.f32.mrb[34].mxu0  ;;  %v6545_v22 = vpop.f32.mrb[32].mxu1 }
 0x1a5   : > { %v6437_v57 = vpop.f32.mrb[35].mxu0  ;;  %v6546_v56 = vpop.f32.mrb[33].mxu1 }
 0x1a6   : > { %v2384_v9 = vadd.f32 %v6435_v60, %v9439_v46  ;;  %v6438_v32 = vadd.f32 %v6437_v57, %v6436_v35  ;;  %v6547_v44 = vadd.f32 %v6546_v56, %v6545_v22  ;;  %v6548_v0 = vpop.f32.mrb[34].mxu1 }
 0x1a7   : > { %7342 = vmatmul.mubr.msk.bf16.gmra.mrb[140].mxu0 %vm11409_vm3, %v11343_v4  ;;  %v6549_v54 = vpop.f32.mrb[35].mxu1 }
 0x1a8   : > { %v2387_v30 = vadd.f32 %v6438_v32, %v9439_v46  ;;  %7345 = vmatprep.mubr.msk.bf16.mxu0 %vm11410_vm13, %v8843_v15  ;;  %v9603_v43 = vadd.f32 %v6547_v44, %v2384_v9  ;;  %v6550_v24 = vadd.f32 %v6549_v54, %v6548_v0 }
 0x1aa   : > { %v6439_v16 = vpop.f32.mrb[36].mxu0  ;;  %v9605_v47 = vadd.f32 %v6550_v24, %v2387_v30 }
 0x1ab   : > { %v6440_v18 = vpop.f32.mrb[37].mxu0 }
 0x1ac   : > { %v6441_v37 = vadd.f32 %v6440_v18, %v6439_v16  ;;  %v6442_v53 = vpop.f32.mrb[38].mxu0  ;;  %v6551_v4 = vpop.f32.mrb[36].mxu1 }
 0x1ad   : > { %v6443_v45 = vpop.f32.mrb[39].mxu0  ;;  %v6552_v35 = vpop.f32.mrb[37].mxu1 }
 0x1ae   : > { %v2392_v62 = vadd.f32 %v6441_v37, %v9439_v46  ;;  %v6444_v60 = vadd.f32 %v6443_v45, %v6442_v53  ;;  %v6553_v15 = vadd.f32 %v6552_v35, %v6551_v4  ;;  %v6554_v22 = vpop.f32.mrb[38].mxu1 }
 0x1af   : > { %7346 = vmatmul.mubr.msk.bf16.gmra.mrb[144].mxu0 %vm11351_vm12, %v8908_v27  ;;  %v6555_v9 = vpop.f32.mrb[39].mxu1  ;;  %v1588_v27 = vrot.slane %v9507_v7, 1 }
 0x1b0   : > { %v2395_v57 = vadd.f32 %v6444_v60, %v9439_v46  ;;  %7349 = vmatprep.mubr.msk.bf16.mxu0 %vm11354_vm5, %v8968_v63  ;;  %v9615_v32 = vadd.f32 %v6553_v15, %v2392_v62  ;;  %v6556_v56 = vadd.f32 %v6555_v9, %v6554_v22  ;;  %vm11412_vm5 = vcmp.lt.s32.totalorder %v8070_v23, 7  ;;  %v7562_v15 = vld [vmem:[#allocation8 + $0x48] sm:$0xff]  }
 0x1b1   : > { %v1591_v60 = vsel %vm11412_vm5, %v1587_v61, %v1588_v27  ;;  %vm11413_vm12 = vmmov %vm11412_vm5  ;;  %v7563_v22 = vld [vmem:[#allocation8 + $0x8] sm:$0xff]   ;;  %6843 = vmatprep.subr.bf16.mxu1 %v7562_v15 }
 0x1b2   : > { %v6445_v44 = vpop.f32.mrb[40].mxu0  ;;  %v9617_v0 = vadd.f32 %v6556_v56, %v2395_v57  ;;  %v1592_v35 = vsel %vm11413_vm12, %v9458_v26, %v1587_v61  ;;  %6844 = vmatpush3.bf16.msra.mxu1 %v7563_v22  ;;  %vm11414_vm12 = vmmov %vm11412_vm5 }
 0x1b3   : > { %v6446_v30 = vpop.f32.mrb[41].mxu0 }
 0x1b4   : > { %v6447_v54 = vadd.f32 %v6446_v30, %v6445_v44  ;;  %v6448_v24 = vpop.f32.mrb[42].mxu0  ;;  %v6557_v19 = vpop.f32.mrb[40].mxu1  ;;  %v1589_v30 = vrot.slane %v11378_v5, 1 }
 0x1b5   : > { %v6449_v16 = vpop.f32.mrb[43].mxu0  ;;  %v6558_v53 = vpop.f32.mrb[41].mxu1 }
 0x1b6   : > { %v2400_v18 = vadd.f32 %v6447_v54, %v9439_v46  ;;  %v6450_v37 = vadd.f32 %v6449_v16, %v6448_v24  ;;  %v6559_v63 = vadd.f32 %v6558_v53, %v6557_v19  ;;  %v6560_v4 = vpop.f32.mrb[42].mxu1  ;;  %v1590_v5 = vsel %vm11414_vm12, %v1588_v27, %v1589_v30 }
 0x1b7   : > { %7350 = vmatmul.mubr.msk.bf16.gmra.mrb[148].mxu0 %vm8855_vm10, %v9027_v31  ;;  %v6561_v62 = vpop.f32.mrb[43].mxu1  ;;  %vm11419_vm12 = vcmp.lt.s32.totalorder %v8070_v23, 1 }
 0x1b8   : > { %v2403_v45 = vadd.f32 %v6450_v37, %v9439_v46  ;;  %7353 = vmatprep.mubr.msk.bf16.mxu0 %vm11411_vm1, %v9097_v59  ;;  %v9629_v7 = vadd.f32 %v6559_v63, %v2400_v18  ;;  %v6562_v3 = vadd.f32 %v6561_v62, %v6560_v4  ;;  %v5997_v59 = vpack.c.bf16 %v1591_v60, %v1592_v35  ;;  %v11415_v63 = vld [vmem:[#allocation58_spill] sm:$0xff] }
 0x1b9   : > { %v11416_v4 = vrot.slane %v11415_v63, 1 }
 0x1ba   : > { %v6451_v31 = vpop.f32.mrb[44].mxu0  ;;  %v9636_v57 = vadd.f32 %v6562_v3, %v2403_v45 }
 0x1bb   : > { %v6452_v9 = vpop.f32.mrb[45].mxu0  ;;  %v1621_v45 = vsel %vm11412_vm5, %v1589_v30, %v11416_v4 }
 0x1bc   : > { %v6453_v56 = vadd.f32 %v6452_v9, %v6451_v31  ;;  %v6454_v44 = vpop.f32.mrb[46].mxu0  ;;  %v6563_v54 = vpop.f32.mrb[44].mxu1  ;;  %v6000_v15 = vpack.c.bf16 %v1621_v45, %v1590_v5 }
 0x1bd   : > { %v6455_v24 = vpop.f32.mrb[47].mxu0  ;;  %v6564_v18 = vpop.f32.mrb[45].mxu1 }
 0x1be   : > { %v2408_v19 = vadd.f32 %v6453_v56, %v9439_v46  ;;  %v6456_v16 = vadd.f32 %v6455_v24, %v6454_v44  ;;  %v6565_v26 = vadd.f32 %v6564_v18, %v6563_v54  ;;  %v6566_v61 = vpop.f32.mrb[46].mxu1 }
 0x1bf   : > { %7354 = vmatmul.mubr.msk.bf16.gmra.mrb[152].mxu0 %vm8978_vm0, %v9481_v29  ;;  %v6567_v53 = vpop.f32.mrb[47].mxu1 }
 0x1c0   : > { %v2411_v37 = vadd.f32 %v6456_v16, %v9439_v46  ;;  %7357 = vmatprep.mubr.msk.bf16.mxu0 %vm9045_vm6, %v5997_v59  ;;  %v9652_v62 = vadd.f32 %v6565_v26, %v2408_v19  ;;  %v6568_v3 = vadd.f32 %v6567_v53, %v6566_v61  ;;  %v7564_v26 = vld [vmem:[#allocation8 + $0x50] sm:$0xff]  }
 0x1c1   : > { %v7565_v61 = vld [vmem:[#allocation8 + $0x10] sm:$0xff]   ;;  %6845 = vmatprep.subr.bf16.mxu1 %v7564_v26 }
 0x1c2   : > { %v6457_v60 = vpop.f32.mrb[48].mxu0  ;;  %v9654_v35 = vadd.f32 %v6568_v3, %v2411_v37  ;;  %6846 = vmatpush3.bf16.msra.mxu1 %v7565_v61 }
 0x1c3   : > { %v6458_v29 = vpop.f32.mrb[49].mxu0 }
 0x1c4   : > { %v6459_v22 = vadd.f32 %v6458_v29, %v6457_v60  ;;  %v6460_v31 = vpop.f32.mrb[50].mxu0  ;;  %v6569_v9 = vpop.f32.mrb[48].mxu1 }
 0x1c5   : > { %v6461_v56 = vpop.f32.mrb[51].mxu0  ;;  %v6570_v59 = vpop.f32.mrb[49].mxu1 }
 0x1c6   : > { %v2416_v44 = vadd.f32 %v6459_v22, %v9439_v46  ;;  %v6462_v27 = vadd.f32 %v6461_v56, %v6460_v31  ;;  %v6571_v54 = vadd.f32 %v6570_v59, %v6569_v9  ;;  %v6572_v24 = vpop.f32.mrb[50].mxu1 }
 0x1c7   : > { %7358 = vmatmul.mubr.msk.bf16.gmra.mrb[156].mxu0 %vm9147_vm2, %v6000_v15  ;;  %v6573_v19 = vpop.f32.mrb[51].mxu1 }
 0x1c8   : > { %v2419_v30 = vadd.f32 %v6462_v27, %v9439_v46  ;;  %v9660_v16 = vadd.f32 %v6571_v54, %v2416_v44  ;;  %v6574_v18 = vadd.f32 %v6573_v19, %v6572_v24 }
 0x1ca   : > { %v6463_v37 = vpop.f32.mrb[52].mxu0  ;;  %v9662_v53 = vadd.f32 %v6574_v18, %v2419_v30 }
 0x1cb   : > { %v6464_v5 = vpop.f32.mrb[53].mxu0 }
 0x1cc   : > { %v6465_v63 = vadd.f32 %v6464_v5, %v6463_v37  ;;  %v6466_v4 = vpop.f32.mrb[54].mxu0  ;;  %v6575_v45 = vpop.f32.mrb[52].mxu1 }
 0x1cd   : > { %v6467_v3 = vpop.f32.mrb[55].mxu0  ;;  %v6576_v15 = vpop.f32.mrb[53].mxu1 }
 0x1ce   : > { %v2424_v60 = vadd.f32 %v6465_v63, %v9439_v46  ;;  %v6468_v29 = vadd.f32 %v6467_v3, %v6466_v4  ;;  %v6577_v22 = vadd.f32 %v6576_v15, %v6575_v45  ;;  %v6578_v31 = vpop.f32.mrb[54].mxu1  ;;  %v7566_v15 = vld [vmem:[#allocation8 + $0x58] sm:$0xff]  }
 0x1cf   : > { %v6579_v56 = vpop.f32.mrb[55].mxu1  ;;  %6847 = vmatprep.subr.bf16.mxu1 %v7566_v15 }
 0x1d0   : > { %v2427_v9 = vadd.f32 %v6468_v29, %v9439_v46  ;;  %v9666_v44 = vadd.f32 %v6577_v22, %v2424_v60  ;;  %v6580_v27 = vadd.f32 %v6579_v56, %v6578_v31  ;;  %v7567_v22 = vld [vmem:[#allocation8 + $0x18] sm:$0xff]  }
 0x1d1   : > { %6848 = vmatpush3.bf16.msra.mxu1 %v7567_v22 }
 0x1d2   : > { %v6469_v59 = vpop.f32.mrb[56].mxu0  ;;  %v9668_v54 = vadd.f32 %v6580_v27, %v2427_v9 }
 0x1d3   : > { %v6470_v24 = vpop.f32.mrb[57].mxu0 }
 0x1d4   : > { %v6471_v30 = vadd.f32 %v6470_v24, %v6469_v59  ;;  %v6472_v19 = vpop.f32.mrb[58].mxu0  ;;  %v6581_v18 = vpop.f32.mrb[56].mxu1 }
 0x1d5   : > { %v6473_v26 = vpop.f32.mrb[59].mxu0  ;;  %v6582_v5 = vpop.f32.mrb[57].mxu1 }
 0x1d6   : > { %v2432_v61 = vadd.f32 %v6471_v30, %v9439_v46  ;;  %v6474_v37 = vadd.f32 %v6473_v26, %v6472_v19  ;;  %v6583_v63 = vadd.f32 %v6582_v5, %v6581_v18  ;;  %v6584_v4 = vpop.f32.mrb[58].mxu1 }
 0x1d7   : > { %v6585_v3 = vpop.f32.mrb[59].mxu1 }
 0x1d8   : > { %v2435_v45 = vadd.f32 %v6474_v37, %v9439_v46  ;;  %v9672_v60 = vadd.f32 %v6583_v63, %v2432_v61  ;;  %v6586_v29 = vadd.f32 %v6585_v3, %v6584_v4 }
 0x1da   : > { %v6475_v31 = vpop.f32.mrb[60].mxu0  ;;  %v9674_v9 = vadd.f32 %v6586_v29, %v2435_v45 }
 0x1db   : > { %v6476_v56 = vpop.f32.mrb[61].mxu0 }
 0x1dc   : > { %v6477_v27 = vadd.f32 %v6476_v56, %v6475_v31  ;;  %v6478_v59 = vpop.f32.mrb[62].mxu0  ;;  %v6587_v24 = vpop.f32.mrb[60].mxu1 }
 0x1dd   : > { %v6479_v30 = vpop.f32.mrb[63].mxu0  ;;  %v6588_v26 = vpop.f32.mrb[61].mxu1 }
 0x1de   : > { %v2440_v19 = vadd.f32 %v6477_v27, %v9439_v46  ;;  %v6480_v18 = vadd.f32 %v6479_v30, %v6478_v59  ;;  %v6589_v37 = vadd.f32 %v6588_v26, %v6587_v24  ;;  %v6590_v61 = vpop.f32.mrb[62].mxu1 }
 0x1df   : > { %v6591_v63 = vpop.f32.mrb[63].mxu1 }
 0x1e0   : > { %v2443_v5 = vadd.f32 %v6480_v18, %v9439_v46  ;;  %v9678_v4 = vadd.f32 %v6589_v37, %v2440_v19  ;;  %v6592_v45 = vadd.f32 %v6591_v63, %v6590_v61 }
 0x1e2   : > { %v6609_v3 = vpop.f32.mrb[64].mxu0  ;;  %v9680_v29 = vadd.f32 %v6592_v45, %v2443_v5  ;;  %v7568_v45 = vld [vmem:[#allocation8 + $0x60] sm:$0xff]  }
 0x1e3   : > { %v6610_v15 = vpop.f32.mrb[65].mxu0  ;;  %6849 = vmatprep.subr.bf16.mxu1 %v7568_v45 }
 0x1e4   : > { %v6611_v31 = vadd.f32 %v6610_v15, %v6609_v3  ;;  %v6612_v22 = vpop.f32.mrb[66].mxu0  ;;  %v6721_v56 = vpop.f32.mrb[64].mxu1  ;;  %v7569_v3 = vld [vmem:[#allocation8 + $0x20] sm:$0xff]  }
 0x1e5   : > { %v6613_v28 = vpop.f32.mrb[67].mxu0  ;;  %v6722_v30 = vpop.f32.mrb[65].mxu1  ;;  %6850 = vmatpush3.bf16.msra.mxu1 %v7569_v3 }
 0x1e6   : > { %v2642_v27 = vadd.f32 %v6611_v31, %v9448_v20  ;;  %v6614_v59 = vadd.f32 %v6613_v28, %v6612_v22  ;;  %v6723_v24 = vadd.f32 %v6722_v30, %v6721_v56  ;;  %v6724_v26 = vpop.f32.mrb[66].mxu1 }
 0x1e7   : > { %v6725_v18 = vpop.f32.mrb[67].mxu1 }
 0x1e8   : > { %v2645_v46 = vadd.f32 %v6614_v59, %v9454_v55  ;;  %v6726_v19 = vadd.f32 %v6725_v18, %v6724_v26  ;;  %v9684_v37 = vadd.f32 %v6723_v24, %v2642_v27 }
 0x1ea   : > { %v6615_v61 = vpop.f32.mrb[68].mxu0  ;;  %v9686_v63 = vadd.f32 %v6726_v19, %v2645_v46 }
 0x1eb   : > { %v6616_v5 = vpop.f32.mrb[69].mxu0 }
 0x1ec   : > { %v6617_v15 = vadd.f32 %v6616_v5, %v6615_v61  ;;  %v6618_v10 = vpop.f32.mrb[70].mxu0  ;;  %v6727_v38 = vpop.f32.mrb[68].mxu1 }
 0x1ed   : > { %v6619_v20 = vpop.f32.mrb[71].mxu0  ;;  %v6728_v22 = vpop.f32.mrb[69].mxu1 }
 0x1ee   : > { %v2650_v28 = vadd.f32 %v6617_v15, %v9474_v21  ;;  %v6620_v31 = vadd.f32 %v6619_v20, %v6618_v10  ;;  %v6729_v55 = vadd.f32 %v6728_v22, %v6727_v38  ;;  %v6730_v56 = vpop.f32.mrb[70].mxu1 }
 0x1ef   : > { %v6731_v59 = vpop.f32.mrb[71].mxu1 }
 0x1f0   : > { %v2653_v27 = vadd.f32 %v6620_v31, %v9479_v11  ;;  %v6732_v30 = vadd.f32 %v6731_v59, %v6730_v56  ;;  %v9690_v24 = vadd.f32 %v6729_v55, %v2650_v28  ;;  %v7570_v55 = vld [vmem:[#allocation8 + $0x68] sm:$0xff]  }
 0x1f1   : > { %v7571_v56 = vld [vmem:[#allocation8 + $0x28] sm:$0xff]   ;;  %6851 = vmatprep.subr.bf16.mxu1 %v7570_v55 }
 0x1f2   : > { %v6621_v26 = vpop.f32.mrb[72].mxu0  ;;  %v9692_v18 = vadd.f32 %v6732_v30, %v2653_v27  ;;  %6852 = vmatpush3.bf16.msra.mxu1 %v7571_v56 }
 0x1f3   : > { %v6622_v46 = vpop.f32.mrb[73].mxu0 }
 0x1f4   : > { %v6623_v19 = vadd.f32 %v6622_v46, %v6621_v26  ;;  %v6624_v61 = vpop.f32.mrb[74].mxu0  ;;  %v6733_v5 = vpop.f32.mrb[72].mxu1 }
 0x1f5   : > { %v6625_v45 = vpop.f32.mrb[75].mxu0  ;;  %v6734_v3 = vpop.f32.mrb[73].mxu1 }
 0x1f6   : > { %v2658_v21 = vadd.f32 %v6623_v19, %v9499_v14  ;;  %v6626_v10 = vadd.f32 %v6625_v45, %v6624_v61  ;;  %v6735_v38 = vadd.f32 %v6734_v3, %v6733_v5  ;;  %v6736_v15 = vpop.f32.mrb[74].mxu1 }
 0x1f7   : > { %v6737_v20 = vpop.f32.mrb[75].mxu1 }
 0x1f8   : > { %v2661_v11 = vadd.f32 %v6626_v10, %v9504_v17  ;;  %v6738_v31 = vadd.f32 %v6737_v20, %v6736_v15  ;;  %v9696_v28 = vadd.f32 %v6735_v38, %v2658_v21 }
 0x1fa   : > { %v6627_v22 = vpop.f32.mrb[76].mxu0  ;;  %v9698_v59 = vadd.f32 %v6738_v31, %v2661_v11 }
 0x1fb   : > { %v6628_v27 = vpop.f32.mrb[77].mxu0 }
 0x1fc   : > { %v6629_v30 = vadd.f32 %v6628_v27, %v6627_v22  ;;  %v6630_v26 = vpop.f32.mrb[78].mxu0  ;;  %v6739_v14 = vpop.f32.mrb[76].mxu1 }
 0x1fd   : > { %v6631_v46 = vpop.f32.mrb[79].mxu0  ;;  %v6740_v17 = vpop.f32.mrb[77].mxu1 }
 0x1fe   : > { %v2666_v19 = vadd.f32 %v6629_v30, %v9516_v58  ;;  %v6632_v61 = vadd.f32 %v6631_v46, %v6630_v26  ;;  %v6741_v5 = vadd.f32 %v6740_v17, %v6739_v14  ;;  %v6742_v45 = vpop.f32.mrb[78].mxu1  ;;  %v7573_v26 = vld [vmem:[#allocation8 + $0xc0] sm:$0xff]  }
 0x1ff   : > { %v6743_v10 = vpop.f32.mrb[79].mxu1  ;;  %6953 = vmatprep.subr.bf16.mxu0 %v7573_v26 }
 0x200   : > { %v2669_v21 = vadd.f32 %v6632_v61, %v9532_v50  ;;  %v6744_v3 = vadd.f32 %v6743_v10, %v6742_v45  ;;  %v9702_v38 = vadd.f32 %v6741_v5, %v2666_v19  ;;  %v7575_v50 = vld [vmem:[#allocation8 + $0x80] sm:$0xff]   ;;  %v7574_v10 = vld [vmem:[#allocation8 + $0x30] sm:$0xff]  }
 0x201   : > { %6954 = vmatpush3.bf16.msra.mxu0 %v7575_v50 }
 0x202   : > { %v6633_v15 = vpop.f32.mrb[80].mxu0  ;;  %v9704_v20 = vadd.f32 %v6744_v3, %v2669_v21  ;;  %v7572_v21 = vld [vmem:[#allocation8 + $0x70] sm:$0xff]   ;;  %v7576_v3 = vld [vmem:[#allocation8 + $0xc8] sm:$0xff]  }
 0x203   : > { %v6634_v11 = vpop.f32.mrb[81].mxu0  ;;  %6853 = vmatprep.subr.bf16.mxu1 %v7572_v21  ;;  %6955 = vmatprep.subr.bf16.mxu0 %v7576_v3  ;;  %v7580_v21 = vld [vmem:[#allocation8 + $0xd8] sm:$0xff]  }
 0x204   : > { %v6635_v31 = vadd.f32 %v6634_v11, %v6633_v15  ;;  %v6636_v22 = vpop.f32.mrb[82].mxu0  ;;  %v6745_v55 = vpop.f32.mrb[80].mxu1  ;;  %v7577_v11 = vld [vmem:[#allocation8 + $0x88] sm:$0xff]   ;;  %6854 = vmatpush3.bf16.msra.mxu1 %v7574_v10 }
 0x205   : > { %v6637_v56 = vpop.f32.mrb[83].mxu0  ;;  %v6746_v30 = vpop.f32.mrb[81].mxu1  ;;  %6956 = vmatpush3.bf16.msra.mxu0 %v7577_v11 }
 0x206   : > { %v2674_v58 = vadd.f32 %v6635_v31, %v9541_v8  ;;  %v6638_v27 = vadd.f32 %v6637_v56, %v6636_v22  ;;  %v6747_v14 = vadd.f32 %v6746_v30, %v6745_v55  ;;  %v6748_v46 = vpop.f32.mrb[82].mxu1  ;;  %v7578_v30 = vld [vmem:[#allocation8 + $0xd0] sm:$0xff]  }
 0x207   : > { %v6749_v19 = vpop.f32.mrb[83].mxu1  ;;  %6957 = vmatprep.subr.bf16.mxu0 %v7578_v30  ;;  %v7585_v30 = vld [vmem:[#allocation8 + $0xa0] sm:$0xff]  }
 0x208   : > { %v2677_v61 = vadd.f32 %v6638_v27, %v9545_v25  ;;  %v6750_v17 = vadd.f32 %v6749_v19, %v6748_v46  ;;  %v9708_v5 = vadd.f32 %v6747_v14, %v2674_v58  ;;  %v7579_v46 = vld [vmem:[#allocation8 + $0x90] sm:$0xff]  }
 0x209   : > { %6958 = vmatpush3.bf16.msra.mxu0 %v7579_v46 }
 0x20a   : > { %v6639_v45 = vpop.f32.mrb[84].mxu0  ;;  %v9710_v8 = vadd.f32 %v6750_v17, %v2677_v61  ;;  %6959 = vmatprep.subr.bf16.mxu0 %v7580_v21  ;;  %v7586_v21 = vld [vmem:[#allocation8 + $0xe8] sm:$0xff]  }
 0x20b   : > { %v6640_v15 = vpop.f32.mrb[85].mxu0 }
 0x20c   : > { %v6641_v31 = vadd.f32 %v6640_v15, %v6639_v45  ;;  %v6642_v22 = vpop.f32.mrb[86].mxu0  ;;  %v6751_v55 = vpop.f32.mrb[84].mxu1 }
 0x20d   : > { %v6643_v25 = vpop.f32.mrb[87].mxu0  ;;  %v6752_v27 = vpop.f32.mrb[85].mxu1 }
 0x20e   : > { %v2682_v56 = vadd.f32 %v6641_v31, %v9559_v2  ;;  %v6644_v58 = vadd.f32 %v6643_v25, %v6642_v22  ;;  %v6753_v26 = vadd.f32 %v6752_v27, %v6751_v55  ;;  %v6754_v14 = vpop.f32.mrb[86].mxu1  ;;  %v7581_v2 = vld [vmem:[#allocation8 + $0x98] sm:$0xff]  }
 0x20f   : > { %v6755_v61 = vpop.f32.mrb[87].mxu1  ;;  %6960 = vmatpush3.bf16.msra.mxu0 %v7581_v2  ;;  %v7587_v2 = vld [vmem:[#allocation8 + $0xa8] sm:$0xff]  }
 0x210   : > { %v2685_v50 = vadd.f32 %v6644_v58, %v9561_v51  ;;  %v6756_v19 = vadd.f32 %v6755_v61, %v6754_v14  ;;  %v9714_v17 = vadd.f32 %v6753_v26, %v2682_v56  ;;  %v7583_v58 = vld [vmem:[#allocation8 + $0xe0] sm:$0xff]  }
 0x211   : > { %6961 = vmatprep.subr.bf16.mxu0 %v7583_v58 }
 0x212   : > { %v6645_v45 = vpop.f32.mrb[88].mxu0  ;;  %v9716_v3 = vadd.f32 %v6756_v19, %v2685_v50  ;;  %v7582_v19 = vld [vmem:[#allocation8 + $0x78] sm:$0xff]  }
 0x213   : > { %v6646_v10 = vpop.f32.mrb[89].mxu0  ;;  %6962 = vmatpush3.bf16.msra.mxu0 %v7585_v30  ;;  %6855 = vmatprep.subr.bf16.mxu1 %v7582_v19  ;;  %v7590_v19 = vld [vmem:[#allocation8 + $0xf8] sm:$0xff]  }
 0x214   : > { %v6647_v15 = vadd.f32 %v6646_v10, %v6645_v45  ;;  %v6648_v11 = vpop.f32.mrb[90].mxu0  ;;  %v6757_v31 = vpop.f32.mrb[88].mxu1  ;;  %v7584_v45 = vld [vmem:[#allocation8 + $0x38] sm:$0xff]   ;;  %6963 = vmatprep.subr.bf16.mxu0 %v7586_v21 }
 0x215   : > { %v6649_v22 = vpop.f32.mrb[91].mxu0  ;;  %v6758_v25 = vpop.f32.mrb[89].mxu1  ;;  %6856 = vmatpush3.bf16.msra.mxu1 %v7584_v45 }
 0x216   : > { %v2690_v51 = vadd.f32 %v6647_v15, %v9575_v48  ;;  %v6650_v55 = vadd.f32 %v6649_v22, %v6648_v11  ;;  %v6759_v56 = vadd.f32 %v6758_v25, %v6757_v31  ;;  %v6760_v27 = vpop.f32.mrb[90].mxu1  ;;  %v7588_v25 = vld [vmem:[#allocation8 + $0xf0] sm:$0xff]  }
 0x217   : > { %v6761_v14 = vpop.f32.mrb[91].mxu1  ;;  %6964 = vmatpush3.bf16.msra.mxu0 %v7587_v2 }
 0x218   : > { %v2693_v26 = vadd.f32 %v6650_v55, %v9577_v42  ;;  %v6762_v46 = vadd.f32 %v6761_v14, %v6760_v27  ;;  %v9720_v50 = vadd.f32 %v6759_v56, %v2690_v51  ;;  %v7589_v27 = vld [vmem:[#allocation8 + $0xb0] sm:$0xff]   ;;  %6965 = vmatprep.subr.bf16.mxu0 %v7588_v25  ;;  %v7592_v25 = vld [vmem:[#allocation8 + $0x140] sm:$0xff]  }
 0x219   : > { %7065 = vmatprep.subr.bf16.mxu1 %v7592_v25 }
 0x21a   : > { %v6651_v61 = vpop.f32.mrb[92].mxu0  ;;  %v9722_v48 = vadd.f32 %v6762_v46, %v2693_v26 }
 0x21b   : > { %v6652_v10 = vpop.f32.mrb[93].mxu0  ;;  %6966 = vmatpush3.bf16.msra.mxu0 %v7589_v27 }
 0x21c   : > { %v6653_v15 = vadd.f32 %v6652_v10, %v6651_v61  ;;  %v6654_v11 = vpop.f32.mrb[94].mxu0  ;;  %v6763_v31 = vpop.f32.mrb[92].mxu1  ;;  %6967 = vmatprep.subr.bf16.mxu0 %v7590_v19 }
 0x21d   : > { %v6655_v42 = vpop.f32.mrb[95].mxu0  ;;  %v6764_v55 = vpop.f32.mrb[93].mxu1 }
 0x21e   : > { %v2698_v22 = vadd.f32 %v6653_v15, %v9591_v40  ;;  %v6656_v51 = vadd.f32 %v6655_v42, %v6654_v11  ;;  %v6765_v58 = vadd.f32 %v6764_v55, %v6763_v31  ;;  %v6766_v56 = vpop.f32.mrb[94].mxu1  ;;  %v7591_v40 = vld [vmem:[#allocation8 + $0xb8] sm:$0xff]  }
 0x21f   : > { %v6767_v26 = vpop.f32.mrb[95].mxu1  ;;  %6968 = vmatpush3.bf16.msra.mxu0 %v7591_v40 }
 0x220   : > { %v2701_v30 = vadd.f32 %v6656_v51, %v9593_v33  ;;  %v6768_v14 = vadd.f32 %v6767_v26, %v6766_v56  ;;  %v9726_v46 = vadd.f32 %v6765_v58, %v2698_v22  ;;  %v10962_v51 = vmov 0.0|0.0  }
 0x221   : > { %4592 = vmatprep.mubr.bf16.mxu1 %v10962_v51 }
 0x222   : > { %v6657_v61 = vpop.f32.mrb[96].mxu0  ;;  %v9728_v21 = vadd.f32 %v6768_v14, %v2701_v30 }
 0x223   : > { %v6658_v45 = vpop.f32.mrb[97].mxu0 }
 0x224   : > { %v6659_v10 = vadd.f32 %v6658_v45, %v6657_v61  ;;  %v6660_v2 = vpop.f32.mrb[98].mxu0  ;;  %v6769_v15 = vpop.f32.mrb[96].mxu1 }
 0x225   : > { %v6661_v11 = vpop.f32.mrb[99].mxu0  ;;  %v6770_v42 = vpop.f32.mrb[97].mxu1 }
 0x226   : > { %v2706_v33 = vadd.f32 %v6659_v10, %v9603_v43  ;;  %v6662_v31 = vadd.f32 %v6661_v11, %v6660_v2  ;;  %v6771_v22 = vadd.f32 %v6770_v42, %v6769_v15  ;;  %v6772_v55 = vpop.f32.mrb[98].mxu1 }
 0x227   : > { %v6773_v56 = vpop.f32.mrb[99].mxu1 }
 0x228   : > { %v2709_v58 = vadd.f32 %v6662_v31, %v9605_v47  ;;  %v6774_v27 = vadd.f32 %v6773_v56, %v6772_v55  ;;  %v9733_v30 = vadd.f32 %v6771_v22, %v2706_v33 }
 0x22a   : > { %v6663_v26 = vpop.f32.mrb[100].mxu0  ;;  %v9735_v61 = vadd.f32 %v6774_v27, %v2709_v58 }
 0x22b   : > { %v6664_v14 = vpop.f32.mrb[101].mxu0 }
 0x22c   : > { %v6665_v43 = vadd.f32 %v6664_v14, %v6663_v26  ;;  %v6666_v19 = vpop.f32.mrb[102].mxu0  ;;  %v6775_v45 = vpop.f32.mrb[100].mxu1 }
 0x22d   : > { %v6667_v40 = vpop.f32.mrb[103].mxu0  ;;  %v6776_v15 = vpop.f32.mrb[101].mxu1 }
 0x22e   : > { %v2714_v10 = vadd.f32 %v6665_v43, %v9615_v32  ;;  %v6668_v2 = vadd.f32 %v6667_v40, %v6666_v19  ;;  %v6777_v11 = vadd.f32 %v6776_v15, %v6775_v45  ;;  %v6778_v42 = vpop.f32.mrb[102].mxu1 }
 0x22f   : > { %v6779_v31 = vpop.f32.mrb[103].mxu1 }
 0x230   : > { %v2717_v47 = vadd.f32 %v6668_v2, %v9617_v0  ;;  %v6780_v33 = vadd.f32 %v6779_v31, %v6778_v42  ;;  %v9739_v22 = vadd.f32 %v6777_v11, %v2714_v10 }
 0x232   : > { %v6669_v55 = vpop.f32.mrb[104].mxu0  ;;  %v9741_v58 = vadd.f32 %v6780_v33, %v2717_v47 }
 0x233   : > { %v6670_v25 = vpop.f32.mrb[105].mxu0 }
 0x234   : > { %v6671_v56 = vadd.f32 %v6670_v25, %v6669_v55  ;;  %v6672_v27 = vpop.f32.mrb[106].mxu0  ;;  %v6781_v26 = vpop.f32.mrb[104].mxu1 }
 0x235   : > { %v6673_v14 = vpop.f32.mrb[107].mxu0  ;;  %v6782_v19 = vpop.f32.mrb[105].mxu1 }
 0x236   : > { %v2722_v32 = vadd.f32 %v6671_v56, %v9629_v7  ;;  %v6674_v43 = vadd.f32 %v6673_v14, %v6672_v27  ;;  %v6783_v45 = vadd.f32 %v6782_v19, %v6781_v26  ;;  %v6784_v40 = vpop.f32.mrb[106].mxu1 }
 0x237   : > { %v6785_v2 = vpop.f32.mrb[107].mxu1 }
 0x238   : > { %v2725_v0 = vadd.f32 %v6674_v43, %v9636_v57  ;;  %v6786_v15 = vadd.f32 %v6785_v2, %v6784_v40  ;;  %v9745_v10 = vadd.f32 %v6783_v45, %v2722_v32 }
 0x23a   : > { %v6675_v11 = vpop.f32.mrb[108].mxu0  ;;  %v9747_v47 = vadd.f32 %v6786_v15, %v2725_v0 }
 0x23b   : > { %v6676_v42 = vpop.f32.mrb[109].mxu0 }
 0x23c   : > { %v6677_v31 = vadd.f32 %v6676_v42, %v6675_v11  ;;  %v6678_v33 = vpop.f32.mrb[110].mxu0  ;;  %v6787_v55 = vpop.f32.mrb[108].mxu1 }
 0x23d   : > { %v6679_v25 = vpop.f32.mrb[111].mxu0  ;;  %v6788_v27 = vpop.f32.mrb[109].mxu1 }
 0x23e   : > { %v2730_v7 = vadd.f32 %v6677_v31, %v9652_v62  ;;  %v6680_v56 = vadd.f32 %v6679_v25, %v6678_v33  ;;  %v6789_v26 = vadd.f32 %v6788_v27, %v6787_v55  ;;  %v6790_v14 = vpop.f32.mrb[110].mxu1 }
 0x23f   : > { %v6791_v43 = vpop.f32.mrb[111].mxu1 }
 0x240   : > { %v2733_v57 = vadd.f32 %v6680_v56, %v9654_v35  ;;  %v6792_v19 = vadd.f32 %v6791_v43, %v6790_v14  ;;  %v9751_v32 = vadd.f32 %v6789_v26, %v2730_v7 }
 0x242   : > { %v6681_v45 = vpop.f32.mrb[112].mxu0  ;;  %v9753_v0 = vadd.f32 %v6792_v19, %v2733_v57 }
 0x243   : > { %v6682_v40 = vpop.f32.mrb[113].mxu0 }
 0x244   : > { %v6683_v2 = vadd.f32 %v6682_v40, %v6681_v45  ;;  %v6684_v15 = vpop.f32.mrb[114].mxu0  ;;  %v6793_v11 = vpop.f32.mrb[112].mxu1 }
 0x245   : > { %v6685_v42 = vpop.f32.mrb[115].mxu0  ;;  %v6794_v33 = vpop.f32.mrb[113].mxu1 }
 0x246   : > { %v2738_v62 = vadd.f32 %v6683_v2, %v9660_v16  ;;  %v6686_v31 = vadd.f32 %v6685_v42, %v6684_v15  ;;  %v6795_v55 = vadd.f32 %v6794_v33, %v6793_v11  ;;  %v6796_v25 = vpop.f32.mrb[114].mxu1 }
 0x247   : > { %v6797_v56 = vpop.f32.mrb[115].mxu1 }
 0x248   : > { %v2741_v35 = vadd.f32 %v6686_v31, %v9662_v53  ;;  %v6798_v27 = vadd.f32 %v6797_v56, %v6796_v25  ;;  %v9757_v7 = vadd.f32 %v6795_v55, %v2738_v62 }
 0x24a   : > { %v6687_v26 = vpop.f32.mrb[116].mxu0  ;;  %v9759_v57 = vadd.f32 %v6798_v27, %v2741_v35 }
 0x24b   : > { %v6688_v14 = vpop.f32.mrb[117].mxu0 }
 0x24c   : > { %v6689_v43 = vadd.f32 %v6688_v14, %v6687_v26  ;;  %v6690_v19 = vpop.f32.mrb[118].mxu0  ;;  %v6799_v45 = vpop.f32.mrb[116].mxu1 }
 0x24d   : > { %v6691_v40 = vpop.f32.mrb[119].mxu0  ;;  %v6800_v15 = vpop.f32.mrb[117].mxu1 }
 0x24e   : > { %v2746_v16 = vadd.f32 %v6689_v43, %v9666_v44  ;;  %v6692_v2 = vadd.f32 %v6691_v40, %v6690_v19  ;;  %v6801_v11 = vadd.f32 %v6800_v15, %v6799_v45  ;;  %v6802_v42 = vpop.f32.mrb[118].mxu1 }
 0x24f   : > { %v6803_v31 = vpop.f32.mrb[119].mxu1 }
 0x250   : > { %v2749_v53 = vadd.f32 %v6692_v2, %v9668_v54  ;;  %v6804_v33 = vadd.f32 %v6803_v31, %v6802_v42  ;;  %v9763_v62 = vadd.f32 %v6801_v11, %v2746_v16 }
 0x252   : > { %v6693_v55 = vpop.f32.mrb[120].mxu0  ;;  %v9765_v35 = vadd.f32 %v6804_v33, %v2749_v53 }
 0x253   : > { %v6694_v25 = vpop.f32.mrb[121].mxu0 }
 0x254   : > { %v6695_v56 = vadd.f32 %v6694_v25, %v6693_v55  ;;  %v6696_v27 = vpop.f32.mrb[122].mxu0  ;;  %v6805_v26 = vpop.f32.mrb[120].mxu1 }
 0x255   : > { %v6697_v14 = vpop.f32.mrb[123].mxu0  ;;  %v6806_v19 = vpop.f32.mrb[121].mxu1 }
 0x256   : > { %v2754_v44 = vadd.f32 %v6695_v56, %v9672_v60  ;;  %v6698_v43 = vadd.f32 %v6697_v14, %v6696_v27  ;;  %v6807_v45 = vadd.f32 %v6806_v19, %v6805_v26  ;;  %v6808_v40 = vpop.f32.mrb[122].mxu1  ;;  %v7600_v19 = vld [vmem:[#allocation8 + $0x1c0] sm:$0xff]  }
 0x257   : > { %v6809_v2 = vpop.f32.mrb[123].mxu1  ;;  %7177 = vmatprep.subr.bf16.mxu0 %v7600_v19 }
 0x258   : > { %v2757_v54 = vadd.f32 %v6698_v43, %v9674_v9  ;;  %v6810_v15 = vadd.f32 %v6809_v2, %v6808_v40  ;;  %v9769_v16 = vadd.f32 %v6807_v45, %v2754_v44 }
 0x25a   : > { %v6699_v11 = vpop.f32.mrb[124].mxu0  ;;  %v9771_v53 = vadd.f32 %v6810_v15, %v2757_v54 }
 0x25b   : > { %v6700_v42 = vpop.f32.mrb[125].mxu0 }
 0x25c   : > { %v6701_v31 = vadd.f32 %v6700_v42, %v6699_v11  ;;  %v6702_v33 = vpop.f32.mrb[126].mxu0  ;;  %v6811_v55 = vpop.f32.mrb[124].mxu1 }
 0x25d   : > { %v6703_v25 = vpop.f32.mrb[127].mxu0  ;;  %v6812_v27 = vpop.f32.mrb[125].mxu1 }
 0x25e   : > { %v2762_v60 = vadd.f32 %v6701_v31, %v9678_v4  ;;  %v6704_v56 = vadd.f32 %v6703_v25, %v6702_v33  ;;  %v6813_v26 = vadd.f32 %v6812_v27, %v6811_v55  ;;  %v6814_v14 = vpop.f32.mrb[126].mxu1  ;;  %v7850_v31 = vmov 0.0  }
 0x25f   : > { %v6815_v43 = vpop.f32.mrb[127].mxu1  ;;  %v9781_v33 = vrot.slane %v7850_v31, 7 }
 0x260   : > { %v2765_v9 = vadd.f32 %v6704_v56, %v9680_v29  ;;  %v6816_v44 = vadd.f32 %v6815_v43, %v6814_v14  ;;  %v9775_v45 = vadd.f32 %v6813_v26, %v2762_v60  ;;  %v9783_v29 = vrot.slane %v7850_v31, 1 }
 0x261   : > { %11417 = vst [vmem:[#allocation33_spill] sm:$0xff] %v9781_v33 }
 0x262   : > { %v7331_v40 = vpop.f32.mrb[128].mxu0  ;;  %v9778_v15 = vadd.f32 %v6816_v44, %v2765_v9  ;;  %11418 = vst [vmem:[#allocation30_spill] sm:$0xff] %v9783_v29 }
 0x263   : > { %v2972_v54 = vadd.f32 %v7331_v40, %v9690_v24  ;;  %v2963_v2 = vpop.f32.mrb[129].mxu0 }
 0x264   : > { %v2964_v4 = vadd.f32 %v2963_v2, %v9684_v37  ;;  %v7332_v11 = vpop.f32.mrb[130].mxu0 }
 0x265   : > { %v3092_v42 = vmax.f32 %v2972_v54, 0.0  ;;  %v2975_v55 = vadd.f32 %v7332_v11, %v9692_v18  ;;  %v2966_v25 = vpop.f32.mrb[131].mxu0 }
 0x266   : > { %v3090_v60 = vmax.f32 %v2964_v4, 0.0  ;;  %v2967_v56 = vadd.f32 %v2966_v25, %v9686_v63 }
 0x267   : > { %v3261_v27 = vrot.slane %v3092_v42, 7  ;;  %v3357_v24 = vrot.slane %v3092_v42, 1  ;;  %v3093_v26 = vmax.f32 %v2975_v55, 0.0 }
 0x268   : > { %v3091_v14 = vmax.f32 %v2967_v56, 0.0  ;;  %v9797_v43 = vrot.slane %v3090_v60, 7  ;;  %v9801_v19 = vrot.slane %v3090_v60, 1 }
 0x269   : > { %v9790_v37 = vsel %vm11419_vm12, %v9781_v33, %v3261_v27  ;;  %v9795_v9 = vsel %vm11412_vm5, %v9783_v29, %v3357_v24  ;;  %v3262_v18 = vrot.slane %v3093_v26, 7  ;;  %v3358_v2 = vrot.slane %v3093_v26, 1  ;;  %vm11423_vm5 = vmmov %vm11419_vm12 }
 0x26a   : > { %11420 = vst [vmem:[#allocation38_spill] sm:$0xff] %v9790_v37  ;;  %11421 = vst [vmem:[#allocation36_spill] sm:$0xff] %v9795_v9  ;;  %v3260_v44 = vrot.slane %v3091_v14, 7  ;;  %v3356_v40 = vrot.slane %v3091_v14, 1  ;;  %v7335_v54 = vpop.f32.mrb[132].mxu0  ;;  %v9804_v31 = vpack.c.bf16 %v3091_v14, %v3090_v60 }
 0x26b   : > { %v2988_v4 = vadd.f32 %v7335_v54, %v9702_v38  ;;  %v2979_v11 = vpop.f32.mrb[133].mxu0  ;;  %v9808_v55 = vsel %vm11419_vm12, %v3261_v27, %v3262_v18  ;;  %vm11424_vm2 = vmmov %vm11423_vm5 }
 0x26c   : > { %11422 = vst [vmem:[#allocation50_spill] sm:$0xff] %v9808_v55  ;;  %v2980_v25 = vadd.f32 %v2979_v11, %v9696_v28  ;;  %v7336_v56 = vpop.f32.mrb[134].mxu0  ;;  %v9814_v63 = vsel %vm11423_vm5, %v9797_v43, %v3260_v44  ;;  %v3316_v51 = vsel %vm11424_vm2, %v3260_v44, %v3261_v27  ;;  %vm11425_vm12 = vmmov %vm11424_vm2  ;;  %vm11426_vm2 = vcmp.lt.s32.totalorder %v8070_v23, 7 }
 0x26d   : > { %v3096_v60 = vmax.f32 %v2988_v4, 0.0  ;;  %v2991_v14 = vadd.f32 %v7336_v56, %v9704_v20  ;;  %v2982_v54 = vpop.f32.mrb[135].mxu0  ;;  %v9822_v9 = vpack.c.bf16 %v9808_v55, %v3316_v51  ;;  %v9828_v28 = vsel %vm11425_vm12, %v9781_v33, %v9797_v43  ;;  %vm11427_vm5 = vmmov %vm11426_vm2 }
 0x26e   : > { %v3094_v11 = vmax.f32 %v2980_v25, 0.0  ;;  %v2983_v36 = vadd.f32 %v2982_v54, %v9698_v59  ;;  %v3412_v44 = vsel %vm11426_vm2, %v3356_v40, %v3357_v24  ;;  %v3413_v51 = vsel %vm11427_vm5, %v9801_v19, %v3356_v40  ;;  %vm11428_vm12 = vmmov %vm11426_vm2 }
 0x26f   : > { %v3265_v20 = vrot.slane %v3096_v60, 7  ;;  %v3361_v4 = vrot.slane %v3096_v60, 1  ;;  %v3097_v56 = vmax.f32 %v2991_v14, 0.0  ;;  %v9838_v52 = vpack.c.bf16 %v3412_v44, %v3413_v51 }
 0x270   : > { %v3263_v38 = vrot.slane %v3094_v11, 7  ;;  %v3359_v37 = vrot.slane %v3094_v11, 1  ;;  %v3095_v55 = vmax.f32 %v2983_v36, 0.0  ;;  %v9840_v54 = vpack.c.bf16 %v3093_v26, %v3092_v42 }
 0x271   : > { %v3266_v25 = vrot.slane %v3097_v56, 7  ;;  %v3362_v59 = vrot.slane %v3097_v56, 1  ;;  %v3411_v27 = vsel %vm11428_vm12, %v3357_v24, %v3358_v2  ;;  %vm11429_vm2 = vcmp.lt.s32.totalorder %v8070_v23, 1 }
 0x272   : > { %v3264_v49 = vrot.slane %v3095_v55, 7  ;;  %v3360_v1 = vrot.slane %v3095_v55, 1  ;;  %v7339_v13 = vpop.f32.mrb[136].mxu0  ;;  %v3314_v14 = vsel %vm11429_vm2, %v3262_v18, %v3263_v38  ;;  %v3410_v40 = vsel %vm11427_vm5, %v3358_v2, %v3359_v37  ;;  %vm11430_vm6 = vmmov %vm11429_vm2 }
 0x273   : > { %v3004_v36 = vadd.f32 %v7339_v13, %v9714_v17  ;;  %v2995_v44 = vpop.f32.mrb[137].mxu0  ;;  %v9849_v51 = vpack.c.bf16 %v3410_v40, %v3411_v27  ;;  %v9851_v39 = vpack.c.bf16 %v3095_v55, %v3094_v11  ;;  %v3311_v42 = vsel %vm11430_vm6, %v3265_v20, %v3266_v25  ;;  %vm11431_vm12 = vmmov %vm11429_vm2 }
 0x274   : > { %v2996_v24 = vadd.f32 %v2995_v44, %v9708_v5  ;;  %v7340_v26 = vpop.f32.mrb[138].mxu0  ;;  %v3313_v12 = vsel %vm11431_vm12, %v3263_v38, %v3264_v49  ;;  %v3312_v18 = vsel %vm11429_vm2, %v3264_v49, %v3265_v20  ;;  %v3408_v13 = vsel %vm11427_vm5, %v3360_v1, %v3361_v4  ;;  %vm11432_vm6 = vmmov %vm11427_vm5 }
 0x275   : > { %v3100_v17 = vmax.f32 %v3004_v36, 0.0  ;;  %v3007_v2 = vadd.f32 %v7340_v26, %v9716_v3  ;;  %v2998_v55 = vpop.f32.mrb[139].mxu0  ;;  %v9863_v11 = vpack.c.bf16 %v3313_v12, %v3314_v14  ;;  %v9865_v27 = vpack.c.bf16 %v3311_v42, %v3312_v18  ;;  %vm11433_vm12 = vmmov %vm11427_vm5 }
 0x276   : > { %v3098_v40 = vmax.f32 %v2996_v24, 0.0  ;;  %v2999_v5 = vadd.f32 %v2998_v55, %v9710_v8  ;;  %v3409_v38 = vsel %vm11432_vm6, %v3359_v37, %v3360_v1  ;;  %v9870_v44 = vpack.c.bf16 %v3097_v56, %v3096_v60  ;;  %vm11434_vm6 = vmmov %vm11429_vm2 }
 0x277   : > { %v3269_v49 = vrot.slane %v3100_v17, 7  ;;  %v3101_v20 = vmax.f32 %v3007_v2, 0.0  ;;  %v9872_v34 = vpack.c.bf16 %v3408_v13, %v3409_v38  ;;  %v3407_v12 = vsel %vm11433_vm12, %v3361_v4, %v3362_v59  ;;  %vm11435_vm12 = vmmov %vm11429_vm2 }
 0x278   : > { %v3267_v36 = vrot.slane %v3098_v40, 7  ;;  %v3363_v6 = vrot.slane %v3098_v40, 1  ;;  %v3099_v3 = vmax.f32 %v2999_v5, 0.0  ;;  %v3365_v14 = vrot.slane %v3100_v17, 1 }
 0x279   : > { %v3270_v42 = vrot.slane %v3101_v20, 7  ;;  %v3366_v24 = vrot.slane %v3101_v20, 1  ;;  %v9876_v26 = vpack.c.bf16 %v3101_v20, %v3100_v17 }
 0x27a   : > { %v3268_v8 = vrot.slane %v3099_v3, 7  ;;  %v3364_v18 = vrot.slane %v3099_v3, 1  ;;  %v7343_v1 = vpop.f32.mrb[140].mxu0  ;;  %v3310_v37 = vsel %vm11429_vm2, %v3266_v25, %v3267_v36  ;;  %v3406_v60 = vsel %vm11427_vm5, %v3362_v59, %v3363_v6 }
 0x27b   : > { %v3020_v56 = vadd.f32 %v7343_v1, %v9726_v46  ;;  %v3011_v13 = vpop.f32.mrb[141].mxu0  ;;  %v9883_v2 = vpack.c.bf16 %v3406_v60, %v3407_v12  ;;  %v9885_v4 = vpack.c.bf16 %v3099_v3, %v3098_v40  ;;  %v3307_v17 = vsel %vm11434_vm6, %v3269_v49, %v3270_v42  ;;  %vm11436_vm6 = vmmov %vm11427_vm5 }
 0x27c   : > { %v3012_v55 = vadd.f32 %v3011_v13, %v9720_v50  ;;  %v7344_v5 = vpop.f32.mrb[142].mxu0  ;;  %v3309_v38 = vsel %vm11435_vm12, %v3267_v36, %v3268_v8  ;;  %v3308_v25 = vsel %vm11429_vm2, %v3268_v8, %v3269_v49  ;;  %v3404_v46 = vsel %vm11427_vm5, %v3364_v18, %v3365_v14  ;;  %vm11437_vm12 = vmmov %vm11427_vm5 }
 0x27d   : > { %v3104_v59 = vmax.f32 %v3020_v56, 0.0  ;;  %v3023_v20 = vadd.f32 %v7344_v5, %v9728_v21  ;;  %v3014_v40 = vpop.f32.mrb[143].mxu0  ;;  %v9897_v3 = vpack.c.bf16 %v3309_v38, %v3310_v37  ;;  %v9899_v12 = vpack.c.bf16 %v3307_v17, %v3308_v25 }
 0x27e   : > { %v3102_v1 = vmax.f32 %v3012_v55, 0.0  ;;  %v3015_v50 = vadd.f32 %v3014_v40, %v9722_v48  ;;  %v3405_v36 = vsel %vm11436_vm6, %v3363_v6, %v3364_v18  ;;  %v3403_v49 = vsel %vm11437_vm12, %v3365_v14, %v3366_v24  ;;  %vm11440_vm6 = vmmov %vm11429_vm2 }
 0x27f   : > { %v3105_v8 = vmax.f32 %v3023_v20, 0.0  ;;  %v9906_v60 = vpack.c.bf16 %v3404_v46, %v3405_v36  ;;  %v3273_v56 = vrot.slane %v3104_v59, 7  ;;  %v3369_v37 = vrot.slane %v3104_v59, 1  ;;  %vm11441_vm12 = vmmov %vm11429_vm2 }
 0x280   : > { %v3271_v13 = vrot.slane %v3102_v1, 7  ;;  %v3367_v21 = vrot.slane %v3102_v1, 1  ;;  %v3103_v5 = vmax.f32 %v3015_v50, 0.0 }
 0x281   : > { %v3274_v38 = vrot.slane %v3105_v8, 7  ;;  %v3370_v17 = vrot.slane %v3105_v8, 1  ;;  %v9908_v25 = vpack.c.bf16 %v3105_v8, %v3104_v59 }
 0x282   : > { %v3272_v55 = vrot.slane %v3103_v5, 7  ;;  %v3368_v48 = vrot.slane %v3103_v5, 1  ;;  %v7347_v40 = vpop.f32.mrb[144].mxu0  ;;  %v3306_v6 = vsel %vm11429_vm2, %v3270_v42, %v3271_v13  ;;  %v3402_v14 = vsel %vm11427_vm5, %v3366_v24, %v3367_v21 }
 0x283   : > { %11438 = vst [vmem:[#allocation42_spill] sm:$0xff] %v9908_v25  ;;  %v3036_v18 = vadd.f32 %v7347_v40, %v9739_v22  ;;  %v3027_v46 = vpop.f32.mrb[145].mxu0  ;;  %v9915_v20 = vpack.c.bf16 %v3402_v14, %v3403_v49  ;;  %v9917_v50 = vpack.c.bf16 %v3103_v5, %v3102_v1  ;;  %v3303_v59 = vsel %vm11440_vm6, %v3273_v56, %v3274_v38  ;;  %vm11442_vm6 = vmmov %vm11427_vm5 }
 0x284   : > { %v3028_v36 = vadd.f32 %v3027_v46, %v9733_v30  ;;  %v7348_v8 = vpop.f32.mrb[146].mxu0  ;;  %v3305_v25 = vsel %vm11441_vm12, %v3271_v13, %v3272_v55  ;;  %v3304_v42 = vsel %vm11429_vm2, %v3272_v55, %v3273_v56  ;;  %v3400_v22 = vsel %vm11427_vm5, %v3368_v48, %v3369_v37  ;;  %vm11443_vm12 = vmmov %vm11427_vm5 }
 0x285   : > { %11439 = vst [vmem:[#allocation27_spill] sm:$0xff] %v9917_v50  ;;  %v3108_v24 = vmax.f32 %v3036_v18, 0.0  ;;  %v3039_v49 = vadd.f32 %v7348_v8, %v9741_v58  ;;  %v3030_v1 = vpop.f32.mrb[147].mxu0  ;;  %v9929_v5 = vpack.c.bf16 %v3305_v25, %v3306_v6  ;;  %v9931_v40 = vpack.c.bf16 %v3303_v59, %v3304_v42 }
 0x286   : > { %v3106_v14 = vmax.f32 %v3028_v36, 0.0  ;;  %v3031_v30 = vadd.f32 %v3030_v1, %v9735_v61  ;;  %v3401_v13 = vsel %vm11442_vm6, %v3367_v21, %v3368_v48  ;;  %v3399_v56 = vsel %vm11443_vm12, %v3369_v37, %v3370_v17  ;;  %vm11446_vm6 = vmmov %vm11429_vm2 }
 0x287   : > { %v3109_v55 = vmax.f32 %v3039_v49, 0.0  ;;  %v9938_v46 = vpack.c.bf16 %v3400_v22, %v3401_v13  ;;  %v3277_v18 = vrot.slane %v3108_v24, 7  ;;  %v3373_v25 = vrot.slane %v3108_v24, 1  ;;  %vm11447_vm12 = vmmov %vm11429_vm2 }
 0x288   : > { %v3275_v50 = vrot.slane %v3106_v14, 7  ;;  %v3371_v58 = vrot.slane %v3106_v14, 1  ;;  %v3107_v8 = vmax.f32 %v3031_v30, 0.0 }
 0x289   : > { %v3278_v6 = vrot.slane %v3109_v55, 7  ;;  %v3374_v59 = vrot.slane %v3109_v55, 1  ;;  %v9940_v42 = vpack.c.bf16 %v3109_v55, %v3108_v24 }
 0x28a   : > { %v3276_v36 = vrot.slane %v3107_v8, 7  ;;  %v3372_v61 = vrot.slane %v3107_v8, 1  ;;  %v7351_v1 = vpop.f32.mrb[148].mxu0  ;;  %v3302_v21 = vsel %vm11429_vm2, %v3274_v38, %v3275_v50  ;;  %v3398_v37 = vsel %vm11427_vm5, %v3370_v17, %v3371_v58 }
 0x28b   : > { %11444 = vst [vmem:[#allocation47_spill] sm:$0xff] %v9940_v42  ;;  %v3052_v48 = vadd.f32 %v7351_v1, %v9751_v32  ;;  %v3043_v22 = vpop.f32.mrb[149].mxu0  ;;  %v9947_v49 = vpack.c.bf16 %v3398_v37, %v3399_v56  ;;  %v9949_v30 = vpack.c.bf16 %v3107_v8, %v3106_v14  ;;  %v3299_v24 = vsel %vm11446_vm6, %v3277_v18, %v3278_v6  ;;  %vm11449_vm6 = vmmov %vm11427_vm5 }
 0x28c   : > { %v3044_v13 = vadd.f32 %v3043_v22, %v9745_v10  ;;  %v7352_v55 = vpop.f32.mrb[150].mxu0  ;;  %v3301_v42 = vsel %vm11447_vm12, %v3275_v50, %v3276_v36  ;;  %v3300_v38 = vsel %vm11429_vm2, %v3276_v36, %v3277_v18  ;;  %v3396_v32 = vsel %vm11427_vm5, %v3372_v61, %v3373_v25  ;;  %vm11450_vm12 = vmmov %vm11427_vm5 }
 0x28d   : > { %11445 = vst [vmem:[#allocation55_spill] sm:$0xff] %v9949_v30  ;;  %v3112_v17 = vmax.f32 %v3052_v48, 0.0  ;;  %v3055_v56 = vadd.f32 %v7352_v55, %v9753_v0  ;;  %v3046_v14 = vpop.f32.mrb[151].mxu0  ;;  %v9961_v8 = vpack.c.bf16 %v3301_v42, %v3302_v21  ;;  %v9963_v1 = vpack.c.bf16 %v3299_v24, %v3300_v38 }
 0x28e   : > { %v3110_v37 = vmax.f32 %v3044_v13, 0.0  ;;  %v3047_v10 = vadd.f32 %v3046_v14, %v9747_v47  ;;  %v3397_v50 = vsel %vm11449_vm6, %v3371_v58, %v3372_v61  ;;  %v3395_v18 = vsel %vm11450_vm12, %v3373_v25, %v3374_v59  ;;  %vm11452_vm6 = vmmov %vm11429_vm2 }
 0x28f   : > { %11448 = vst [vmem:[#allocation53_spill] sm:$0xff] %v9963_v1  ;;  %v3113_v36 = vmax.f32 %v3055_v56, 0.0  ;;  %v9970_v22 = vpack.c.bf16 %v3396_v32, %v3397_v50  ;;  %v3281_v48 = vrot.slane %v3112_v17, 7  ;;  %v3377_v42 = vrot.slane %v3112_v17, 1  ;;  %vm11453_vm12 = vmmov %vm11429_vm2 }
 0x290   : > { %v3279_v30 = vrot.slane %v3110_v37, 7  ;;  %v3375_v0 = vrot.slane %v3110_v37, 1  ;;  %v3111_v55 = vmax.f32 %v3047_v10, 0.0 }
 0x291   : > { %v3282_v21 = vrot.slane %v3113_v36, 7  ;;  %v3378_v24 = vrot.slane %v3113_v36, 1  ;;  %v9972_v38 = vpack.c.bf16 %v3113_v36, %v3112_v17 }
 0x292   : > { %v3280_v13 = vrot.slane %v3111_v55, 7  ;;  %v3376_v47 = vrot.slane %v3111_v55, 1  ;;  %v7355_v14 = vpop.f32.mrb[152].mxu0  ;;  %v3298_v58 = vsel %vm11429_vm2, %v3278_v6, %v3279_v30  ;;  %v3394_v25 = vsel %vm11427_vm5, %v3374_v59, %v3375_v0 }
 0x293   : > { %11451 = vst [vmem:[#allocation51_spill] sm:$0xff] %v9972_v38  ;;  %v3068_v61 = vadd.f32 %v7355_v14, %v9763_v62  ;;  %v3059_v32 = vpop.f32.mrb[153].mxu0  ;;  %v9979_v56 = vpack.c.bf16 %v3394_v25, %v3395_v18  ;;  %v9981_v10 = vpack.c.bf16 %v3111_v55, %v3110_v37  ;;  %v3295_v17 = vsel %vm11452_vm6, %v3281_v48, %v3282_v21  ;;  %vm11455_vm6 = vmmov %vm11427_vm5 }
 0x294   : > { %v3060_v50 = vadd.f32 %v3059_v32, %v9757_v7  ;;  %v7356_v36 = vpop.f32.mrb[154].mxu0  ;;  %v3297_v38 = vsel %vm11453_vm12, %v3279_v30, %v3280_v13  ;;  %v3296_v6 = vsel %vm11429_vm2, %v3280_v13, %v3281_v48  ;;  %v3392_v62 = vsel %vm11427_vm5, %v3376_v47, %v3377_v42  ;;  %vm11456_vm12 = vmmov %vm11427_vm5 }
 0x295   : > { %v3116_v59 = vmax.f32 %v3068_v61, 0.0  ;;  %v3071_v18 = vadd.f32 %v7356_v36, %v9765_v35  ;;  %v3062_v37 = vpop.f32.mrb[155].mxu0  ;;  %v9993_v55 = vpack.c.bf16 %v3297_v38, %v3298_v58  ;;  %v9995_v14 = vpack.c.bf16 %v3295_v17, %v3296_v6  ;;  %vm11457_vm2 = vmmov %vm11427_vm5 }
 0x296   : > { %v3114_v25 = vmax.f32 %v3060_v50, 0.0  ;;  %v3063_v7 = vadd.f32 %v3062_v37, %v9759_v57  ;;  %v3393_v30 = vsel %vm11455_vm6, %v3375_v0, %v3376_v47  ;;  %v3391_v48 = vsel %vm11456_vm12, %v3377_v42, %v3378_v24  ;;  %vm11461_vm6 = vmmov %vm11457_vm2 }
 0x297   : > { %11454 = vst [vmem:[#allocation59_spill] sm:$0xff] %v9995_v14  ;;  %v10006_v13 = vsel %vm11457_vm2, %v9783_v29, %v9801_v19  ;;  %v3117_v35 = vmax.f32 %v3071_v18, 0.0  ;;  %v10008_v38 = vpack.c.bf16 %v3392_v62, %v3393_v30  ;;  %v3285_v58 = vrot.slane %v3116_v59, 7 }
 0x298   : > { %v3283_v61 = vrot.slane %v3114_v25, 7  ;;  %v3379_v32 = vrot.slane %v3114_v25, 1  ;;  %v3115_v17 = vmax.f32 %v3063_v7, 0.0  ;;  %v3381_v57 = vrot.slane %v3116_v59, 1 }
 0x299   : > { %11458 = vst [vmem:[#allocation57_spill] sm:$0xff] %v10008_v38  ;;  %v3286_v50 = vrot.slane %v3117_v35, 7  ;;  %v3382_v36 = vrot.slane %v3117_v35, 1  ;;  %v10010_v0 = vpack.c.bf16 %v3117_v35, %v3116_v59  ;;  %vm11460_vm5 = vcmp.lt.s32.totalorder %v8070_v23, 1 }
 0x29a   : > { %v3284_v47 = vrot.slane %v3115_v17, 7  ;;  %v3380_v42 = vrot.slane %v3115_v17, 1  ;;  %v7359_v6 = vpop.f32.mrb[156].mxu0  ;;  %v3294_v37 = vsel %vm11460_vm5, %v3282_v21, %v3283_v61  ;;  %v3390_v18 = vsel %vm11461_vm6, %v3378_v24, %v3379_v32  ;;  %vm11462_vm12 = vmmov %vm11460_vm5 }
 0x29b   : > { %11459 = vst [vmem:[#allocation54_spill] sm:$0xff] %v10010_v0  ;;  %v3084_v62 = vadd.f32 %v7359_v6, %v9775_v45  ;;  %v3075_v30 = vpop.f32.mrb[157].mxu0  ;;  %v10017_v38 = vpack.c.bf16 %v3390_v18, %v3391_v48  ;;  %v10019_v7 = vpack.c.bf16 %v3115_v17, %v3114_v25  ;;  %v3291_v59 = vsel %vm11462_vm12, %v3285_v58, %v3286_v50  ;;  %vm11463_vm2 = vmmov %vm11460_vm5 }
 0x29c   : > { %v3076_v35 = vadd.f32 %v3075_v30, %v9769_v16  ;;  %v7360_v0 = vpop.f32.mrb[158].mxu0  ;;  %v3293_v14 = vsel %vm11463_vm2, %v3283_v61, %v3284_v47  ;;  %vm11464_vm5 = vmmov %vm11463_vm2  ;;  %v3388_v45 = vsel %vm11461_vm6, %v3380_v42, %v3381_v57 }
 0x29d   : > { %v3292_v21 = vsel %vm11464_vm5, %v3284_v47, %v3285_v58  ;;  %v3120_v24 = vmax.f32 %v3084_v62, 0.0  ;;  %v3087_v48 = vadd.f32 %v7360_v0, %v9778_v15  ;;  %v3078_v25 = vpop.f32.mrb[159].mxu0  ;;  %v10031_v17 = vpack.c.bf16 %v3293_v14, %v3294_v37  ;;  %vm11465_vm12 = vmmov %vm11461_vm6 }
 0x29e   : > { %v10033_v6 = vpack.c.bf16 %v3291_v59, %v3292_v21  ;;  %v3118_v18 = vmax.f32 %v3076_v35, 0.0  ;;  %v3079_v16 = vadd.f32 %v3078_v25, %v9771_v53  ;;  %v3389_v61 = vsel %vm11465_vm12, %v3379_v32, %v3380_v42  ;;  %vm11466_vm2 = vmmov %vm11461_vm6 }
 0x29f   : > { %v3387_v58 = vsel %vm11466_vm2, %v3381_v57, %v3382_v36  ;;  %v6127_v47 = vpack.c.bf16 %v10006_v13, %v9783_v29  ;;  %v3121_v62 = vmax.f32 %v3087_v48, 0.0  ;;  %v10042_v30 = vpack.c.bf16 %v3388_v45, %v3389_v61  ;;  %vm11468_vm6 = vmmov %vm11466_vm2 }
 0x2a0   : > { %v3527_v15 = vrot.slane %v3120_v24, 7  ;;  %v3287_v14 = vrot.slane %v3118_v18, 7  ;;  %v3383_v0 = vrot.slane %v3118_v18, 1  ;;  %v3119_v37 = vmax.f32 %v3079_v16, 0.0  ;;  %vm11469_vm12 = vmmov %vm11464_vm5  ;;  %v7594_v16 = vld [vmem:[#allocation8 + $0x148] sm:$0xff]  }
 0x2a1   : > { %v3623_v59 = vrot.slane %v3120_v24, 1  ;;  %v3528_v35 = vrot.slane %v3121_v62, 7  ;;  %v3624_v21 = vrot.slane %v3121_v62, 1  ;;  %v10044_v53 = vpack.c.bf16 %v3121_v62, %v3120_v24  ;;  %vm11471_vm2 = vmmov %vm11464_vm5 }
 0x2a2   : > { %v3288_v25 = vrot.slane %v3119_v37, 7  ;;  %v3384_v32 = vrot.slane %v3119_v37, 1  ;;  %v3290_v57 = vsel %vm11464_vm5, %v3286_v50, %v3287_v14  ;;  %v3386_v13 = vsel %vm11468_vm6, %v3382_v36, %v3383_v0  ;;  %vm11473_vm5 = vmmov %vm11471_vm2 }
 0x2a3   : > { %11467 = vst [vmem:[#allocation61_spill] sm:$0xff] %v10044_v53  ;;  %v10053_v42 = vsel %vm11469_vm12, %v3528_v35, %v9781_v33  ;;  %v3560_v45 = vsel %vm11471_vm2, %v3528_v35, %v9797_v43  ;;  %v10058_v48 = vpack.c.bf16 %v3386_v13, %v3387_v58  ;;  %v10060_v24 = vpack.c.bf16 %v3119_v37, %v3118_v18  ;;  %vm11474_vm6 = vmmov %vm11471_vm2  ;;  %v7593_v53 = vld [vmem:[#allocation8 + $0x100] sm:$0xff]  }
 0x2a4   : > { %11470 = vst [vmem:[#allocation62_spill] sm:$0xff] %v10053_v42  ;;  %v3320_v50 = vsel %vm11473_vm5, %v3288_v25, %v9781_v33  ;;  %v6124_v36 = vpack.c.bf16 %v9814_v63, %v3560_v45  ;;  %v3289_v61 = vsel %vm11474_vm6, %v3287_v14, %v3288_v25  ;;  %v7601_v43 = vld [vmem:[#allocation8 + $0x180] sm:$0xff]   ;;  %vm11475_vm12 = vmmov %vm11471_vm2  ;;  %v3530_v37 = vsel %vm11471_vm2, %v3288_v25, %v3527_v15  ;;  %v7604_v45 = vld [vmem:[#allocation8 + $0x1c8] sm:$0xff]  }
 0x2a5   : > { %11472 = vst [vmem:[#allocation35_spill] sm:$0xff] %v10060_v24  ;;  %v6076_v62 = vpack.c.bf16 %v9781_v33, %v3320_v50  ;;  %v10071_v58 = vpack.c.bf16 %v3289_v61, %v3290_v57  ;;  %v3529_v18 = vsel %vm11475_vm12, %v3527_v15, %v3528_v35  ;;  %v11476_v13 = vld [vmem:[#allocation13_spill] sm:$0xff]  ;;  %vm11479_vm5 = vcmp.lt.s32.totalorder %v8070_v23, 7  ;;  %v7595_v61 = vld [vmem:[#allocation8 + $0x108] sm:$0xff]   ;;  %v7609_v23 = vld [vmem:[#allocation8 + $0x190] sm:$0xff]  }
 0x2a6   : > { %vm11477_vm0 = vnez %v11476_v13  ;;  %v10079_v42 = vpack.c.bf16 %v3529_v18, %v3530_v37  ;;  %v10083_v14 = vsel %vm11479_vm5, %v3383_v0, %v3384_v32  ;;  %vm11480_vm6 = vmmov %vm11479_vm5  ;;  %v7596_v37 = vld [vmem:[#allocation8 + $0x150] sm:$0xff]   ;;  %v11515_v25 = vld [vmem:[#allocation32_spill] sm:$0xff] }
 0x2a7   : > { %6125 = vmatprep.mubr.msk.bf16.mxu0 %vm11477_vm0, %v6124_v36  ;;  %v10088_v57 = vsel %vm11480_vm6, %v3384_v32, %v9783_v29  ;;  %vm11481_vm12 = vmmov %vm11479_vm5  ;;  %6077 = vmatmul.mubr.msk.bf16.vlgmr.msra.gmra.mrb[128].mxu1 %vm11477_vm0, %v6076_v62  ;;  %v7622_v62 = vld [vmem:[#allocation8 + $0x1f8] sm:$0xff]   ;;  %v11519_v33 = vld [vmem:[#allocation37_spill] sm:$0xff] }
 0x2a8   : > { %11478 = vst [vmem:[#allocation31_spill] sm:$0xff] %v10079_v42  ;;  %v3626_v35 = vsel %vm11481_vm12, %v3384_v32, %v3623_v59  ;;  %6128 = vmatmul.mubr.msk.bf16.vlgmr.msra.gmra.mrb[160].mxu0 %vm8150_vm7, %v6127_v47  ;;  %vm11484_vm2 = vmmov %vm11479_vm5  ;;  %4600 = vmatprep.mubr.bf16.mxu1 %v9804_v31  ;;  %v11486_v32 = vld [vmem:[#allocation15_spill] sm:$0xff] }
 0x2a9   : > { %v10099_v0 = vpack.c.bf16 %v3626_v35, %v10083_v14  ;;  %v10103_v50 = vsel %vm11484_vm2, %v3623_v59, %v3624_v21  ;;  %vm11487_vm5 = vnez %v11486_v32  ;;  %vm11488_vm6 = vmmov %vm11484_vm2  ;;  %7066 = vmatpush3.bf16.msra.mxu1 %v7593_v53  ;;  %7178 = vmatpush3.bf16.msra.mxu0 %v7601_v43  ;;  %v7605_v59 = vld [vmem:[#allocation8 + $0x188] sm:$0xff]   ;;  %v7597_v35 = vld [vmem:[#allocation8 + $0x110] sm:$0xff]   ;;  %v11492_v43 = vpack.c.bf16 %v9814_v63, %v9828_v28 }
 0x2aa   : > { %11485 = vst [vmem:[#allocation64_spill] sm:$0xff] %v10103_v50  ;;  %6131 = vmatprep.mubr.msk.bf16.mxu0 %vm11487_vm5, %v9822_v9  ;;  %v10112_v47 = vsel %vm11488_vm6, %v3624_v21, %v9801_v19  ;;  %vm11490_vm12 = vmmov %vm11484_vm2  ;;  %7067 = vmatprep.subr.bf16.mxu1 %v7594_v16  ;;  %v7608_v19 = vld [vmem:[#allocation8 + $0x1d0] sm:$0xff]   ;;  %v7612_v53 = vld [vmem:[#allocation8 + $0x1d8] sm:$0xff]  }
 0x2ab   : > { %11483 = vst [vmem:[#allocation63_spill] sm:$0xff] %v10099_v0  ;;  %11489 = vst [vmem:[#allocation65_spill] sm:$0xff] %v10112_v47  ;;  %v10117_v36 = vsel %vm11490_vm12, %v3624_v21, %v9783_v29  ;;  %7179 = vmatprep.subr.bf16.mxu0 %v7604_v45  ;;  %v7598_v21 = vld [vmem:[#allocation8 + $0x158] sm:$0xff]   ;;  %v11494_v16 = vld [vmem:[#allocation17_spill] sm:$0xff] }
 0x2ac   : > { %11491 = vst [vmem:[#allocation66_spill] sm:$0xff] %v10117_v36  ;;  %vm11495_vm2 = vnez %v11494_v16  ;;  %v7599_v45 = vld [vmem:[#allocation8 + $0x118] sm:$0xff]   ;;  %v7615_v63 = vld [vmem:[#allocation8 + $0x1e0] sm:$0xff]   ;;  %v11516_v29 = vld [vmem:[#allocation55_spill] sm:$0xff] }
 0x2ad   : > { %7068 = vmatpush3.bf16.msra.mxu1 %v7595_v61  ;;  %7180 = vmatpush3.bf16.msra.mxu0 %v7605_v59  ;;  %v7613_v61 = vld [vmem:[#allocation8 + $0x198] sm:$0xff]   ;;  %v7602_v59 = vld [vmem:[#allocation8 + $0x160] sm:$0xff]   ;;  %v11517_v36 = vld [vmem:[#allocation34_spill] sm:$0xff] }
 0x2ae   : > { %7069 = vmatprep.subr.bf16.mxu1 %v7596_v37  ;;  %7181 = vmatprep.subr.bf16.mxu0 %v7608_v19  ;;  %v7603_v28 = vld [vmem:[#allocation8 + $0x120] sm:$0xff]   ;;  %v7606_v19 = vld [vmem:[#allocation8 + $0x168] sm:$0xff]   ;;  %v11521_v50 = vld [vmem:[#allocation47_spill] sm:$0xff] }
 0x2af   : > { %6080 = vmatmul.mubr.msk.bf16.gmra.mrb[132].mxu1 %vm11487_vm5, %v11492_v43  ;;  %v7617_v37 = vld [vmem:[#allocation8 + $0x1a0] sm:$0xff]   ;;  %v7618_v43 = vld [vmem:[#allocation8 + $0x1e8] sm:$0xff]   ;;  %v11522_v47 = vld [vmem:[#allocation39_spill] sm:$0xff] }
 0x2b0   : > { %6134 = vmatmul.mubr.msk.bf16.gmra.mrb[164].mxu0 %vm8211_vm11, %v9838_v52  ;;  %4608 = vmatprep.mubr.bf16.mxu1 %v9840_v54  ;;  %v11524_v0 = vld [vmem:[#allocation40_spill] sm:$0xff] }
 0x2b1   : > { %6137 = vmatprep.mubr.msk.bf16.mxu0 %vm11495_vm2, %v9863_v11  ;;  %7070 = vmatpush3.bf16.msra.mxu1 %v7597_v35 }
 0x2b2   : > { %7182 = vmatpush3.bf16.msra.mxu0 %v7609_v23  ;;  %7071 = vmatprep.subr.bf16.mxu1 %v7598_v21  ;;  %v11497_v23 = vld [vmem:[#allocation19_spill] sm:$0xff]  ;;  %v7607_v21 = vld [vmem:[#allocation8 + $0x128] sm:$0xff]  }
 0x2b3   : > { %7183 = vmatprep.subr.bf16.mxu0 %v7612_v53  ;;  %vm11498_vm6 = vnez %v11497_v23  ;;  %v7619_v53 = vld [vmem:[#allocation8 + $0x1a8] sm:$0xff]  }
 0x2b5   : > { %7072 = vmatpush3.bf16.msra.mxu1 %v7599_v45  ;;  %v7610_v45 = vld [vmem:[#allocation8 + $0x170] sm:$0xff]  }
 0x2b6   : > { %7184 = vmatpush3.bf16.msra.mxu0 %v7613_v61  ;;  %7073 = vmatprep.subr.bf16.mxu1 %v7602_v59  ;;  %v7620_v61 = vld [vmem:[#allocation8 + $0x1f0] sm:$0xff]  }
 0x2b7   : > { %7185 = vmatprep.subr.bf16.mxu0 %v7615_v63  ;;  %6083 = vmatmul.mubr.msk.bf16.gmra.mrb[136].mxu1 %vm11495_vm2, %v9822_v9  ;;  %v7611_v9 = vld [vmem:[#allocation8 + $0x130] sm:$0xff]   ;;  %v7614_v63 = vld [vmem:[#allocation8 + $0x178] sm:$0xff]  }
 0x2b8   : > { %6140 = vmatmul.mubr.msk.bf16.gmra.mrb[168].mxu0 %vm8236_vm14, %v9849_v51  ;;  %4616 = vmatprep.mubr.bf16.mxu1 %v9851_v39  ;;  %v7621_v59 = vld [vmem:[#allocation8 + $0x1b0] sm:$0xff]  }
 0x2b9   : > { %6143 = vmatprep.mubr.msk.bf16.mxu0 %vm11498_vm6, %v9865_v27  ;;  %7074 = vmatpush3.bf16.msra.mxu1 %v7603_v28  ;;  %v11499_v28 = vld [vmem:[#allocation20_spill] sm:$0xff] }
 0x2ba   : > { %7186 = vmatpush3.bf16.msra.mxu0 %v7617_v37  ;;  %7075 = vmatprep.subr.bf16.mxu1 %v7606_v19  ;;  %vm11500_vm12 = vnez %v11499_v28  ;;  %v7616_v37 = vld [vmem:[#allocation8 + $0x138] sm:$0xff]  }
 0x2bb   : > { %7187 = vmatprep.subr.bf16.mxu0 %v7618_v43  ;;  %v7623_v19 = vld [vmem:[#allocation8 + $0x1b8] sm:$0xff]   ;;  %v7624_v43 = vld [vmem:[#allocation8 + $0x200] sm:$0xff]  }
 0x2bd   : > { %7076 = vmatpush3.bf16.msra.mxu1 %v7607_v21 }
 0x2be   : > { %7188 = vmatpush3.bf16.msra.mxu0 %v7619_v53  ;;  %7077 = vmatprep.subr.bf16.mxu1 %v7610_v45  ;;  %v11502_v53 = vld [vmem:[#allocation22_spill] sm:$0xff]  ;;  %v11505_v45 = vld [vmem:[#allocation24_spill] sm:$0xff] }
 0x2bf   : > { %7189 = vmatprep.subr.bf16.mxu0 %v7620_v61  ;;  %6086 = vmatmul.mubr.msk.bf16.gmra.mrb[140].mxu1 %vm11498_vm6, %v9863_v11  ;;  %vm11503_vm6 = vnez %v11502_v53  ;;  %v11507_v61 = vld [vmem:[#allocation25_spill] sm:$0xff] }
 0x2c0   : > { %6146 = vmatmul.mubr.msk.bf16.gmra.mrb[172].mxu0 %vm8304_vm9, %v9872_v34  ;;  %4624 = vmatprep.mubr.bf16.mxu1 %v9870_v44 }
 0x2c1   : > { %6149 = vmatprep.mubr.msk.bf16.mxu0 %vm11500_vm12, %v9897_v3  ;;  %7078 = vmatpush3.bf16.msra.mxu1 %v7611_v9  ;;  %v11508_v9 = vld [vmem:[#allocation27_spill] sm:$0xff] }
 0x2c2   : > { %7190 = vmatpush3.bf16.msra.mxu0 %v7621_v59  ;;  %7079 = vmatprep.subr.bf16.mxu1 %v7614_v63  ;;  %v11509_v59 = vld [vmem:[#allocation26_spill] sm:$0xff]  ;;  %v11511_v63 = vld [vmem:[#allocation28_spill] sm:$0xff] }
 0x2c3   : > { %7191 = vmatprep.subr.bf16.mxu0 %v7622_v62 }
 0x2c5   : > { %7080 = vmatpush3.bf16.msra.mxu1 %v7616_v37  ;;  %v11512_v37 = vld [vmem:[#allocation42_spill] sm:$0xff] }
 0x2c6   : > { %7192 = vmatpush3.bf16.msra.mxu0 %v7623_v19  ;;  %7361 = vmatprep.subr.bf16.mxu1 %v7624_v43  ;;  %v11513_v19 = vld [vmem:[#allocation29_spill] sm:$0xff] }
 0x2c7   : > { %6089 = vmatmul.mubr.msk.bf16.gmra.mrb[144].mxu1 %vm11500_vm12, %v9865_v27  ;;  %vm11506_vm12 = vnez %v11505_v45 }
 0x2c8   : > { %6152 = vmatmul.mubr.msk.bf16.gmra.mrb[176].mxu0 %vm11323_vm8, %v9883_v2  ;;  %4632 = vmatprep.mubr.bf16.mxu1 %v9885_v4 }
 0x2c9   : > { %6155 = vmatprep.mubr.msk.bf16.mxu0 %vm11503_vm6, %v9899_v12 }
 0x2cf   : > { %6092 = vmatmul.mubr.msk.bf16.gmra.mrb[148].mxu1 %vm11503_vm6, %v9897_v3  ;;  %vm11510_vm6 = vnez %v11509_v59 }
 0x2d0   : > { %6158 = vmatmul.mubr.msk.bf16.gmra.mrb[180].mxu0 %vm11328_vm15, %v9906_v60  ;;  %4640 = vmatprep.mubr.bf16.mxu1 %v9876_v26 }
 0x2d1   : > { %6161 = vmatprep.mubr.msk.bf16.mxu0 %vm11506_vm12, %v9929_v5 }
 0x2d7   : > { %6095 = vmatmul.mubr.msk.bf16.gmra.mrb[152].mxu1 %vm11506_vm12, %v9899_v12  ;;  %vm11514_vm12 = vnez %v11513_v19  ;;  %v11527_v19 = vld [vmem:[#allocation41_spill] sm:$0xff] }
 0x2d8   : > { %6164 = vmatmul.mubr.msk.bf16.gmra.mrb[184].mxu0 %vm11408_vm4, %v9915_v20  ;;  %4648 = vmatprep.mubr.bf16.mxu1 %v11508_v9 }
 0x2d9   : > { %6167 = vmatprep.mubr.msk.bf16.mxu0 %vm11510_vm6, %v9931_v40 }
 0x2df   : > { %6098 = vmatmul.mubr.msk.bf16.gmra.mrb[156].mxu1 %vm11510_vm6, %v9929_v5  ;;  %vm11518_vm6 = vnez %v11517_v36  ;;  %v11526_v36 = vld [vmem:[#allocation59_spill] sm:$0xff] }
 0x2e0   : > { %6170 = vmatmul.mubr.msk.bf16.gmra.mrb[188].mxu0 %vm11409_vm3, %v9938_v46  ;;  %4656 = vmatprep.mubr.bf16.mxu1 %v11512_v37  ;;  %vm11520_vm3 = vnez %v11519_v33  ;;  %v11529_v33 = vld [vmem:[#allocation57_spill] sm:$0xff] }
 0x2e1   : > { %6173 = vmatprep.mubr.msk.bf16.mxu0 %vm11514_vm12, %v9961_v8 }
 0x2e7   : > { %6101 = vmatmul.mubr.msk.bf16.gmra.mrb[160].mxu1 %vm11514_vm12, %v9931_v40  ;;  %vm11523_vm12 = vnez %v11522_v47  ;;  %v11531_v47 = vld [vmem:[#allocation51_spill] sm:$0xff] }
 0x2e8   : > { %6176 = vmatmul.mubr.msk.bf16.gmra.mrb[192].mxu0 %vm11410_vm13, %v9947_v49  ;;  %4664 = vmatprep.mubr.bf16.mxu1 %v11516_v29  ;;  %vm11525_vm13 = vnez %v11524_v0  ;;  %v11542_v0 = vld [vmem:[#allocation52_spill] sm:$0xff] }
 0x2e9   : > { %6179 = vmatprep.mubr.msk.bf16.mxu0 %vm11518_vm6, %v9963_v1 }
 0x2ef   : > { %6104 = vmatmul.mubr.msk.bf16.gmra.mrb[164].mxu1 %vm11518_vm6, %v9961_v8  ;;  %vm11528_vm6 = vnez %v11527_v19  ;;  %v11535_v19 = vld [vmem:[#allocation46_spill] sm:$0xff] }
 0x2f0   : > { %6182 = vmatmul.mubr.msk.bf16.gmra.mrb[196].mxu0 %vm11520_vm3, %v9970_v22  ;;  %4672 = vmatprep.mubr.bf16.mxu1 %v11521_v50  ;;  %v11537_v50 = vld [vmem:[#allocation48_spill] sm:$0xff] }
 0x2f1   : > { %6185 = vmatprep.mubr.msk.bf16.mxu0 %vm11523_vm12, %v9993_v55 }
 0x2f7   : > { %6107 = vmatmul.mubr.msk.bf16.gmra.mrb[168].mxu1 %vm11523_vm12, %v9963_v1  ;;  %v11532_v1 = vld [vmem:[#allocation44_spill] sm:$0xff] }
 0x2f8   : > { %6188 = vmatmul.mubr.msk.bf16.gmra.mrb[200].mxu0 %vm11525_vm13, %v9979_v56  ;;  %4680 = vmatprep.mubr.bf16.mxu1 %v9981_v10  ;;  %vm11533_vm12 = vnez %v11532_v1  ;;  %v11539_v1 = vld [vmem:[#allocation54_spill] sm:$0xff] }
 0x2f9   : > { %6191 = vmatprep.mubr.msk.bf16.mxu0 %vm11528_vm6, %v11526_v36 }
 0x2ff   : > { %6110 = vmatmul.mubr.msk.bf16.gmra.mrb[172].mxu1 %vm11528_vm6, %v9993_v55  ;;  %vm11536_vm6 = vnez %v11535_v19  ;;  %v11544_v19 = vld [vmem:[#allocation56_spill] sm:$0xff] }
 0x300   : > { %6194 = vmatmul.mubr.msk.bf16.gmra.mrb[204].mxu0 %vm8855_vm10, %v11529_v33  ;;  %4688 = vmatprep.mubr.bf16.mxu1 %v11531_v47  ;;  %vm11538_vm10 = vnez %v11537_v50  ;;  %v11546_v50 = vpack.c.bf16 %v10088_v57, %v10083_v14  ;;  %v7627_v14 = vld [vmem:[#allocation8 + $0x218] sm:$0xff]  }
 0x301   : > { %6197 = vmatprep.mubr.msk.bf16.mxu0 %vm11533_vm12, %v10031_v17 }
 0x307   : > { %6113 = vmatmul.mubr.msk.bf16.gmra.mrb[176].mxu1 %vm11533_vm12, %v11526_v36  ;;  %v11540_v36 = vld [vmem:[#allocation49_spill] sm:$0xff] }
 0x308   : > { %6200 = vmatmul.mubr.msk.bf16.gmra.mrb[208].mxu0 %vm11411_vm1, %v10017_v38  ;;  %4696 = vmatprep.mubr.bf16.mxu1 %v10019_v7  ;;  %vm11541_vm12 = vnez %v11540_v36  ;;  %vm11543_vm1 = vnez %v11542_v0  ;;  %v7625_v36 = vld [vmem:[#allocation8 + $0x208] sm:$0xff]  }
 0x309   : > { %6203 = vmatprep.mubr.msk.bf16.mxu0 %vm11536_vm6, %v10033_v6  ;;  %v11550_v0 = vld [vmem:[#allocation38_spill] sm:$0xff] }
 0x30f   : > { %6116 = vmatmul.mubr.msk.bf16.gmra.mrb[180].mxu1 %vm11536_vm6, %v10031_v17  ;;  %vm11545_vm6 = vnez %v11544_v19 }
 0x310   : > { %6206 = vmatmul.mubr.msk.bf16.gmra.mrb[212].mxu0 %vm11538_vm10, %v10042_v30  ;;  %4704 = vmatprep.mubr.bf16.mxu1 %v11539_v1  ;;  %v11547_v1 = vld [vmem:[#allocation60_spill] sm:$0xff] }
 0x311   : > { %6209 = vmatprep.mubr.msk.bf16.mxu0 %vm11541_vm12, %v10071_v58  ;;  %vm11548_vm10 = vnez %v11547_v1 }
 0x317   : > { %6119 = vmatmul.mubr.msk.bf16.gmra.mrb[184].mxu1 %vm11541_vm12, %v10033_v6 }
 0x318   : > { %6212 = vmatmul.mubr.msk.bf16.gmra.mrb[216].mxu0 %vm11543_vm1, %v10058_v48  ;;  %4712 = vmatprep.mubr.bf16.mxu1 %v10060_v24 }
 0x319   : > { %6215 = vmatprep.mubr.msk.bf16.mxu0 %vm11545_vm6, %v10079_v42  ;;  %v11549_v42 = vld [vmem:[#allocation50_spill] sm:$0xff] }
 0x31a   : > { %v11551_v24 = vpack.c.bf16 %v11549_v42, %v11550_v0  ;;  %v7629_v42 = vld [vmem:[#allocation8 + $0x228] sm:$0xff]  }
 0x31f   : > { %6122 = vmatmul.mubr.msk.bf16.gmra.mrb[188].mxu1 %vm11545_vm6, %v10071_v58 }
 0x320   : > { %6218 = vmatmul.mubr.msk.bf16.gmra.mrb[220].mxu0 %vm11548_vm10, %v11546_v50  ;;  %6221 = vmatprep.mubr.msk.bf16.mxu1 %vm8150_vm7, %v9838_v52  ;;  %v7626_v52 = vld [vmem:[#allocation8 + $0x210] sm:$0xff]  }
 0x321   : > { %5075 = vmatprep.mubr.bf16.mxu0 %v9840_v54 }
 0x327   : > { %4915 = vmatmul.mubr.bf16.vlgmr.msra.gmra.mrb[192].mxu1 %v9804_v31  ;;  %v7628_v31 = vld [vmem:[#allocation8 + $0x220] sm:$0xff]  }
 0x328   : > { %6269 = vmatmul.mubr.msk.bf16.vlgmr.msra.gmra.mrb[224].mxu0 %vm11477_vm0, %v11551_v24  ;;  %6224 = vmatprep.mubr.msk.bf16.mxu1 %vm8211_vm11, %v9849_v51  ;;  %vm11552_vm0 = vnez %v11497_v23 }
 0x329   : > { %5083 = vmatprep.mubr.bf16.mxu0 %v9851_v39  ;;  %7362 = vmatpush3.bf16.msra.mxu1 %v7624_v43  ;;  %v11572_v43 = vld [vmem:[#allocation41_spill] sm:$0xff] }
 0x32a   : > { %7363 = vmatprep.subr.bf16.mxu1 %v7625_v36 }
 0x32d   : > { %7364 = vmatpush3.bf16.msra.mxu1 %v7625_v36 }
 0x32e   : > { %7365 = vmatprep.subr.bf16.mxu1 %v7626_v52 }
 0x32f   : > { %4923 = vmatmul.mubr.bf16.gmra.mrb[196].mxu1 %v9840_v54  ;;  %v7630_v54 = vld [vmem:[#allocation8 + $0x230] sm:$0xff]  }
 0x330   : > { %6272 = vmatmul.mubr.msk.bf16.gmra.mrb[228].mxu0 %vm11487_vm5, %v9863_v11  ;;  %6227 = vmatprep.mubr.msk.bf16.mxu1 %vm8236_vm14, %v9872_v34  ;;  %v7631_v11 = vld [vmem:[#allocation8 + $0x238] sm:$0xff]   ;;  %vm11553_vm5 = vnez %v11499_v28 }
 0x331   : > { %5091 = vmatprep.mubr.bf16.mxu0 %v9870_v44  ;;  %7366 = vmatpush3.bf16.msra.mxu1 %v7626_v52 }
 0x332   : > { %7367 = vmatprep.subr.bf16.mxu1 %v7627_v14 }
 0x335   : > { %7368 = vmatpush3.bf16.msra.mxu1 %v7627_v14 }
 0x336   : > { %7369 = vmatprep.subr.bf16.mxu1 %v7628_v31 }
 0x337   : > { %4931 = vmatmul.mubr.bf16.gmra.mrb[200].mxu1 %v9851_v39  ;;  %v11559_v39 = vld [vmem:[#allocation47_spill] sm:$0xff] }
 0x338   : > { %6275 = vmatmul.mubr.msk.bf16.gmra.mrb[232].mxu0 %vm11495_vm2, %v9865_v27  ;;  %6230 = vmatprep.mubr.msk.bf16.mxu1 %vm8304_vm9, %v9883_v2  ;;  %vm11554_vm2 = vnez %v11502_v53  ;;  %v11560_v27 = vld [vmem:[#allocation53_spill] sm:$0xff] }
 0x339   : > { %5099 = vmatprep.mubr.bf16.mxu0 %v9885_v4  ;;  %7370 = vmatpush3.bf16.msra.mxu1 %v7628_v31 }
 0x33a   : > { %7371 = vmatprep.subr.bf16.mxu1 %v7629_v42 }
 0x33d   : > { %7372 = vmatpush3.bf16.msra.mxu1 %v7629_v42 }
 0x33e   : > { %7373 = vmatprep.subr.bf16.mxu1 %v7630_v54 }
 0x33f   : > { %4939 = vmatmul.mubr.bf16.gmra.mrb[204].mxu1 %v9870_v44  ;;  %v11561_v44 = vld [vmem:[#allocation29_spill] sm:$0xff] }
 0x340   : > { %6278 = vmatmul.mubr.msk.bf16.gmra.mrb[236].mxu0 %vm11552_vm0, %v9897_v3  ;;  %6233 = vmatprep.mubr.msk.bf16.mxu1 %vm11323_vm8, %v9906_v60  ;;  %vm11555_vm0 = vnez %v11505_v45 }
 0x341   : > { %5107 = vmatprep.mubr.bf16.mxu0 %v9876_v26  ;;  %7374 = vmatpush3.bf16.msra.mxu1 %v7630_v54 }
 0x342   : > { %7375 = vmatprep.subr.bf16.mxu1 %v7631_v11 }
 0x345   : > { %7376 = vmatpush3.bf16.msra.mxu1 %v7631_v11 }
 0x347   : > { %4947 = vmatmul.mubr.bf16.gmra.mrb[208].mxu1 %v9885_v4  ;;  %v11564_v4 = vld [vmem:[#allocation34_spill] sm:$0xff] }
 0x348   : > { %6281 = vmatmul.mubr.msk.bf16.gmra.mrb[240].mxu0 %vm11553_vm5, %v9899_v12  ;;  %6236 = vmatprep.mubr.msk.bf16.mxu1 %vm11328_vm15, %v9915_v20  ;;  %vm11556_vm5 = vnez %v11511_v63  ;;  %v11568_v12 = vld [vmem:[#allocation39_spill] sm:$0xff] }
 0x349   : > { %5115 = vmatprep.mubr.bf16.mxu0 %v11508_v9 }
 0x34f   : > { %4955 = vmatmul.mubr.bf16.gmra.mrb[212].mxu1 %v9876_v26  ;;  %v11563_v26 = vld [vmem:[#allocation37_spill] sm:$0xff] }
 0x350   : > { %6284 = vmatmul.mubr.msk.bf16.gmra.mrb[244].mxu0 %vm11554_vm2, %v9929_v5  ;;  %6239 = vmatprep.mubr.msk.bf16.mxu1 %vm11408_vm4, %v9938_v46  ;;  %vm11557_vm2 = vnez %v11509_v59  ;;  %vm11558_vm4 = vnez %v11515_v25  ;;  %v11570_v5 = vld [vmem:[#allocation43_spill] sm:$0xff]  ;;  %v11576_v59 = vld [vmem:[#allocation54_spill] sm:$0xff] }
 0x351   : > { %5123 = vmatprep.mubr.bf16.mxu0 %v11512_v37 }
 0x357   : > { %4963 = vmatmul.mubr.bf16.gmra.mrb[216].mxu1 %v11508_v9  ;;  %v11574_v9 = vld [vmem:[#allocation45_spill] sm:$0xff] }
 0x358   : > { %6287 = vmatmul.mubr.msk.bf16.gmra.mrb[248].mxu0 %vm11555_vm0, %v9931_v40  ;;  %6242 = vmatprep.mubr.msk.bf16.mxu1 %vm11556_vm5, %v9947_v49  ;;  %vm11562_vm0 = vnez %v11561_v44 }
 0x359   : > { %5131 = vmatprep.mubr.bf16.mxu0 %v11516_v29 }
 0x35f   : > { %4971 = vmatmul.mubr.bf16.gmra.mrb[220].mxu1 %v11512_v37 }
 0x360   : > { %6290 = vmatmul.mubr.msk.bf16.gmra.mrb[252].mxu0 %vm11557_vm2, %v9961_v8  ;;  %6245 = vmatprep.mubr.msk.bf16.mxu1 %vm11558_vm4, %v9970_v22  ;;  %vm11565_vm2 = vnez %v11564_v4 }
 0x361   : > { %5139 = vmatprep.mubr.bf16.mxu0 %v11559_v39 }
 0x367   : > { %4979 = vmatmul.mubr.bf16.gmra.mrb[224].mxu1 %v11516_v29  ;;  %v11567_v29 = vld [vmem:[#allocation59_spill] sm:$0xff] }
 0x368   : > { %6293 = vmatmul.mubr.msk.bf16.gmra.mrb[0].mxu0 %vm11562_vm0, %v11560_v27  ;;  %6248 = vmatprep.mubr.msk.bf16.mxu1 %vm11520_vm3, %v9979_v56  ;;  %vm11569_vm0 = vnez %v11568_v12  ;;  %vm11571_vm3 = vnez %v11570_v5  ;;  %v11577_v12 = vld [vmem:[#allocation44_spill] sm:$0xff] }
 0x369   : > { %5147 = vmatprep.mubr.bf16.mxu0 %v9981_v10 }
 0x36f   : > { %4987 = vmatmul.mubr.bf16.gmra.mrb[228].mxu1 %v11559_v39 }
 0x370   : > { %6296 = vmatmul.mubr.msk.bf16.gmra.mrb[4].mxu0 %vm11565_vm2, %v9993_v55  ;;  %6251 = vmatprep.mubr.msk.bf16.mxu1 %vm11525_vm13, %v11529_v33  ;;  %v10370_v55 = vld [vmem:[%s10810_s4] ss:$0 sm:$0xff]  ;;  %vm11573_vm2 = vnez %v11572_v43 }
 0x371   : > { %5155 = vmatprep.mubr.bf16.mxu0 %v11531_v47 }
 0x377   : > { %4995 = vmatmul.mubr.bf16.gmra.mrb[232].mxu1 %v9981_v10 }
 0x378   : > { %6299 = vmatmul.mubr.msk.bf16.gmra.mrb[8].mxu0 %vm11569_vm0, %v11567_v29  ;;  %6254 = vmatprep.mubr.msk.bf16.mxu1 %vm11571_vm3, %v10017_v38  ;;  %vm11575_vm0 = vnez %v11574_v9 }
 0x379   : > { %5163 = vmatprep.mubr.bf16.mxu0 %v10019_v7 }
 0x37a   : > { %v6857_v40 = vpop.f32.mrb[128].mxu1 }
 0x37b   : > { %v6969_v8 = vpop.f32.mrb[160].mxu0  ;;  %v6858_v24 = vpop.f32.mrb[129].mxu1 }
 0x37c   : > { %v6970_v13 = vpop.f32.mrb[161].mxu0  ;;  %v6859_v10 = vadd.f32 %v6858_v24, %v6857_v40  ;;  %v6860_v0 = vpop.f32.mrb[130].mxu1  ;;  %v11579_v24 = vld [vmem:[#allocation48_spill] sm:$0xff] }
 0x37d   : > { %v6971_v57 = vadd.f32 %v6970_v13, %v6969_v8  ;;  %v6972_v50 = vpop.f32.mrb[162].mxu0  ;;  %v6861_v32 = vpop.f32.mrb[131].mxu1  ;;  %v11581_v13 = vld [vmem:[#allocation35_spill] sm:$0xff] }
 0x37e   : > { %v6973_v36 = vpop.f32.mrb[163].mxu0  ;;  %v4595_v16 = vadd.f32 %v6859_v10, %v10370_v55  ;;  %v6862_v23 = vadd.f32 %v6861_v32, %v6860_v0 }
 0x37f   : > { %v6974_v28 = vadd.f32 %v6973_v36, %v6972_v50  ;;  %5003 = vmatmul.mubr.bf16.gmra.mrb[236].mxu1 %v11531_v47 }
 0x380   : > { %6302 = vmatmul.mubr.msk.bf16.gmra.mrb[12].mxu0 %vm11573_vm2, %v10031_v17  ;;  %v10377_v53 = vadd.f32 %v6971_v57, %v4595_v16  ;;  %v4598_v45 = vadd.f32 %v6862_v23, %v10370_v55  ;;  %6257 = vmatprep.mubr.msk.bf16.mxu1 %vm11575_vm0, %v10042_v30  ;;  %vm11578_vm2 = vnez %v11577_v12  ;;  %vm11580_vm0 = vnez %v11579_v24 }
 0x381   : > { %5171 = vmatprep.mubr.bf16.mxu0 %v11576_v59 }
 0x382   : > { %v10384_v37 = vadd.f32 %v6974_v28, %v4598_v45  ;;  %v6863_v52 = vpop.f32.mrb[132].mxu1 }
 0x383   : > { %v6975_v14 = vpop.f32.mrb[164].mxu0  ;;  %v6864_v31 = vpop.f32.mrb[133].mxu1 }
 0x384   : > { %v6976_v47 = vpop.f32.mrb[165].mxu0  ;;  %v6865_v42 = vadd.f32 %v6864_v31, %v6863_v52  ;;  %v6866_v11 = vpop.f32.mrb[134].mxu1 }
 0x385   : > { %v6977_v54 = vadd.f32 %v6976_v47, %v6975_v14  ;;  %v6978_v17 = vpop.f32.mrb[166].mxu0  ;;  %v6867_v39 = vpop.f32.mrb[135].mxu1  ;;  %v11582_v14 = vld [vmem:[#allocation46_spill] sm:$0xff] }
 0x386   : > { %v6979_v27 = vpop.f32.mrb[167].mxu0  ;;  %v4603_v44 = vadd.f32 %v6865_v42, %v10370_v55  ;;  %v6868_v4 = vadd.f32 %v6867_v39, %v6866_v11  ;;  %v11584_v42 = vld [vmem:[#allocation63_spill] sm:$0xff]  ;;  %v11586_v11 = vld [vmem:[#allocation61_spill] sm:$0xff] }
 0x387   : > { %v6980_v29 = vadd.f32 %v6979_v27, %v6978_v17  ;;  %5011 = vmatmul.mubr.bf16.gmra.mrb[240].mxu1 %v10019_v7 }
 0x388   : > { %6305 = vmatmul.mubr.msk.bf16.gmra.mrb[16].mxu0 %vm11578_vm2, %v10033_v6  ;;  %v10391_v40 = vadd.f32 %v6977_v54, %v4603_v44  ;;  %v4606_v8 = vadd.f32 %v6868_v4, %v10370_v55  ;;  %6260 = vmatprep.mubr.msk.bf16.mxu1 %vm11580_vm0, %v10058_v48  ;;  %vm11583_vm2 = vnez %v11582_v14 }
 0x389   : > { %5179 = vmatprep.mubr.bf16.mxu0 %v11581_v13 }
 0x38a   : > { %v10398_v10 = vadd.f32 %v6980_v29, %v4606_v8  ;;  %v6869_v57 = vpop.f32.mrb[136].mxu1 }
 0x38b   : > { %v6981_v0 = vpop.f32.mrb[168].mxu0  ;;  %v6870_v50 = vpop.f32.mrb[137].mxu1 }
 0x38c   : > { %v6982_v7 = vpop.f32.mrb[169].mxu0  ;;  %v6871_v32 = vadd.f32 %v6870_v50, %v6869_v57  ;;  %v6872_v16 = vpop.f32.mrb[138].mxu1 }
 0x38d   : > { %v6983_v36 = vadd.f32 %v6982_v7, %v6981_v0  ;;  %v6984_v6 = vpop.f32.mrb[170].mxu0  ;;  %v6873_v23 = vpop.f32.mrb[139].mxu1 }
 0x38e   : > { %v6985_v28 = vpop.f32.mrb[171].mxu0  ;;  %v4611_v43 = vadd.f32 %v6871_v32, %v10370_v55  ;;  %v6874_v45 = vadd.f32 %v6873_v23, %v6872_v16  ;;  %v11587_v32 = vld [vmem:[#allocation31_spill] sm:$0xff]  ;;  %v11589_v23 = vld [vmem:[#allocation65_spill] sm:$0xff] }
 0x38f   : > { %v6986_v52 = vadd.f32 %v6985_v28, %v6984_v6  ;;  %5019 = vmatmul.mubr.bf16.gmra.mrb[244].mxu1 %v11576_v59  ;;  %v11590_v28 = vld [vmem:[#allocation64_spill] sm:$0xff] }
 0x390   : > { %6308 = vmatmul.mubr.msk.bf16.gmra.mrb[20].mxu0 %vm11583_vm2, %v10071_v58  ;;  %v10405_v31 = vadd.f32 %v6983_v36, %v4611_v43  ;;  %v4614_v47 = vadd.f32 %v6874_v45, %v10370_v55  ;;  %6263 = vmatprep.mubr.msk.bf16.mxu1 %vm11543_vm1, %v11584_v42  ;;  %v11591_v43 = vpack.c.bf16 %v11589_v23, %v11590_v28  ;;  %v11592_v45 = vmov 0.0|0.0  }
 0x391   : > { %5187 = vmatprep.mubr.bf16.mxu0 %v11586_v11 }
 0x392   : > { %v10412_v17 = vadd.f32 %v6986_v52, %v4614_v47  ;;  %v6875_v39 = vpop.f32.mrb[140].mxu1 }
 0x393   : > { %v6987_v27 = vpop.f32.mrb[172].mxu0  ;;  %v6876_v44 = vpop.f32.mrb[141].mxu1 }
 0x394   : > { %v6988_v59 = vpop.f32.mrb[173].mxu0  ;;  %v6877_v4 = vadd.f32 %v6876_v44, %v6875_v39  ;;  %v6878_v12 = vpop.f32.mrb[142].mxu1 }
 0x395   : > { %v6989_v29 = vadd.f32 %v6988_v59, %v6987_v27  ;;  %v6990_v58 = vpop.f32.mrb[174].mxu0  ;;  %v6879_v8 = vpop.f32.mrb[143].mxu1 }
 0x396   : > { %v6991_v57 = vpop.f32.mrb[175].mxu0  ;;  %v4619_v0 = vadd.f32 %v6877_v4, %v10370_v55  ;;  %v6880_v50 = vadd.f32 %v6879_v8, %v6878_v12 }
 0x397   : > { %v6992_v7 = vadd.f32 %v6991_v57, %v6990_v58  ;;  %5027 = vmatmul.mubr.bf16.gmra.mrb[248].mxu1 %v11581_v13 }
 0x398   : > { %6311 = vmatmul.mubr.msk.bf16.gmra.mrb[24].mxu0 %vm11541_vm12, %v11587_v32  ;;  %v10419_v16 = vadd.f32 %v6989_v29, %v4619_v0  ;;  %v4622_v6 = vadd.f32 %v6880_v50, %v10370_v55  ;;  %6266 = vmatprep.mubr.msk.bf16.mxu1 %vm11548_vm10, %v11591_v43  ;;  %v11593_v0 = vld [vmem:[#allocation33_spill] sm:$0xff]  ;;  %v11594_v50 = vld [vmem:[#allocation62_spill] sm:$0xff] }
 0x399   : > { %5195 = vmatprep.mubr.bf16.mxu0 %v11592_v45 }
 0x39a   : > { %v10428_v52 = vadd.f32 %v6992_v7, %v4622_v6  ;;  %v6881_v14 = vpop.f32.mrb[144].mxu1  ;;  %v11595_v7 = vpack.c.bf16 %v11593_v0, %v11594_v50 }
 0x39b   : > { %v6993_v13 = vpop.f32.mrb[176].mxu0  ;;  %v6882_v47 = vpop.f32.mrb[145].mxu1 }
 0x39c   : > { %v6994_v39 = vpop.f32.mrb[177].mxu0  ;;  %v6883_v27 = vadd.f32 %v6882_v47, %v6881_v14  ;;  %v6884_v59 = vpop.f32.mrb[146].mxu1 }
 0x39d   : > { %v6995_v44 = vadd.f32 %v6994_v39, %v6993_v13  ;;  %v6996_v4 = vpop.f32.mrb[178].mxu0  ;;  %v6885_v29 = vpop.f32.mrb[147].mxu1 }
 0x39e   : > { %v6997_v12 = vpop.f32.mrb[179].mxu0  ;;  %v4627_v58 = vadd.f32 %v6883_v27, %v10370_v55  ;;  %v6886_v8 = vadd.f32 %v6885_v29, %v6884_v59 }
 0x39f   : > { %v6998_v57 = vadd.f32 %v6997_v12, %v6996_v4  ;;  %5035 = vmatmul.mubr.bf16.gmra.mrb[252].mxu1 %v11586_v11 }
 0x3a0   : > { %6314 = vmatmul.mubr.msk.bf16.gmra.mrb[28].mxu0 %vm11545_vm6, %v11595_v7  ;;  %v10437_v32 = vadd.f32 %v6995_v44, %v4627_v58  ;;  %v4630_v36 = vadd.f32 %v6886_v8, %v10370_v55  ;;  %7377 = vmatprep.mubr.msk.bf16.mxu1 %vm8150_vm7, %v9849_v51  ;;  %vm11596_vm7 = vnez %v11507_v61 }
 0x3a2   : > { %v10443_v6 = vadd.f32 %v6998_v57, %v4630_v36  ;;  %v6887_v23 = vpop.f32.mrb[148].mxu1 }
 0x3a3   : > { %v6999_v43 = vpop.f32.mrb[180].mxu0  ;;  %v6888_v45 = vpop.f32.mrb[149].mxu1 }
 0x3a4   : > { %v7000_v11 = vpop.f32.mrb[181].mxu0  ;;  %v6889_v14 = vadd.f32 %v6888_v45, %v6887_v23  ;;  %v6890_v47 = vpop.f32.mrb[150].mxu1 }
 0x3a5   : > { %v7001_v13 = vadd.f32 %v7000_v11, %v6999_v43  ;;  %v7002_v39 = vpop.f32.mrb[182].mxu0  ;;  %v6891_v19 = vpop.f32.mrb[151].mxu1 }
 0x3a6   : > { %v7003_v27 = vpop.f32.mrb[183].mxu0  ;;  %v4635_v44 = vadd.f32 %v6889_v14, %v10370_v55  ;;  %v6892_v59 = vadd.f32 %v6891_v19, %v6890_v47 }
 0x3a7   : > { %v7004_v4 = vadd.f32 %v7003_v27, %v7002_v39  ;;  %7378 = vmatmul.mubr.msk.bf16.vlgmr.msra.gmra.mrb[0].mxu1 %vm8211_vm11, %v9872_v34  ;;  %vm11597_vm11 = vnez %v11563_v26 }
 0x3a8   : > { %v10449_v51 = vadd.f32 %v7001_v13, %v4635_v44  ;;  %v4638_v15 = vadd.f32 %v6892_v59, %v10370_v55  ;;  %7381 = vmatprep.mubr.msk.bf16.mxu1 %vm8236_vm14, %v9883_v2  ;;  %vm11598_vm14 = vnez %v11574_v9 }
 0x3aa   : > { %v10455_v29 = vadd.f32 %v7004_v4, %v4638_v15  ;;  %v6893_v12 = vpop.f32.mrb[152].mxu1 }
 0x3ab   : > { %v7005_v58 = vpop.f32.mrb[184].mxu0  ;;  %v6894_v8 = vpop.f32.mrb[153].mxu1 }
 0x3ac   : > { %v7006_v57 = vpop.f32.mrb[185].mxu0  ;;  %v6895_v0 = vadd.f32 %v6894_v8, %v6893_v12  ;;  %v6896_v7 = vpop.f32.mrb[154].mxu1 }
 0x3ad   : > { %v7007_v50 = vadd.f32 %v7006_v57, %v7005_v58  ;;  %v7008_v36 = vpop.f32.mrb[186].mxu0  ;;  %v6897_v18 = vpop.f32.mrb[155].mxu1 }
 0x3ae   : > { %v7009_v34 = vpop.f32.mrb[187].mxu0  ;;  %v4643_v23 = vadd.f32 %v6895_v0, %v10370_v55  ;;  %v6898_v43 = vadd.f32 %v6897_v18, %v6896_v7 }
 0x3af   : > { %v7010_v45 = vadd.f32 %v7009_v34, %v7008_v36  ;;  %7382 = vmatmul.mubr.msk.bf16.gmra.mrb[4].mxu1 %vm8304_vm9, %v9906_v60 }
 0x3b0   : > { %v10461_v2 = vadd.f32 %v7007_v50, %v4643_v23  ;;  %v4646_v35 = vadd.f32 %v6898_v43, %v10370_v55  ;;  %7385 = vmatprep.mubr.msk.bf16.mxu1 %vm11323_vm8, %v9915_v20 }
 0x3b2   : > { %v10467_v11 = vadd.f32 %v7010_v45, %v4646_v35  ;;  %v6899_v14 = vpop.f32.mrb[156].mxu1 }
 0x3b3   : > { %v7011_v13 = vpop.f32.mrb[188].mxu0  ;;  %v6900_v47 = vpop.f32.mrb[157].mxu1 }
 0x3b4   : > { %v7012_v39 = vpop.f32.mrb[189].mxu0  ;;  %v6901_v19 = vadd.f32 %v6900_v47, %v6899_v14  ;;  %v6902_v44 = vpop.f32.mrb[158].mxu1 }
 0x3b5   : > { %v7013_v27 = vadd.f32 %v7012_v39, %v7011_v13  ;;  %v7014_v59 = vpop.f32.mrb[190].mxu0  ;;  %v6903_v41 = vpop.f32.mrb[159].mxu1 }
 0x3b6   : > { %v7015_v60 = vpop.f32.mrb[191].mxu0  ;;  %v4651_v4 = vadd.f32 %v6901_v19, %v10370_v55  ;;  %v6904_v15 = vadd.f32 %v6903_v41, %v6902_v44 }
 0x3b7   : > { %v7016_v12 = vadd.f32 %v7015_v60, %v7014_v59  ;;  %7386 = vmatmul.mubr.msk.bf16.gmra.mrb[8].mxu1 %vm11328_vm15, %v9938_v46 }
 0x3b8   : > { %v10473_v20 = vadd.f32 %v7013_v27, %v4651_v4  ;;  %v4654_v21 = vadd.f32 %v6904_v15, %v10370_v55  ;;  %7389 = vmatprep.mubr.msk.bf16.mxu1 %vm11596_vm7, %v9947_v49 }
 0x3ba   : > { %v10479_v58 = vadd.f32 %v7016_v12, %v4654_v21  ;;  %v6905_v8 = vpop.f32.mrb[160].mxu1 }
 0x3bb   : > { %v7017_v57 = vpop.f32.mrb[192].mxu0  ;;  %v6906_v0 = vpop.f32.mrb[161].mxu1 }
 0x3bc   : > { %v7018_v50 = vpop.f32.mrb[193].mxu0  ;;  %v6907_v7 = vadd.f32 %v6906_v0, %v6905_v8  ;;  %v6908_v18 = vpop.f32.mrb[162].mxu1 }
 0x3bd   : > { %v7019_v36 = vadd.f32 %v7018_v50, %v7017_v57  ;;  %v7020_v34 = vpop.f32.mrb[194].mxu0  ;;  %v6909_v62 = vpop.f32.mrb[163].mxu1 }
 0x3be   : > { %v7021_v46 = vpop.f32.mrb[195].mxu0  ;;  %v4659_v23 = vadd.f32 %v6907_v7, %v10370_v55  ;;  %v6910_v43 = vadd.f32 %v6909_v62, %v6908_v18 }
 0x3bf   : > { %v7022_v45 = vadd.f32 %v7021_v46, %v7020_v34  ;;  %7390 = vmatmul.mubr.msk.bf16.gmra.mrb[12].mxu1 %vm11556_vm5, %v9970_v22 }
 0x3c0   : > { %v10485_v49 = vadd.f32 %v7019_v36, %v4659_v23  ;;  %v4662_v61 = vadd.f32 %v6910_v43, %v10370_v55  ;;  %7393 = vmatprep.mubr.msk.bf16.mxu1 %vm11558_vm4, %v9979_v56 }
 0x3c2   : > { %v10491_v35 = vadd.f32 %v7022_v45, %v4662_v61  ;;  %v6911_v14 = vpop.f32.mrb[164].mxu1 }
 0x3c3   : > { %v7023_v13 = vpop.f32.mrb[196].mxu0  ;;  %v6912_v47 = vpop.f32.mrb[165].mxu1 }
 0x3c4   : > { %v7024_v39 = vpop.f32.mrb[197].mxu0  ;;  %v6913_v19 = vadd.f32 %v6912_v47, %v6911_v14  ;;  %v6914_v44 = vpop.f32.mrb[166].mxu1 }
 0x3c5   : > { %v7025_v27 = vadd.f32 %v7024_v39, %v7023_v13  ;;  %v7026_v59 = vpop.f32.mrb[198].mxu0  ;;  %v6915_v63 = vpop.f32.mrb[167].mxu1 }
 0x3c6   : > { %v7027_v22 = vpop.f32.mrb[199].mxu0  ;;  %v4667_v41 = vadd.f32 %v6913_v19, %v10370_v55  ;;  %v6916_v60 = vadd.f32 %v6915_v63, %v6914_v44 }
 0x3c7   : > { %v7028_v4 = vadd.f32 %v7027_v22, %v7026_v59  ;;  %7394 = vmatmul.mubr.msk.bf16.gmra.mrb[16].mxu1 %vm11597_vm11, %v11529_v33  ;;  %v11599_v59 = vld [vmem:[#allocation66_spill] sm:$0xff] }
 0x3c8   : > { %v10497_v56 = vadd.f32 %v7025_v27, %v4667_v41  ;;  %v4670_v25 = vadd.f32 %v6916_v60, %v10370_v55  ;;  %7397 = vmatprep.mubr.msk.bf16.mxu1 %vm11525_vm13, %v10017_v38  ;;  %v11600_v63 = vpack.c.bf16 %v11599_v59, %v11590_v28  ;;  %v11601_v28 = vld [vmem:[#allocation36_spill] sm:$0xff] }
 0x3ca   : > { %v10503_v15 = vadd.f32 %v7028_v4, %v4670_v25  ;;  %v6917_v12 = vpop.f32.mrb[168].mxu1 }
 0x3cb   : > { %v7029_v21 = vpop.f32.mrb[200].mxu0  ;;  %v6918_v8 = vpop.f32.mrb[169].mxu1 }
 0x3cc   : > { %v7030_v57 = vpop.f32.mrb[201].mxu0  ;;  %v6919_v0 = vadd.f32 %v6918_v8, %v6917_v12  ;;  %v6920_v7 = vpop.f32.mrb[170].mxu1 }
 0x3cd   : > { %v7031_v50 = vadd.f32 %v7030_v57, %v7029_v21  ;;  %v7032_v36 = vpop.f32.mrb[202].mxu0  ;;  %v6921_v26 = vpop.f32.mrb[171].mxu1 }
 0x3ce   : > { %v7033_v33 = vpop.f32.mrb[203].mxu0  ;;  %v4675_v18 = vadd.f32 %v6919_v0, %v10370_v55  ;;  %v6922_v34 = vadd.f32 %v6921_v26, %v6920_v7 }
 0x3cf   : > { %v7034_v62 = vadd.f32 %v7033_v33, %v7032_v36  ;;  %7398 = vmatmul.mubr.msk.bf16.gmra.mrb[20].mxu1 %vm11571_vm3, %v10042_v30  ;;  %v11602_v36 = vld [vmem:[#allocation30_spill] sm:$0xff] }
 0x3d0   : > { %v10509_v38 = vadd.f32 %v7031_v50, %v4675_v18  ;;  %v4678_v3 = vadd.f32 %v6922_v34, %v10370_v55  ;;  %7401 = vmatprep.mubr.msk.bf16.mxu1 %vm11598_vm14, %v10058_v48  ;;  %v11603_v54 = vpack.c.bf16 %v11601_v28, %v11602_v36 }
 0x3d2   : > { %v10515_v46 = vadd.f32 %v7034_v62, %v4678_v3  ;;  %v6923_v23 = vpop.f32.mrb[172].mxu1 }
 0x3d3   : > { %v7035_v43 = vpop.f32.mrb[204].mxu0  ;;  %v6924_v45 = vpop.f32.mrb[173].mxu1 }
 0x3d4   : > { %v7036_v61 = vpop.f32.mrb[205].mxu0  ;;  %v6925_v14 = vadd.f32 %v6924_v45, %v6923_v23  ;;  %v6926_v47 = vpop.f32.mrb[174].mxu1 }
 0x3d5   : > { %v7037_v13 = vadd.f32 %v7036_v61, %v7035_v43  ;;  %v7038_v39 = vpop.f32.mrb[206].mxu0  ;;  %v6927_v5 = vpop.f32.mrb[175].mxu1 }
 0x3d6   : > { %v7039_v30 = vpop.f32.mrb[207].mxu0  ;;  %v4683_v19 = vadd.f32 %v6925_v14, %v10370_v55  ;;  %v6928_v27 = vadd.f32 %v6927_v5, %v6926_v47 }
 0x3d7   : > { %v7040_v44 = vadd.f32 %v7039_v30, %v7038_v39  ;;  %7402 = vmatmul.mubr.msk.bf16.gmra.mrb[24].mxu1 %vm11580_vm0, %v11584_v42 }
 0x3d8   : > { %v10521_v48 = vadd.f32 %v7037_v13, %v4683_v19  ;;  %v4686_v9 = vadd.f32 %v6928_v27, %v10370_v55  ;;  %7405 = vmatprep.mubr.msk.bf16.mxu1 %vm11543_vm1, %v11600_v63 }
 0x3da   : > { %v10529_v22 = vadd.f32 %v7040_v44, %v4686_v9  ;;  %v6929_v41 = vpop.f32.mrb[176].mxu1 }
 0x3db   : > { %v7041_v60 = vpop.f32.mrb[208].mxu0  ;;  %v6930_v4 = vpop.f32.mrb[177].mxu1 }
 0x3dc   : > { %v7042_v25 = vpop.f32.mrb[209].mxu0  ;;  %v6931_v12 = vadd.f32 %v6930_v4, %v6929_v41  ;;  %v6932_v24 = vpop.f32.mrb[178].mxu1 }
 0x3dd   : > { %v7043_v21 = vadd.f32 %v7042_v25, %v7041_v60  ;;  %v7044_v42 = vpop.f32.mrb[210].mxu0  ;;  %v6933_v8 = vpop.f32.mrb[179].mxu1 }
 0x3de   : > { %v7045_v57 = vpop.f32.mrb[211].mxu0  ;;  %v4691_v0 = vadd.f32 %v6931_v12, %v10370_v55  ;;  %v6934_v50 = vadd.f32 %v6933_v8, %v6932_v24 }
 0x3df   : > { %v7046_v7 = vadd.f32 %v7045_v57, %v7044_v42  ;;  %7406 = vmatmul.mubr.msk.bf16.gmra.mrb[28].mxu1 %vm11548_vm10, %v11603_v54 }
 0x3e0   : > { %v10537_v26 = vadd.f32 %v7043_v21, %v4691_v0  ;;  %v4694_v33 = vadd.f32 %v6934_v50, %v10370_v55 }
 0x3e2   : > { %v10540_v18 = vadd.f32 %v7046_v7, %v4694_v33  ;;  %v6935_v34 = vpop.f32.mrb[180].mxu1 }
 0x3e3   : > { %v7047_v62 = vpop.f32.mrb[212].mxu0  ;;  %v6936_v3 = vpop.f32.mrb[181].mxu1 }
 0x3e4   : > { %v7048_v23 = vpop.f32.mrb[213].mxu0  ;;  %v6937_v43 = vadd.f32 %v6936_v3, %v6935_v34  ;;  %v6938_v61 = vpop.f32.mrb[182].mxu1 }
 0x3e5   : > { %v7049_v45 = vadd.f32 %v7048_v23, %v7047_v62  ;;  %v7050_v14 = vpop.f32.mrb[214].mxu0  ;;  %v6939_v13 = vpop.f32.mrb[183].mxu1 }
 0x3e6   : > { %v7051_v47 = vpop.f32.mrb[215].mxu0  ;;  %v4699_v39 = vadd.f32 %v6937_v43, %v10370_v55  ;;  %v6940_v1 = vadd.f32 %v6939_v13, %v6938_v61 }
 0x3e7   : > { %v7052_v5 = vadd.f32 %v7051_v47, %v7050_v14 }
 0x3e8   : > { %v10543_v30 = vadd.f32 %v7049_v45, %v4699_v39  ;;  %v4702_v19 = vadd.f32 %v6940_v1, %v10370_v55 }
 0x3ea   : > { %v10546_v27 = vadd.f32 %v7052_v5, %v4702_v19  ;;  %v6941_v44 = vpop.f32.mrb[184].mxu1 }
 0x3eb   : > { %v7053_v9 = vpop.f32.mrb[216].mxu0  ;;  %v6942_v59 = vpop.f32.mrb[185].mxu1 }
 0x3ec   : > { %v7054_v63 = vpop.f32.mrb[217].mxu0  ;;  %v6943_v41 = vadd.f32 %v6942_v59, %v6941_v44  ;;  %v6944_v4 = vpop.f32.mrb[186].mxu1 }
 0x3ed   : > { %v7055_v60 = vadd.f32 %v7054_v63, %v7053_v9  ;;  %v7056_v25 = vpop.f32.mrb[218].mxu0  ;;  %v6945_v12 = vpop.f32.mrb[187].mxu1 }
 0x3ee   : > { %v7057_v21 = vpop.f32.mrb[219].mxu0  ;;  %v4707_v24 = vadd.f32 %v6943_v41, %v10370_v55  ;;  %v6946_v42 = vadd.f32 %v6945_v12, %v6944_v4 }
 0x3ef   : > { %v7058_v8 = vadd.f32 %v7057_v21, %v7056_v25 }
 0x3f0   : > { %v10549_v57 = vadd.f32 %v7055_v60, %v4707_v24  ;;  %v4710_v0 = vadd.f32 %v6946_v42, %v10370_v55 }
 0x3f2   : > { %v10552_v50 = vadd.f32 %v7058_v8, %v4710_v0  ;;  %v6947_v7 = vpop.f32.mrb[188].mxu1 }
 0x3f3   : > { %v7059_v28 = vpop.f32.mrb[220].mxu0  ;;  %v6948_v36 = vpop.f32.mrb[189].mxu1 }
 0x3f4   : > { %v7060_v54 = vpop.f32.mrb[221].mxu0  ;;  %v6949_v33 = vadd.f32 %v6948_v36, %v6947_v7  ;;  %v6950_v62 = vpop.f32.mrb[190].mxu1 }
 0x3f5   : > { %v7061_v34 = vadd.f32 %v7060_v54, %v7059_v28  ;;  %v7062_v3 = vpop.f32.mrb[222].mxu0  ;;  %v6951_v23 = vpop.f32.mrb[191].mxu1 }
 0x3f6   : > { %v7063_v43 = vpop.f32.mrb[223].mxu0  ;;  %v4715_v45 = vadd.f32 %v6949_v33, %v10370_v55  ;;  %v6952_v61 = vadd.f32 %v6951_v23, %v6950_v62 }
 0x3f7   : > { %v7064_v14 = vadd.f32 %v7063_v43, %v7062_v3 }
 0x3f8   : > { %v10555_v13 = vadd.f32 %v7061_v34, %v4715_v45  ;;  %v4718_v47 = vadd.f32 %v6952_v61, %v10370_v55 }
 0x3fa   : > { %v10558_v39 = vadd.f32 %v7064_v14, %v4718_v47  ;;  %v7081_v1 = vpop.f32.mrb[192].mxu1 }
 0x3fb   : > { %v7193_v5 = vpop.f32.mrb[224].mxu0  ;;  %v7082_v19 = vpop.f32.mrb[193].mxu1 }
 0x3fc   : > { %v7194_v44 = vpop.f32.mrb[225].mxu0  ;;  %v7083_v9 = vadd.f32 %v7082_v19, %v7081_v1  ;;  %v7084_v63 = vpop.f32.mrb[194].mxu1 }
 0x3fd   : > { %v7195_v59 = vadd.f32 %v7194_v44, %v7193_v5  ;;  %v7196_v41 = vpop.f32.mrb[226].mxu0  ;;  %v7085_v60 = vpop.f32.mrb[195].mxu1 }
 0x3fe   : > { %v7197_v4 = vpop.f32.mrb[227].mxu0  ;;  %v4917_v25 = vadd.f32 %v7083_v9, %v10377_v53  ;;  %v7086_v12 = vadd.f32 %v7085_v60, %v7084_v63 }
 0x3ff   : > { %v7198_v21 = vadd.f32 %v7197_v4, %v7196_v41 }
 0x400   : > { %v4920_v24 = vadd.f32 %v7086_v12, %v10384_v37  ;;  %v10562_v42 = vadd.f32 %v7195_v59, %v4917_v25 }
 0x402   : > { %v7087_v55 = vpop.f32.mrb[196].mxu1  ;;  %v10564_v0 = vadd.f32 %v7198_v21, %v4920_v24 }
 0x403   : > { %v7199_v8 = vpop.f32.mrb[228].mxu0  ;;  %v7088_v7 = vpop.f32.mrb[197].mxu1 }
 0x404   : > { %v7200_v28 = vpop.f32.mrb[229].mxu0  ;;  %v7089_v36 = vadd.f32 %v7088_v7, %v7087_v55  ;;  %v7090_v33 = vpop.f32.mrb[198].mxu1 }
 0x405   : > { %v7201_v54 = vadd.f32 %v7200_v28, %v7199_v8  ;;  %v7202_v34 = vpop.f32.mrb[230].mxu0  ;;  %v7091_v62 = vpop.f32.mrb[199].mxu1 }
 0x406   : > { %v7203_v3 = vpop.f32.mrb[231].mxu0  ;;  %v4925_v53 = vadd.f32 %v7089_v36, %v10391_v40  ;;  %v7092_v23 = vadd.f32 %v7091_v62, %v7090_v33 }
 0x407   : > { %v7204_v43 = vadd.f32 %v7203_v3, %v7202_v34 }
 0x408   : > { %v4928_v37 = vadd.f32 %v7092_v23, %v10398_v10  ;;  %v10568_v45 = vadd.f32 %v7201_v54, %v4925_v53 }
 0x40a   : > { %v7093_v61 = vpop.f32.mrb[200].mxu1  ;;  %v10570_v47 = vadd.f32 %v7204_v43, %v4928_v37 }
 0x40b   : > { %v7205_v14 = vpop.f32.mrb[232].mxu0  ;;  %v7094_v1 = vpop.f32.mrb[201].mxu1 }
 0x40c   : > { %v7206_v5 = vpop.f32.mrb[233].mxu0  ;;  %v7095_v19 = vadd.f32 %v7094_v1, %v7093_v61  ;;  %v7096_v9 = vpop.f32.mrb[202].mxu1 }
 0x40d   : > { %v7207_v44 = vadd.f32 %v7206_v5, %v7205_v14  ;;  %v7208_v59 = vpop.f32.mrb[234].mxu0  ;;  %v7097_v63 = vpop.f32.mrb[203].mxu1 }
 0x40e   : > { %v7209_v41 = vpop.f32.mrb[235].mxu0  ;;  %v4933_v40 = vadd.f32 %v7095_v19, %v10405_v31  ;;  %v7098_v60 = vadd.f32 %v7097_v63, %v7096_v9 }
 0x40f   : > { %v7210_v4 = vadd.f32 %v7209_v41, %v7208_v59 }
 0x410   : > { %v4936_v10 = vadd.f32 %v7098_v60, %v10412_v17  ;;  %v10574_v25 = vadd.f32 %v7207_v44, %v4933_v40 }
 0x412   : > { %v7099_v12 = vpop.f32.mrb[204].mxu1  ;;  %v10576_v24 = vadd.f32 %v7210_v4, %v4936_v10 }
 0x413   : > { %v7211_v21 = vpop.f32.mrb[236].mxu0  ;;  %v7100_v55 = vpop.f32.mrb[205].mxu1 }
 0x414   : > { %v7212_v8 = vpop.f32.mrb[237].mxu0  ;;  %v7101_v7 = vadd.f32 %v7100_v55, %v7099_v12  ;;  %v7102_v36 = vpop.f32.mrb[206].mxu1 }
 0x415   : > { %v7213_v28 = vadd.f32 %v7212_v8, %v7211_v21  ;;  %v7214_v54 = vpop.f32.mrb[238].mxu0  ;;  %v7103_v33 = vpop.f32.mrb[207].mxu1 }
 0x416   : > { %v7215_v34 = vpop.f32.mrb[239].mxu0  ;;  %v4941_v31 = vadd.f32 %v7101_v7, %v10419_v16  ;;  %v7104_v62 = vadd.f32 %v7103_v33, %v7102_v36 }
 0x417   : > { %v7216_v3 = vadd.f32 %v7215_v34, %v7214_v54 }
 0x418   : > { %v4944_v17 = vadd.f32 %v7104_v62, %v10428_v52  ;;  %v10580_v53 = vadd.f32 %v7213_v28, %v4941_v31 }
 0x41a   : > { %v7105_v23 = vpop.f32.mrb[208].mxu1  ;;  %v10582_v37 = vadd.f32 %v7216_v3, %v4944_v17 }
 0x41b   : > { %v7217_v43 = vpop.f32.mrb[240].mxu0  ;;  %v7106_v61 = vpop.f32.mrb[209].mxu1 }
 0x41c   : > { %v7218_v14 = vpop.f32.mrb[241].mxu0  ;;  %v7107_v1 = vadd.f32 %v7106_v61, %v7105_v23  ;;  %v7108_v19 = vpop.f32.mrb[210].mxu1 }
 0x41d   : > { %v7219_v5 = vadd.f32 %v7218_v14, %v7217_v43  ;;  %v7220_v44 = vpop.f32.mrb[242].mxu0  ;;  %v7109_v9 = vpop.f32.mrb[211].mxu1 }
 0x41e   : > { %v7221_v59 = vpop.f32.mrb[243].mxu0  ;;  %v4949_v16 = vadd.f32 %v7107_v1, %v10437_v32  ;;  %v7110_v63 = vadd.f32 %v7109_v9, %v7108_v19 }
 0x41f   : > { %v7222_v41 = vadd.f32 %v7221_v59, %v7220_v44 }
 0x420   : > { %v4952_v52 = vadd.f32 %v7110_v63, %v10443_v6  ;;  %v10586_v40 = vadd.f32 %v7219_v5, %v4949_v16 }
 0x422   : > { %v7111_v60 = vpop.f32.mrb[212].mxu1  ;;  %v10588_v10 = vadd.f32 %v7222_v41, %v4952_v52 }
 0x423   : > { %v7223_v4 = vpop.f32.mrb[244].mxu0  ;;  %v7112_v12 = vpop.f32.mrb[213].mxu1 }
 0x424   : > { %v7224_v21 = vpop.f32.mrb[245].mxu0  ;;  %v7113_v55 = vadd.f32 %v7112_v12, %v7111_v60  ;;  %v7114_v7 = vpop.f32.mrb[214].mxu1 }
 0x425   : > { %v7225_v8 = vadd.f32 %v7224_v21, %v7223_v4  ;;  %v7226_v28 = vpop.f32.mrb[246].mxu0  ;;  %v7115_v36 = vpop.f32.mrb[215].mxu1 }
 0x426   : > { %v7227_v54 = vpop.f32.mrb[247].mxu0  ;;  %v4957_v32 = vadd.f32 %v7113_v55, %v10449_v51  ;;  %v7116_v33 = vadd.f32 %v7115_v36, %v7114_v7 }
 0x427   : > { %v7228_v34 = vadd.f32 %v7227_v54, %v7226_v28 }
 0x428   : > { %v4960_v6 = vadd.f32 %v7116_v33, %v10455_v29  ;;  %v10592_v31 = vadd.f32 %v7225_v8, %v4957_v32 }
 0x42a   : > { %v7117_v62 = vpop.f32.mrb[216].mxu1  ;;  %v10594_v17 = vadd.f32 %v7228_v34, %v4960_v6 }
 0x42b   : > { %v7229_v3 = vpop.f32.mrb[248].mxu0  ;;  %v7118_v23 = vpop.f32.mrb[217].mxu1 }
 0x42c   : > { %v7230_v43 = vpop.f32.mrb[249].mxu0  ;;  %v7119_v61 = vadd.f32 %v7118_v23, %v7117_v62  ;;  %v7120_v1 = vpop.f32.mrb[218].mxu1 }
 0x42d   : > { %v7231_v14 = vadd.f32 %v7230_v43, %v7229_v3  ;;  %v7232_v5 = vpop.f32.mrb[250].mxu0  ;;  %v7121_v19 = vpop.f32.mrb[219].mxu1 }
 0x42e   : > { %v7233_v44 = vpop.f32.mrb[251].mxu0  ;;  %v4965_v51 = vadd.f32 %v7119_v61, %v10461_v2  ;;  %v7122_v9 = vadd.f32 %v7121_v19, %v7120_v1 }
 0x42f   : > { %v7234_v59 = vadd.f32 %v7233_v44, %v7232_v5 }
 0x430   : > { %v4968_v29 = vadd.f32 %v7122_v9, %v10467_v11  ;;  %v10598_v16 = vadd.f32 %v7231_v14, %v4965_v51 }
 0x432   : > { %v7123_v63 = vpop.f32.mrb[220].mxu1  ;;  %v10600_v52 = vadd.f32 %v7234_v59, %v4968_v29 }
 0x433   : > { %v7235_v41 = vpop.f32.mrb[252].mxu0  ;;  %v7124_v60 = vpop.f32.mrb[221].mxu1 }
 0x434   : > { %v7236_v4 = vpop.f32.mrb[253].mxu0  ;;  %v7125_v12 = vadd.f32 %v7124_v60, %v7123_v63  ;;  %v7126_v55 = vpop.f32.mrb[222].mxu1 }
 0x435   : > { %v7237_v21 = vadd.f32 %v7236_v4, %v7235_v41  ;;  %v7238_v8 = vpop.f32.mrb[254].mxu0  ;;  %v7127_v7 = vpop.f32.mrb[223].mxu1 }
 0x436   : > { %v7239_v28 = vpop.f32.mrb[255].mxu0  ;;  %v4973_v2 = vadd.f32 %v7125_v12, %v10473_v20  ;;  %v7128_v36 = vadd.f32 %v7127_v7, %v7126_v55 }
 0x437   : > { %v7240_v54 = vadd.f32 %v7239_v28, %v7238_v8 }
 0x438   : > { %v4976_v11 = vadd.f32 %v7128_v36, %v10479_v58  ;;  %v10604_v32 = vadd.f32 %v7237_v21, %v4973_v2 }
 0x43a   : > { %v7129_v33 = vpop.f32.mrb[224].mxu1  ;;  %v10606_v6 = vadd.f32 %v7240_v54, %v4976_v11 }
 0x43b   : > { %v7241_v34 = vpop.f32.mrb[0].mxu0  ;;  %v7130_v62 = vpop.f32.mrb[225].mxu1 }
 0x43c   : > { %v7242_v3 = vpop.f32.mrb[1].mxu0  ;;  %v7131_v23 = vadd.f32 %v7130_v62, %v7129_v33  ;;  %v7132_v61 = vpop.f32.mrb[226].mxu1 }
 0x43d   : > { %v7243_v43 = vadd.f32 %v7242_v3, %v7241_v34  ;;  %v7244_v14 = vpop.f32.mrb[2].mxu0  ;;  %v7133_v1 = vpop.f32.mrb[227].mxu1 }
 0x43e   : > { %v7245_v5 = vpop.f32.mrb[3].mxu0  ;;  %v4981_v20 = vadd.f32 %v7131_v23, %v10485_v49  ;;  %v7134_v19 = vadd.f32 %v7133_v1, %v7132_v61 }
 0x43f   : > { %v7246_v44 = vadd.f32 %v7245_v5, %v7244_v14 }
 0x440   : > { %v4984_v58 = vadd.f32 %v7134_v19, %v10491_v35  ;;  %v10610_v51 = vadd.f32 %v7243_v43, %v4981_v20 }
 0x442   : > { %v7135_v9 = vpop.f32.mrb[228].mxu1  ;;  %v10612_v29 = vadd.f32 %v7246_v44, %v4984_v58 }
 0x443   : > { %v7247_v59 = vpop.f32.mrb[4].mxu0  ;;  %v7136_v63 = vpop.f32.mrb[229].mxu1 }
 0x444   : > { %v7248_v41 = vpop.f32.mrb[5].mxu0  ;;  %v7137_v60 = vadd.f32 %v7136_v63, %v7135_v9  ;;  %v7138_v12 = vpop.f32.mrb[230].mxu1 }
 0x445   : > { %v7249_v4 = vadd.f32 %v7248_v41, %v7247_v59  ;;  %v7250_v21 = vpop.f32.mrb[6].mxu0  ;;  %v7139_v55 = vpop.f32.mrb[231].mxu1 }
 0x446   : > { %v7251_v8 = vpop.f32.mrb[7].mxu0  ;;  %v4989_v49 = vadd.f32 %v7137_v60, %v10497_v56  ;;  %v7140_v7 = vadd.f32 %v7139_v55, %v7138_v12 }
 0x447   : > { %v7252_v28 = vadd.f32 %v7251_v8, %v7250_v21 }
 0x448   : > { %v4992_v35 = vadd.f32 %v7140_v7, %v10503_v15  ;;  %v10616_v2 = vadd.f32 %v7249_v4, %v4989_v49 }
 0x44a   : > { %v7141_v36 = vpop.f32.mrb[232].mxu1  ;;  %v10618_v11 = vadd.f32 %v7252_v28, %v4992_v35 }
 0x44b   : > { %v7253_v54 = vpop.f32.mrb[8].mxu0  ;;  %v7142_v33 = vpop.f32.mrb[233].mxu1 }
 0x44c   : > { %v7254_v34 = vpop.f32.mrb[9].mxu0  ;;  %v7143_v62 = vadd.f32 %v7142_v33, %v7141_v36  ;;  %v7144_v23 = vpop.f32.mrb[234].mxu1 }
 0x44d   : > { %v7255_v3 = vadd.f32 %v7254_v34, %v7253_v54  ;;  %v7256_v43 = vpop.f32.mrb[10].mxu0  ;;  %v7145_v61 = vpop.f32.mrb[235].mxu1 }
 0x44e   : > { %v7257_v14 = vpop.f32.mrb[11].mxu0  ;;  %v4997_v56 = vadd.f32 %v7143_v62, %v10509_v38  ;;  %v7146_v1 = vadd.f32 %v7145_v61, %v7144_v23 }
 0x44f   : > { %v7258_v5 = vadd.f32 %v7257_v14, %v7256_v43 }
 0x450   : > { %v5000_v15 = vadd.f32 %v7146_v1, %v10515_v46  ;;  %v10622_v20 = vadd.f32 %v7255_v3, %v4997_v56 }
 0x452   : > { %v7147_v19 = vpop.f32.mrb[236].mxu1  ;;  %v10624_v58 = vadd.f32 %v7258_v5, %v5000_v15 }
 0x453   : > { %v7259_v44 = vpop.f32.mrb[12].mxu0  ;;  %v7148_v9 = vpop.f32.mrb[237].mxu1 }
 0x454   : > { %v7260_v59 = vpop.f32.mrb[13].mxu0  ;;  %v7149_v63 = vadd.f32 %v7148_v9, %v7147_v19  ;;  %v7150_v60 = vpop.f32.mrb[238].mxu1 }
 0x455   : > { %v7261_v41 = vadd.f32 %v7260_v59, %v7259_v44  ;;  %v7262_v4 = vpop.f32.mrb[14].mxu0  ;;  %v7151_v12 = vpop.f32.mrb[239].mxu1 }
 0x456   : > { %v7263_v21 = vpop.f32.mrb[15].mxu0  ;;  %v5005_v38 = vadd.f32 %v7149_v63, %v10521_v48  ;;  %v7152_v55 = vadd.f32 %v7151_v12, %v7150_v60 }
 0x457   : > { %v7264_v8 = vadd.f32 %v7263_v21, %v7262_v4 }
 0x458   : > { %v5008_v46 = vadd.f32 %v7152_v55, %v10529_v22  ;;  %v10628_v49 = vadd.f32 %v7261_v41, %v5005_v38 }
 0x45a   : > { %v7153_v7 = vpop.f32.mrb[240].mxu1  ;;  %v10630_v35 = vadd.f32 %v7264_v8, %v5008_v46 }
 0x45b   : > { %v7265_v28 = vpop.f32.mrb[16].mxu0  ;;  %v7154_v36 = vpop.f32.mrb[241].mxu1 }
 0x45c   : > { %v7266_v54 = vpop.f32.mrb[17].mxu0  ;;  %v7155_v33 = vadd.f32 %v7154_v36, %v7153_v7  ;;  %v7156_v62 = vpop.f32.mrb[242].mxu1 }
 0x45d   : > { %v7267_v34 = vadd.f32 %v7266_v54, %v7265_v28  ;;  %v7268_v3 = vpop.f32.mrb[18].mxu0  ;;  %v7157_v23 = vpop.f32.mrb[243].mxu1 }
 0x45e   : > { %v7269_v43 = vpop.f32.mrb[19].mxu0  ;;  %v5013_v48 = vadd.f32 %v7155_v33, %v10537_v26  ;;  %v7158_v61 = vadd.f32 %v7157_v23, %v7156_v62 }
 0x45f   : > { %v7270_v14 = vadd.f32 %v7269_v43, %v7268_v3 }
 0x460   : > { %v5016_v22 = vadd.f32 %v7158_v61, %v10540_v18  ;;  %v10634_v56 = vadd.f32 %v7267_v34, %v5013_v48 }
 0x462   : > { %v7159_v1 = vpop.f32.mrb[244].mxu1  ;;  %v10636_v15 = vadd.f32 %v7270_v14, %v5016_v22 }
 0x463   : > { %v7271_v5 = vpop.f32.mrb[20].mxu0  ;;  %v7160_v19 = vpop.f32.mrb[245].mxu1 }
 0x464   : > { %v7272_v44 = vpop.f32.mrb[21].mxu0  ;;  %v7161_v9 = vadd.f32 %v7160_v19, %v7159_v1  ;;  %v7162_v63 = vpop.f32.mrb[246].mxu1 }
 0x465   : > { %v7273_v59 = vadd.f32 %v7272_v44, %v7271_v5  ;;  %v7274_v41 = vpop.f32.mrb[22].mxu0  ;;  %v7163_v60 = vpop.f32.mrb[247].mxu1 }
 0x466   : > { %v7275_v4 = vpop.f32.mrb[23].mxu0  ;;  %v5021_v26 = vadd.f32 %v7161_v9, %v10543_v30  ;;  %v7164_v12 = vadd.f32 %v7163_v60, %v7162_v63 }
 0x467   : > { %v7276_v21 = vadd.f32 %v7275_v4, %v7274_v41 }
 0x468   : > { %v5024_v18 = vadd.f32 %v7164_v12, %v10546_v27  ;;  %v10640_v38 = vadd.f32 %v7273_v59, %v5021_v26 }
 0x46a   : > { %v7165_v55 = vpop.f32.mrb[248].mxu1  ;;  %v10642_v46 = vadd.f32 %v7276_v21, %v5024_v18 }
 0x46b   : > { %v7277_v8 = vpop.f32.mrb[24].mxu0  ;;  %v7166_v7 = vpop.f32.mrb[249].mxu1 }
 0x46c   : > { %v7278_v28 = vpop.f32.mrb[25].mxu0  ;;  %v7167_v36 = vadd.f32 %v7166_v7, %v7165_v55  ;;  %v7168_v33 = vpop.f32.mrb[250].mxu1 }
 0x46d   : > { %v7279_v54 = vadd.f32 %v7278_v28, %v7277_v8  ;;  %v7280_v34 = vpop.f32.mrb[26].mxu0  ;;  %v7169_v62 = vpop.f32.mrb[251].mxu1 }
 0x46e   : > { %v7281_v3 = vpop.f32.mrb[27].mxu0  ;;  %v5029_v30 = vadd.f32 %v7167_v36, %v10549_v57  ;;  %v7170_v23 = vadd.f32 %v7169_v62, %v7168_v33 }
 0x46f   : > { %v7282_v43 = vadd.f32 %v7281_v3, %v7280_v34  ;;  %v7653_v3 = vld [vmem:[%s8060_s16 + $0x28] sm:$0xff] }
 0x470   : > { %v5032_v27 = vadd.f32 %v7170_v23, %v10552_v50  ;;  %v10646_v48 = vadd.f32 %v7279_v54, %v5029_v30 }
 0x472   : > { %v7171_v61 = vpop.f32.mrb[252].mxu1  ;;  %v10648_v22 = vadd.f32 %v7282_v43, %v5032_v27  ;;  %v7654_v43 = vld [vmem:[%s8060_s16 + $0x18] sm:$0xff] }
 0x473   : > { %v7283_v14 = vpop.f32.mrb[28].mxu0  ;;  %v7172_v1 = vpop.f32.mrb[253].mxu1 }
 0x474   : > { %v7284_v5 = vpop.f32.mrb[29].mxu0  ;;  %v7173_v19 = vadd.f32 %v7172_v1, %v7171_v61  ;;  %v7174_v9 = vpop.f32.mrb[254].mxu1 }
 0x475   : > { %v7285_v44 = vadd.f32 %v7284_v5, %v7283_v14  ;;  %v7286_v59 = vpop.f32.mrb[30].mxu0  ;;  %v7175_v63 = vpop.f32.mrb[255].mxu1  ;;  %v7655_v5 = vld [vmem:[%s8060_s16 + $0x40] sm:$0xff] }
 0x476   : > { %v7287_v57 = vpop.f32.mrb[31].mxu0  ;;  %v5037_v41 = vadd.f32 %v7173_v19, %v10555_v13  ;;  %v7176_v50 = vadd.f32 %v7175_v63, %v7174_v9  ;;  %v7651_v13 = vld [vmem:[%s8060_s16 + $0x20] sm:$0xff] }
 0x477   : > { %v7288_v60 = vadd.f32 %v7287_v57, %v7286_v59  ;;  %v7656_v59 = vld [vmem:[%s8060_s16 + $0x30] sm:$0xff] }
 0x478   : > { %v5040_v4 = vadd.f32 %v7176_v50, %v10558_v39  ;;  %v10652_v26 = vadd.f32 %v7285_v44, %v5037_v41  ;;  %v7652_v39 = vld [vmem:[%s8060_s16 + $0x10] sm:$0xff]  ;;  %v7657_v41 = vld [vmem:[%s8060_s16 + $0x48] sm:$0xff] }
 0x47a   : > { %v7379_v12 = vpop.f32.mrb[0].mxu1  ;;  %v10654_v21 = vadd.f32 %v7288_v60, %v5040_v4  ;;  %v7658_v4 = vld [vmem:[%s8060_s16 + $0x38] sm:$0xff] }
 0x47b   : > { %v5247_v18 = vadd.f32 %v7379_v12, %v10568_v45  ;;  %v5238_v55 = vpop.f32.mrb[1].mxu1 }
 0x47c   : > { %v5239_v8 = vadd.f32 %v5238_v55, %v10562_v42  ;;  %v7380_v7 = vpop.f32.mrb[2].mxu1 }
 0x47d   : > { %v5367_v28 = vadd.f32 %v7651_v13, %v5247_v18  ;;  %v5250_v36 = vadd.f32 %v7380_v7, %v10570_v47  ;;  %v5241_v54 = vpop.f32.mrb[3].mxu1  ;;  %v7659_v13 = vld [vmem:[%s8060_s16 + $0x60] sm:$0xff] }
 0x47e   : > { %v5365_v33 = vadd.f32 %v7652_v39, %v5239_v8  ;;  %v5242_v34 = vadd.f32 %v5241_v54, %v10564_v0  ;;  %v7660_v39 = vld [vmem:[%s8060_s16 + $0x50] sm:$0xff] }
 0x47f   : > { %v5399_v62 = vmax.f32 %v5367_v28, 0.0  ;;  %v5368_v30 = vadd.f32 %v7653_v3, %v5250_v36 }
 0x480   : > { %v5397_v23 = vmax.f32 %v5365_v33, 0.0  ;;  %v5366_v45 = vadd.f32 %v7654_v43, %v5242_v34 }
 0x481   : > { %5431 = vst [vmem:[%s10665_s28 + $0x10] sm:$0xff] %v5399_v62  ;;  %v5400_v42 = vmax.f32 %v5368_v30, 0.0  ;;  %v7661_v62 = vld [vmem:[%s8060_s16 + $0x68] sm:$0xff] }
 0x482   : > { %5429 = vst [vmem:[%s10665_s28] sm:$0xff] %v5397_v23  ;;  %v5398_v47 = vmax.f32 %v5366_v45, 0.0  ;;  %v7383_v0 = vpop.f32.mrb[4].mxu1  ;;  %v7662_v23 = vld [vmem:[%s8060_s16 + $0x58] sm:$0xff] }
 0x483   : > { %5432 = vst [vmem:[%s10665_s28 + $0x18] sm:$0xff] %v5400_v42  ;;  %v5263_v27 = vadd.f32 %v7383_v0, %v10580_v53  ;;  %v5254_v61 = vpop.f32.mrb[5].mxu1 }
 0x484   : > { %5430 = vst [vmem:[%s10665_s28 + $0x8] sm:$0xff] %v5398_v47  ;;  %v5255_v14 = vadd.f32 %v5254_v61, %v10574_v25  ;;  %v7384_v1 = vpop.f32.mrb[6].mxu1 }
 0x485   : > { %v5371_v19 = vadd.f32 %v7655_v5, %v5263_v27  ;;  %v5266_v44 = vadd.f32 %v7384_v1, %v10582_v37  ;;  %v5257_v9 = vpop.f32.mrb[7].mxu1  ;;  %v7663_v27 = vld [vmem:[%s8060_s16 + $0x80] sm:$0xff]  ;;  %v7664_v5 = vld [vmem:[%s8060_s16 + $0x70] sm:$0xff] }
 0x486   : > { %v5369_v63 = vadd.f32 %v7656_v59, %v5255_v14  ;;  %v5258_v57 = vadd.f32 %v5257_v9, %v10576_v24  ;;  %v7665_v9 = vld [vmem:[%s8060_s16 + $0x88] sm:$0xff] }
 0x487   : > { %v5403_v53 = vmax.f32 %v5371_v19, 0.0  ;;  %v5372_v50 = vadd.f32 %v7657_v41, %v5266_v44 }
 0x488   : > { %v5401_v60 = vmax.f32 %v5369_v63, 0.0  ;;  %v5370_v25 = vadd.f32 %v7658_v4, %v5258_v57  ;;  %v7666_v57 = vld [vmem:[%s8060_s16 + $0x78] sm:$0xff] }
 0x489   : > { %5435 = vst [vmem:[%s10665_s28 + $0x30] sm:$0xff] %v5403_v53  ;;  %v5404_v12 = vmax.f32 %v5372_v50, 0.0 }
 0x48a   : > { %5433 = vst [vmem:[%s10665_s28 + $0x20] sm:$0xff] %v5401_v60  ;;  %v5402_v18 = vmax.f32 %v5370_v25, 0.0  ;;  %v7387_v37 = vpop.f32.mrb[8].mxu1  ;;  %v7667_v25 = vld [vmem:[%s8060_s16 + $0xa0] sm:$0xff] }
 0x48b   : > { %5436 = vst [vmem:[%s10665_s28 + $0x38] sm:$0xff] %v5404_v12  ;;  %v5279_v55 = vadd.f32 %v7387_v37, %v10592_v31  ;;  %v5270_v8 = vpop.f32.mrb[9].mxu1 }
 0x48c   : > { %5434 = vst [vmem:[%s10665_s28 + $0x28] sm:$0xff] %v5402_v18  ;;  %v5271_v24 = vadd.f32 %v5270_v8, %v10586_v40  ;;  %v7388_v7 = vpop.f32.mrb[10].mxu1 }
 0x48d   : > { %v5375_v28 = vadd.f32 %v7659_v13, %v5279_v55  ;;  %v5282_v36 = vadd.f32 %v7388_v7, %v10594_v17  ;;  %v5273_v54 = vpop.f32.mrb[11].mxu1  ;;  %v7668_v55 = vld [vmem:[%s8060_s16 + $0x90] sm:$0xff]  ;;  %v7669_v7 = vld [vmem:[%s8060_s16 + $0xa8] sm:$0xff] }
 0x48e   : > { %v5373_v33 = vadd.f32 %v7660_v39, %v5271_v24  ;;  %v5274_v34 = vadd.f32 %v5273_v54, %v10588_v10 }
 0x48f   : > { %v5407_v31 = vmax.f32 %v5375_v28, 0.0  ;;  %v5376_v3 = vadd.f32 %v7661_v62, %v5282_v36  ;;  %v7670_v36 = vld [vmem:[%s8060_s16 + $0x98] sm:$0xff]  ;;  %v7671_v62 = vld [vmem:[%s8060_s16 + $0xc0] sm:$0xff] }
 0x490   : > { %v5405_v30 = vmax.f32 %v5373_v33, 0.0  ;;  %v5374_v40 = vadd.f32 %v7662_v23, %v5274_v34 }
 0x491   : > { %5439 = vst [vmem:[%s10665_s28 + $0x50] sm:$0xff] %v5407_v31  ;;  %v5408_v43 = vmax.f32 %v5376_v3, 0.0 }
 0x492   : > { %5437 = vst [vmem:[%s10665_s28 + $0x40] sm:$0xff] %v5405_v30  ;;  %v5406_v45 = vmax.f32 %v5374_v40, 0.0  ;;  %v7391_v17 = vpop.f32.mrb[12].mxu1  ;;  %v7672_v40 = vld [vmem:[%s8060_s16 + $0xb0] sm:$0xff] }
 0x493   : > { %5440 = vst [vmem:[%s10665_s28 + $0x58] sm:$0xff] %v5408_v43  ;;  %v5295_v42 = vadd.f32 %v7391_v17, %v10604_v32  ;;  %v5286_v47 = vpop.f32.mrb[13].mxu1  ;;  %v7673_v17 = vld [vmem:[%s8060_s16 + $0xc8] sm:$0xff] }
 0x494   : > { %5438 = vst [vmem:[%s10665_s28 + $0x48] sm:$0xff] %v5406_v45  ;;  %v5287_v10 = vadd.f32 %v5286_v47, %v10598_v16  ;;  %v7392_v0 = vpop.f32.mrb[14].mxu1 }
 0x495   : > { %v5379_v61 = vadd.f32 %v7663_v27, %v5295_v42  ;;  %v5298_v14 = vadd.f32 %v7392_v0, %v10606_v6  ;;  %v5289_v1 = vpop.f32.mrb[15].mxu1 }
 0x496   : > { %v5377_v19 = vadd.f32 %v7664_v5, %v5287_v10  ;;  %v5290_v44 = vadd.f32 %v5289_v1, %v10600_v52  ;;  %v7674_v10 = vld [vmem:[%s8060_s16 + $0xb8] sm:$0xff]  ;;  %v7675_v5 = vld [vmem:[%s8060_s16 + $0xe0] sm:$0xff] }
 0x497   : > { %v5411_v32 = vmax.f32 %v5379_v61, 0.0  ;;  %v5380_v59 = vadd.f32 %v7665_v9, %v5298_v14  ;;  %v7676_v9 = vld [vmem:[%s8060_s16 + $0xd0] sm:$0xff] }
 0x498   : > { %v5409_v63 = vmax.f32 %v5377_v19, 0.0  ;;  %v5378_v16 = vadd.f32 %v7666_v57, %v5290_v44  ;;  %v7677_v57 = vld [vmem:[%s8060_s16 + $0xe8] sm:$0xff] }
 0x499   : > { %5443 = vst [vmem:[%s10665_s28 + $0x70] sm:$0xff] %v5411_v32  ;;  %v5412_v53 = vmax.f32 %v5380_v59, 0.0 }
 0x49a   : > { %5441 = vst [vmem:[%s10665_s28 + $0x60] sm:$0xff] %v5409_v63  ;;  %v5410_v41 = vmax.f32 %v5378_v16, 0.0  ;;  %v7395_v6 = vpop.f32.mrb[16].mxu1 }
 0x49b   : > { %5444 = vst [vmem:[%s10665_s28 + $0x78] sm:$0xff] %v5412_v53  ;;  %v5311_v50 = vadd.f32 %v7395_v6, %v10616_v2  ;;  %v5302_v60 = vpop.f32.mrb[17].mxu1 }
 0x49c   : > { %5442 = vst [vmem:[%s10665_s28 + $0x68] sm:$0xff] %v5410_v41  ;;  %v5303_v52 = vadd.f32 %v5302_v60, %v10610_v51  ;;  %v7396_v4 = vpop.f32.mrb[18].mxu1  ;;  %v7678_v41 = vld [vmem:[%s8060_s16 + $0xd8] sm:$0xff] }
 0x49d   : > { %v5383_v12 = vadd.f32 %v7667_v25, %v5311_v50  ;;  %v5314_v18 = vadd.f32 %v7396_v4, %v10618_v11  ;;  %v5305_v37 = vpop.f32.mrb[19].mxu1  ;;  %v7679_v25 = vld [vmem:[%s8060_s16 + $0x100] sm:$0xff] }
 0x49e   : > { %v5381_v8 = vadd.f32 %v7668_v55, %v5303_v52  ;;  %v5306_v24 = vadd.f32 %v5305_v37, %v10612_v29  ;;  %v7680_v55 = vld [vmem:[%s8060_s16 + $0xf0] sm:$0xff] }
 0x49f   : > { %v5415_v2 = vmax.f32 %v5383_v12, 0.0  ;;  %v5384_v13 = vadd.f32 %v7669_v7, %v5314_v18 }
 0x4a0   : > { %v5413_v28 = vmax.f32 %v5381_v8, 0.0  ;;  %v5382_v51 = vadd.f32 %v7670_v36, %v5306_v24 }
 0x4a1   : > { %5447 = vst [vmem:[%s10665_s28 + $0x90] sm:$0xff] %v5415_v2  ;;  %v5416_v54 = vmax.f32 %v5384_v13, 0.0  ;;  %v7681_v2 = vld [vmem:[%s8060_s16 + $0x108] sm:$0xff]  ;;  %v7682_v13 = vld [vmem:[%s8060_s16 + $0xf8] sm:$0xff]  ;;  %s7775_s16 = scalar_lea.vmem %s7774_s6, 8192 }
 0x4a2   : > { %5445 = vst [vmem:[%s10665_s28 + $0x80] sm:$0xff] %v5413_v28  ;;  %v5414_v39 = vmax.f32 %v5382_v51, 0.0  ;;  %v7399_v11 = vpop.f32.mrb[20].mxu1  ;;  %p7777_p9 = scmp.lt.s32.totalorder %s7775_s16, %s7769_s13 }
 0x4a3   : > { %5448 = vst [vmem:[%s10665_s28 + $0x98] sm:$0xff] %v5416_v54  ;;  %v5327_v33 = vadd.f32 %v7399_v11, %v10628_v49  ;;  %v5318_v34 = vpop.f32.mrb[21].mxu1 }
 0x4a4   : > { %5446 = vst [vmem:[%s10665_s28 + $0x88] sm:$0xff] %v5414_v39  ;;  %v5319_v29 = vadd.f32 %v5318_v34, %v10622_v20  ;;  %v7400_v31 = vpop.f32.mrb[22].mxu1  ;;  %p7778_p12 = por %p7777_p9, %p7776_p7 }
 0x4a5   : > { %v5387_v3 = vadd.f32 %v7671_v62, %v5327_v33  ;;  %v5330_v30 = vadd.f32 %v7400_v31, %v10630_v35  ;;  %v5321_v23 = vpop.f32.mrb[23].mxu1 }
 0x4a6   : > { %v5385_v43 = vadd.f32 %v7672_v40, %v5319_v29  ;;  %v5322_v45 = vadd.f32 %v5321_v23, %v10624_v58  ;;  %p7779_p2 = pnand %p7778_p12, %p7772_p3 }
 0x4a7   : > { %v5419_v49 = vmax.f32 %v5387_v3, 0.0  ;;  %v5388_v42 = vadd.f32 %v7673_v17, %v5330_v30 }
 0x4a8   : > { %v5417_v47 = vmax.f32 %v5385_v43, 0.0  ;;  %v5386_v20 = vadd.f32 %v7674_v10, %v5322_v45 }
 0x4a9   : > { %5451 = vst [vmem:[%s10665_s28 + $0xb0] sm:$0xff] %v5419_v49  ;;  %v5420_v0 = vmax.f32 %v5388_v42, 0.0 }
 0x4aa   : > { %5449 = vst [vmem:[%s10665_s28 + $0xa0] sm:$0xff] %v5417_v47  ;;  %v5418_v27 = vmax.f32 %v5386_v20, 0.0  ;;  %v7403_v35 = vpop.f32.mrb[24].mxu1 }
 0x4ab   : > { %5452 = vst [vmem:[%s10665_s28 + $0xb8] sm:$0xff] %v5420_v0  ;;  %v5343_v61 = vadd.f32 %v7403_v35, %v10640_v38  ;;  %v5334_v14 = vpop.f32.mrb[25].mxu1 }
 0x4ac   : > { %5450 = vst [vmem:[%s10665_s28 + $0xa8] sm:$0xff] %v5418_v27  ;;  %v5335_v58 = vadd.f32 %v5334_v14, %v10634_v56  ;;  %v7404_v1 = vpop.f32.mrb[26].mxu1 }
 0x4ad   : > { %v5391_v19 = vadd.f32 %v7675_v5, %v5343_v61  ;;  %v5346_v44 = vadd.f32 %v7404_v1, %v10642_v46  ;;  %v5337_v32 = vpop.f32.mrb[27].mxu1 }
 0x4ae   : > { %v5389_v59 = vadd.f32 %v7676_v9, %v5335_v58  ;;  %v5338_v63 = vadd.f32 %v5337_v32, %v10636_v15 }
 0x4af   : > { %v5423_v38 = vmax.f32 %v5391_v19, 0.0  ;;  %v5392_v16 = vadd.f32 %v7677_v57, %v5346_v44 }
 0x4b0   : > { %v5421_v53 = vmax.f32 %v5389_v59, 0.0  ;;  %v5390_v56 = vadd.f32 %v7678_v41, %v5338_v63 }
 0x4b1   : > { %5455 = vst [vmem:[%s10665_s28 + $0xd0] sm:$0xff] %v5423_v38  ;;  %v5424_v6 = vmax.f32 %v5392_v16, 0.0 }
 0x4b2   : > { %5453 = vst [vmem:[%s10665_s28 + $0xc0] sm:$0xff] %v5421_v53  ;;  %v5422_v46 = vmax.f32 %v5390_v56, 0.0  ;;  %v7407_v50 = vpop.f32.mrb[28].mxu1 }
 0x4b3   : > { %5456 = vst [vmem:[%s10665_s28 + $0xd8] sm:$0xff] %v5424_v6  ;;  %v5359_v60 = vadd.f32 %v7407_v50, %v10652_v26  ;;  %v5350_v15 = vpop.f32.mrb[29].mxu1 }
 0x4b4   : > { %5454 = vst [vmem:[%s10665_s28 + $0xc8] sm:$0xff] %v5422_v46  ;;  %v5351_v52 = vadd.f32 %v5350_v15, %v10646_v48  ;;  %v7408_v4 = vpop.f32.mrb[30].mxu1 }
 0x4b5   : > { %v5395_v12 = vadd.f32 %v7679_v25, %v5359_v60  ;;  %v5362_v18 = vadd.f32 %v7408_v4, %v10654_v21  ;;  %v5353_v37 = vpop.f32.mrb[31].mxu1 }
 0x4b6   : > { %v5393_v8 = vadd.f32 %v7680_v55, %v5351_v52  ;;  %v5354_v24 = vadd.f32 %v5353_v37, %v10648_v22 }
 0x4b7   : > { %v5427_v26 = vmax.f32 %v5395_v12, 0.0  ;;  %v5396_v48 = vadd.f32 %v7681_v2, %v5362_v18 }
 0x4b8   : > { %v5425_v7 = vmax.f32 %v5393_v8, 0.0  ;;  %v5394_v28 = vadd.f32 %v7682_v13, %v5354_v24 }
 0x4b9   : > { %5459 = vst [vmem:[%s10665_s28 + $0xf0] sm:$0xff] %v5427_v26  ;;  %v5428_v21 = vmax.f32 %v5396_v48, 0.0 }
 0x4ba   : > { %5457 = vst [vmem:[%s10665_s28 + $0xe0] sm:$0xff] %v5425_v7  ;;  %v5426_v22 = vmax.f32 %v5394_v28, 0.0 }
 0x4bb   : > { %5460 = vst [vmem:[%s10665_s28 + $0xf8] sm:$0xff] %v5428_v21 }
 0x4bc   : > { %5458 = vst [vmem:[%s10665_s28 + $0xe8] sm:$0xff] %v5426_v22 }
 0x4bd   : > { %7782 = shalt.err (!%p7779_p2)
}
 0x4be   : > { %s7783_s24 = scalar_lea.hbm %s10757_s12, 4096  ;;  %s7787_s9 = scalar_lea.hbm %s10811_s5, 8192 }
 0x4bf   : > { %p7784_p13 = scmp.ne.s32.totalorder %s10757_s12, %s7783_s24  ;;  %p7788_p4 = scmp.lt.u32.totalorder %s10757_s12, %s10811_s5 }
 0x4c0   : > { %p7789_p5 = scmp.lt.u32.totalorder %s7787_s9, %s7783_s24  ;;  %p7791_p11 = scmp.lt.u32.totalorder %s7783_s24, %s10757_s12 }
 0x4c1   : > { %p7785_p6 = pnand %p7784_p13, %p11604_p0 }
 0x4c2   : > { %p7790_p8 = por %p7789_p5, %p7788_p4 }
 0x4c3   : > { %p7786_p10 = pneg %p7785_p6 }
 0x4c4   : > { %p7792_p1 = por %p7791_p11, %p7790_p8 }
 0x4c6   : > { %p7793_p3 = pnand %p7792_p1, %p7786_p10 }
 0x4c8   : > { %7796 = shalt.err (!%p7793_p3)
}
 0x4c9   : > { %s7852_s30 = smov 128   ;;  %s7853_s8 = smov 8  }
 0x4ca   : > { %7422 = dma.vmem_to_hbm [thread:$0]  (%p11604_p0), %s10759_s7, 4096, %s10757_s12, %s5462_s22, %s7852_s30, %s7852_s30, %s7853_s8  }
 0x4cb PF: > { %s5490_s10 = sand.u32 1, %s7827_s18   ;;  %p11605_p7 = scmp.ne.s32.totalorder %s11032_s25, 0 }
 0x4cc   : > { %p11606_p9 = scmp.ge.s32.totalorder %s7839_s21, 2  ;;  %s5491_s13 = scalar_lea.sflag [#allocation5], %s5490_s10 }
 0x4ce   : > { %p7436_p12 = pnand %p11606_p9, %p11605_p7 }
 0x4d0   : > { %7822 = dma.done.wait (!%p7436_p12), %s5491_s13, 4096  }
 0x4d1   : > { %7824 = vsyncadd (!%p7436_p12), %s5491_s13, 4294963200  ;;  %p19_p2 = scmp.ge.s32.totalorder %s7994_s14, 4   ;;  %s11607_s18 = smov %s7831_s19 }
 0x4d2   : > { %s11608_s19 = smov %s7835_s20  ;;  %s11609_s20 = smov %s8010_s27 }
 0x4d3   : > { %s11610_s21 = smov %s7994_s14  ;;  %21 = sbr.rel (!%p19_p2) target bundleno = 6 (0x6), region = 98 }
 0x4da   :  { %5496 = vsyncpa [#allocation4], 1 }
 0x4db   :  { %5498 = vsyncpa [#allocation4 + $0x1], 1 }
 0x4dc   :  { %5499 = vsyncpa [#allocation7], 1 }
 0x4dd   :  { %5500 = vsyncpa [#allocation5], 1 }
 0x4de   :  { %5502 = vsyncpa [#allocation5 + $0x1], 1 }

</bundles_post_ra>
